<compile_context>
chip_gen: v6e
topology: v6e:2x2x1
jax: 0.10.0
libtpu: 0.0.40
codegen_flags: <defaults>
</compile_context>

<pallas_src>
import functools
import math

import jax
import jax.numpy as jnp
from jax.experimental import pallas as pl
from jax.experimental.pallas import tpu as pltpu


# ----------------------------------------------------------------------------
# Fused forward kernel: one grid step per batch *block*.
# ----------------------------------------------------------------------------
def _fused_attn_kernel(q_ref, k_ref, v_ref, m_ref,
                       wq_ref, bq_ref, wk_ref, bk_ref, wv_ref, bv_ref,
                       wfc_ref, bfc_ref, o_ref, attn_ref, *, nhead, dk, scale):
    f32 = jnp.float32
    bf16 = jnp.bfloat16

    BB, Lq, d_model = q_ref.shape
    Lk = k_ref.shape[1]
    Mq = BB * Lq
    Mk = BB * Lk

    # Flatten the batch block into a lane-dense row slab (free relayout).
    q = q_ref[...].reshape(Mq, d_model).astype(bf16)
    k = k_ref[...].reshape(Mk, d_model).astype(bf16)
    v = v_ref[...].reshape(Mk, d_model).astype(bf16)

    # Fused input projections: bf16 MXU operands, f32 accumulation + f32 bias.
    qp = jnp.dot(q, wq_ref[...], preferred_element_type=f32) + bq_ref[...]
    kp = jnp.dot(k, wk_ref[...], preferred_element_type=f32) + bk_ref[...]
    vp = jnp.dot(v, wv_ref[...], preferred_element_type=f32) + bv_ref[...]

    if scale:
        # Fold 1/sqrt(dk) into q (M x d_model) instead of per-head scores.
        qp = qp * (1.0 / math.sqrt(dk))

    qp = qp.astype(bf16)                 # (Mq, d_model) score-matmul LHS
    vp = vp.astype(bf16)                 # (Mk, d_model) p@v RHS
    kpT = kp.T.astype(bf16)              # (d_model, Mk) ONE shared transpose

    # Per (batch-in-block, head) attention; per-head outputs are written into
    # the VMEM scratch at their head column so the fc sees one dense slab.
    for b in range(BB):                  # static, small (<= 4)
        m = m_ref[b]                     # (Lq, Lk) additive mask, f32
        for h in range(nhead):           # static, unrolled (nhead = 8)
            lo = h * dk
            qh = qp[b * Lq:(b + 1) * Lq, lo:lo + dk]      # (Lq, dk)
            khT = kpT[lo:lo + dk, b * Lk:(b + 1) * Lk]    # (dk, Lk) sublane view
            vh = vp[b * Lk:(b + 1) * Lk, lo:lo + dk]      # (Lk, dk)

            s = jnp.dot(qh, khT, preferred_element_type=f32)    # (Lq, Lk)
            s = s + m
            s = s - jnp.max(s, axis=-1, keepdims=True)
            p = jnp.exp(s)
            p = p * pl.reciprocal(jnp.sum(p, axis=-1, keepdims=True),
                                  approx=True)

            oh = jnp.dot(p.astype(bf16), vh, preferred_element_type=f32)
            attn_ref[pl.ds(b * Lq, Lq), pl.ds(lo, dk)] = oh

    # Single K=512 fc matmul over the concatenated heads of the whole block.
    attn = attn_ref[...].astype(bf16)                     # (Mq, d_model)
    out = jnp.dot(attn, wfc_ref[...], preferred_element_type=f32) + bfc_ref[...]
    o_ref[...] = out.reshape(BB, Lq, d_model).astype(o_ref.dtype)


def transformer_attention_forward(q, k, v, attn_mask, params, *, nhead,
                                  scale=False, batch_block=None):
    """Entire TransformerAttention forward in a single pallas_call."""
    B, Lq, d_model = q.shape
    Lk = k.shape[1]
    dk = d_model // nhead

    if batch_block is None:
        # 2 grid steps by default (one per TC on v7x); set batch_block=B for a
        # single step on single-TC chips (v5e/v6e).
        batch_block = B // 2 if (B % 2 == 0 and B >= 2) else B
    assert B % batch_block == 0, (B, batch_block)
    n_blocks = B // batch_block

    bf16 = jnp.bfloat16
    f32 = jnp.float32
    # Wrapper-side bf16 weight cast: halves weight HBM traffic and makes every
    # MXU dot a native bf16 x bf16 -> f32 matmul.
    wq = params["w_q"].astype(bf16)
    wk = params["w_k"].astype(bf16)
    wv = params["w_v"].astype(bf16)
    wfc = params["w_fc"].astype(bf16)

    def b2d(b):  # biases stay f32 (added to f32 accumulators), as 2-D tiles
        return b.reshape(1, d_model).astype(f32)

    kern = functools.partial(_fused_attn_kernel, nhead=nhead, dk=dk, scale=scale)

    w_spec = pl.BlockSpec((d_model, d_model), lambda i: (0, 0))   # resident
    bias_spec = pl.BlockSpec((1, d_model), lambda i: (0, 0))      # resident

    out = pl.pallas_call(
        kern,
        out_shape=jax.ShapeDtypeStruct((B, Lq, d_model), q.dtype),
        grid=(n_blocks,),
        in_specs=[
            pl.BlockSpec((batch_block, Lq, d_model), lambda i: (i, 0, 0)),  # q
            pl.BlockSpec((batch_block, Lk, d_model), lambda i: (i, 0, 0)),  # k
            pl.BlockSpec((batch_block, Lk, d_model), lambda i: (i, 0, 0)),  # v
            pl.BlockSpec((batch_block, Lq, Lk), lambda i: (i, 0, 0)),       # mask
            w_spec, bias_spec,                                              # w_q, b_q
            w_spec, bias_spec,                                              # w_k, b_k
            w_spec, bias_spec,                                              # w_v, b_v
            w_spec, bias_spec,                                              # w_fc, b_fc
        ],
        out_specs=pl.BlockSpec((batch_block, Lq, d_model), lambda i: (i, 0, 0)),
        scratch_shapes=[pltpu.VMEM((batch_block * Lq, d_model), jnp.float32)],
        compiler_params=pltpu.CompilerParams(
            dimension_semantics=("parallel",)),
    )(q, k, v, attn_mask,
      wq, b2d(params["b_q"]),
      wk, b2d(params["b_k"]),
      wv, b2d(params["b_v"]),
      wfc, b2d(params["b_fc"]))
    return out


# ----------------------------------------------------------------------------
# Pure-JAX f32 reference for correctness check.
# ----------------------------------------------------------------------------
def reference_forward(q, k, v, attn_mask, params, *, nhead, scale=False):
    B, Lq, d_model = q.shape
    dk = d_model // nhead
    hp = jax.lax.Precision.HIGHEST

    def lin(x, w, b):
        return jnp.einsum("bld,do->blo", x, w, precision=hp) + b

    qp = lin(q, params["w_q"], params["b_q"])
    kp = lin(k, params["w_k"], params["b_k"])
    vp = lin(v, params["w_v"], params["b_v"])
    qh = qp.reshape(B, Lq, nhead, dk).transpose(2, 0, 1, 3)
    kh = kp.reshape(B, -1, nhead, dk).transpose(2, 0, 1, 3)
    vh = vp.reshape(B, -1, nhead, dk).transpose(2, 0, 1, 3)
    s = jnp.einsum("hbqd,hbkd->hbqk", qh, kh, precision=hp)
    if scale:
        s = s / math.sqrt(dk)
    s = s + attn_mask[None]
    p = jax.nn.softmax(s, axis=-1)
    oh = jnp.einsum("hbqk,hbkd->hbqd", p, vh, precision=hp)
    attn_out = oh.transpose(1, 2, 0, 3).reshape(B * Lq, d_model)
    out = jnp.einsum("md,do->mo", attn_out, params["w_fc"], precision=hp) + params["b_fc"]
    return out.reshape(B, Lq, d_model)


def init_params(key, d_model):
    """Deterministic nn.Linear-style init: U(-1/sqrt(in), 1/sqrt(in))."""
    bound = 1.0 / math.sqrt(d_model)
    names = ["w_q", "b_q", "w_k", "b_k", "w_v", "b_v", "w_fc", "b_fc"]
    keys = jax.random.split(key, len(names))
    p = {}
    for name, kk in zip(names, keys):
        shape = (d_model, d_model) if name.startswith("w") else (d_model,)
        p[name] = jax.random.uniform(kk, shape, jnp.float32, -bound, bound)
    return p


if __name__ == "__main__":
    B, L, d_model, nhead = 4, 16, 512, 8   # module defaults: d_model=512, nhead=8
    key = jax.random.PRNGKey(0)
    kq, kk_, kv, km, kp_ = jax.random.split(key, 5)
    q = jax.random.normal(kq, (B, L, d_model), jnp.float32)
    k = jax.random.normal(kk_, (B, L, d_model), jnp.float32)
    v = jax.random.normal(kv, (B, L, d_model), jnp.float32)
    attn_mask = jax.random.normal(km, (B, L, L), jnp.float32)
    params = init_params(kp_, d_model)

    fwd = jax.jit(functools.partial(transformer_attention_forward,
                                    nhead=nhead, scale=False))
    out = jax.block_until_ready(fwd(q, k, v, attn_mask, params))

    ref = reference_forward(q, k, v, attn_mask, params, nhead=nhead, scale=False)
    assert out.shape == (B, L, d_model), out.shape
    assert bool(jnp.all(jnp.isfinite(out)))
    # Tolerance sized for bf16 MXU operands (f32 accumulation) vs. the
    # full-f32 HIGHEST-precision reference.
    assert bool(jnp.allclose(out, ref, rtol=5e-2, atol=5e-2)), \
        float(jnp.max(jnp.abs(out - ref)))
    print("KERNEL_OK")
</pallas_src>

<mosaic_0001>
module attributes {stable_mosaic.version = 11 : i64} {
  func.func @_fused_attn_kernel(%arg0: i32, %arg1: memref<2x16x512xf32, #tpu.memory_space<vmem>>, %arg2: memref<2x16x512xf32, #tpu.memory_space<vmem>>, %arg3: memref<2x16x512xf32, #tpu.memory_space<vmem>>, %arg4: memref<2x16x16xf32, #tpu.memory_space<vmem>>, %arg5: memref<512x512xbf16, #tpu.memory_space<vmem>>, %arg6: memref<1x512xf32, #tpu.memory_space<vmem>>, %arg7: memref<512x512xbf16, #tpu.memory_space<vmem>>, %arg8: memref<1x512xf32, #tpu.memory_space<vmem>>, %arg9: memref<512x512xbf16, #tpu.memory_space<vmem>>, %arg10: memref<1x512xf32, #tpu.memory_space<vmem>>, %arg11: memref<512x512xbf16, #tpu.memory_space<vmem>>, %arg12: memref<1x512xf32, #tpu.memory_space<vmem>>, %arg13: memref<2x16x512xf32, #tpu.memory_space<vmem>>, %arg14: memref<32x512xf32, #tpu.memory_space<vmem>>) attributes {dimension_semantics = [#tpu.dimension_semantics<parallel>], iteration_bounds = array<i64: 2>, scalar_prefetch = 0 : i64, scratch_operands = 1 : i64, tpu.core_type = #tpu.core_type<tc>, window_params = [{transform_indices = @transform_0, window_bounds = array<i64: 2, 16, 512>}, {transform_indices = @transform_1, window_bounds = array<i64: 2, 16, 512>}, {transform_indices = @transform_2, window_bounds = array<i64: 2, 16, 512>}, {transform_indices = @transform_3, window_bounds = array<i64: 2, 16, 16>}, {pipeline_mode = #tpu.pipeline_mode<synchronous>, transform_indices = @transform_4, window_bounds = array<i64: 512, 512>}, {pipeline_mode = #tpu.pipeline_mode<synchronous>, transform_indices = @transform_5, window_bounds = array<i64: 1, 512>}, {pipeline_mode = #tpu.pipeline_mode<synchronous>, transform_indices = @transform_6, window_bounds = array<i64: 512, 512>}, {pipeline_mode = #tpu.pipeline_mode<synchronous>, transform_indices = @transform_7, window_bounds = array<i64: 1, 512>}, {pipeline_mode = #tpu.pipeline_mode<synchronous>, transform_indices = @transform_8, window_bounds = array<i64: 512, 512>}, {pipeline_mode = #tpu.pipeline_mode<synchronous>, transform_indices = @transform_9, window_bounds = array<i64: 1, 512>}, {pipeline_mode = #tpu.pipeline_mode<synchronous>, transform_indices = @transform_10, window_bounds = array<i64: 512, 512>}, {pipeline_mode = #tpu.pipeline_mode<synchronous>, transform_indices = @transform_11, window_bounds = array<i64: 1, 512>}, {transform_indices = @transform_12, window_bounds = array<i64: 2, 16, 512>}]} {
    %c0 = arith.constant 0 : index
    %c0_0 = arith.constant 0 : index
    %c0_1 = arith.constant 0 : index
    %0 = vector.load %arg1[%c0, %c0_0, %c0_1] : memref<2x16x512xf32, #tpu.memory_space<vmem>>, vector<2x16x512xf32>
    %1 = vector.shape_cast %0 : vector<2x16x512xf32> to vector<32x512xf32>
    %2 = arith.truncf %1 : vector<32x512xf32> to vector<32x512xbf16>
    %c0_2 = arith.constant 0 : index
    %c0_3 = arith.constant 0 : index
    %c0_4 = arith.constant 0 : index
    %3 = vector.load %arg2[%c0_2, %c0_3, %c0_4] : memref<2x16x512xf32, #tpu.memory_space<vmem>>, vector<2x16x512xf32>
    %4 = vector.shape_cast %3 : vector<2x16x512xf32> to vector<32x512xf32>
    %5 = arith.truncf %4 : vector<32x512xf32> to vector<32x512xbf16>
    %c0_5 = arith.constant 0 : index
    %c0_6 = arith.constant 0 : index
    %c0_7 = arith.constant 0 : index
    %6 = vector.load %arg3[%c0_5, %c0_6, %c0_7] : memref<2x16x512xf32, #tpu.memory_space<vmem>>, vector<2x16x512xf32>
    %7 = vector.shape_cast %6 : vector<2x16x512xf32> to vector<32x512xf32>
    %8 = arith.truncf %7 : vector<32x512xf32> to vector<32x512xbf16>
    %c0_8 = arith.constant 0 : index
    %c0_9 = arith.constant 0 : index
    %9 = vector.load %arg5[%c0_8, %c0_9] : memref<512x512xbf16, #tpu.memory_space<vmem>>, vector<512x512xbf16>
    %cst = arith.constant dense<0.000000e+00> : vector<32x512xf32>
    %10 = tpu.matmul %2, %9, %cst {dimension_numbers = #tpu.dot_dimension_numbers<[1], [0], [0], [1], [0, 0, 1, 1], [], []>} : vector<32x512xbf16>, vector<512x512xbf16>, vector<32x512xf32> -> vector<32x512xf32>
    %c0_10 = arith.constant 0 : index
    %c0_11 = arith.constant 0 : index
    %11 = vector.load %arg6[%c0_10, %c0_11] : memref<1x512xf32, #tpu.memory_space<vmem>>, vector<1x512xf32>
    %12 = vector.broadcast %11 : vector<1x512xf32> to vector<32x512xf32>
    %13 = arith.addf %10, %12 : vector<32x512xf32>
    %c0_12 = arith.constant 0 : index
    %c0_13 = arith.constant 0 : index
    %14 = vector.load %arg7[%c0_12, %c0_13] : memref<512x512xbf16, #tpu.memory_space<vmem>>, vector<512x512xbf16>
    %cst_14 = arith.constant dense<0.000000e+00> : vector<32x512xf32>
    %15 = tpu.matmul %5, %14, %cst_14 {dimension_numbers = #tpu.dot_dimension_numbers<[1], [0], [0], [1], [0, 0, 1, 1], [], []>} : vector<32x512xbf16>, vector<512x512xbf16>, vector<32x512xf32> -> vector<32x512xf32>
    %c0_15 = arith.constant 0 : index
    %c0_16 = arith.constant 0 : index
    %16 = vector.load %arg8[%c0_15, %c0_16] : memref<1x512xf32, #tpu.memory_space<vmem>>, vector<1x512xf32>
    %17 = vector.broadcast %16 : vector<1x512xf32> to vector<32x512xf32>
    %18 = arith.addf %15, %17 : vector<32x512xf32>
    %c0_17 = arith.constant 0 : index
    %c0_18 = arith.constant 0 : index
    %19 = vector.load %arg9[%c0_17, %c0_18] : memref<512x512xbf16, #tpu.memory_space<vmem>>, vector<512x512xbf16>
    %cst_19 = arith.constant dense<0.000000e+00> : vector<32x512xf32>
    %20 = tpu.matmul %8, %19, %cst_19 {dimension_numbers = #tpu.dot_dimension_numbers<[1], [0], [0], [1], [0, 0, 1, 1], [], []>} : vector<32x512xbf16>, vector<512x512xbf16>, vector<32x512xf32> -> vector<32x512xf32>
    %c0_20 = arith.constant 0 : index
    %c0_21 = arith.constant 0 : index
    %21 = vector.load %arg10[%c0_20, %c0_21] : memref<1x512xf32, #tpu.memory_space<vmem>>, vector<1x512xf32>
    %22 = vector.broadcast %21 : vector<1x512xf32> to vector<32x512xf32>
    %23 = arith.addf %20, %22 : vector<32x512xf32>
    %24 = arith.truncf %13 : vector<32x512xf32> to vector<32x512xbf16>
    %25 = arith.truncf %23 : vector<32x512xf32> to vector<32x512xbf16>
    %26 = tpu.transpose %18, [1, 0] : vector<32x512xf32> -> vector<512x32xf32>
    %27 = arith.truncf %26 : vector<512x32xf32> to vector<512x32xbf16>
    %c0_22 = arith.constant 0 : index
    %c0_23 = arith.constant 0 : index
    %c0_24 = arith.constant 0 : index
    %28 = vector.load %arg4[%c0_22, %c0_23, %c0_24] : memref<2x16x16xf32, #tpu.memory_space<vmem>>, vector<1x16x16xf32>
    %29 = vector.shape_cast %28 : vector<1x16x16xf32> to vector<16x16xf32>
    %30 = vector.extract_strided_slice %24 {offsets = [0, 0], sizes = [16, 64], strides = [1, 1]} : vector<32x512xbf16> to vector<16x64xbf16>
    %31 = vector.extract_strided_slice %27 {offsets = [0, 0], sizes = [64, 16], strides = [1, 1]} : vector<512x32xbf16> to vector<64x16xbf16>
    %32 = vector.extract_strided_slice %25 {offsets = [0, 0], sizes = [16, 64], strides = [1, 1]} : vector<32x512xbf16> to vector<16x64xbf16>
    %cst_25 = arith.constant dense<0.000000e+00> : vector<16x16xf32>
    %33 = tpu.matmul %30, %31, %cst_25 {dimension_numbers = #tpu.dot_dimension_numbers<[1], [0], [0], [1], [0, 0, 1, 1], [], []>} : vector<16x64xbf16>, vector<64x16xbf16>, vector<16x16xf32> -> vector<16x16xf32>
    %34 = arith.addf %33, %29 : vector<16x16xf32>
    %cst_26 = arith.constant dense<0xFF800000> : vector<16xf32>
    %35 = vector.multi_reduction <maximumf>, %34, %cst_26 [1] : vector<16x16xf32> to vector<16xf32>
    %36 = vector.shape_cast %35 : vector<16xf32> to vector<16x1xf32>
    %37 = vector.broadcast %36 : vector<16x1xf32> to vector<16x16xf32>
    %38 = arith.subf %34, %37 : vector<16x16xf32>
    %39 = math.exp %38 : vector<16x16xf32>
    %cst_27 = arith.constant dense<0.000000e+00> : vector<16xf32>
    %40 = vector.multi_reduction <add>, %39, %cst_27 [1] : vector<16x16xf32> to vector<16xf32>
    %41 = vector.shape_cast %40 : vector<16xf32> to vector<16x1xf32>
    %42 = tpu.reciprocal %41 {approx = true} : vector<16x1xf32> -> vector<16x1xf32>
    %43 = vector.broadcast %42 : vector<16x1xf32> to vector<16x16xf32>
    %44 = arith.mulf %39, %43 : vector<16x16xf32>
    %45 = arith.truncf %44 : vector<16x16xf32> to vector<16x16xbf16>
    %cst_28 = arith.constant dense<0.000000e+00> : vector<16x64xf32>
    %46 = tpu.matmul %45, %32, %cst_28 {dimension_numbers = #tpu.dot_dimension_numbers<[1], [0], [0], [1], [0, 0, 1, 1], [], []>} : vector<16x16xbf16>, vector<16x64xbf16>, vector<16x64xf32> -> vector<16x64xf32>
    %c0_29 = arith.constant 0 : index
    %c0_30 = arith.constant 0 : index
    %47 = vector.load %arg14[%c0_29, %c0_30] : memref<32x512xf32, #tpu.memory_space<vmem>>, vector<16x64xf32>
    tpu.vector_store %arg14[%c0_29, %c0_30], %46 {strides = array<i32>} : memref<32x512xf32, #tpu.memory_space<vmem>>, vector<16x64xf32>,
    %48 = vector.extract_strided_slice %24 {offsets = [0, 64], sizes = [16, 64], strides = [1, 1]} : vector<32x512xbf16> to vector<16x64xbf16>
    %49 = vector.extract_strided_slice %27 {offsets = [64, 0], sizes = [64, 16], strides = [1, 1]} : vector<512x32xbf16> to vector<64x16xbf16>
    %50 = vector.extract_strided_slice %25 {offsets = [0, 64], sizes = [16, 64], strides = [1, 1]} : vector<32x512xbf16> to vector<16x64xbf16>
    %cst_31 = arith.constant dense<0.000000e+00> : vector<16x16xf32>
    %51 = tpu.matmul %48, %49, %cst_31 {dimension_numbers = #tpu.dot_dimension_numbers<[1], [0], [0], [1], [0, 0, 1, 1], [], []>} : vector<16x64xbf16>, vector<64x16xbf16>, vector<16x16xf32> -> vector<16x16xf32>
    %52 = arith.addf %51, %29 : vector<16x16xf32>
    %cst_32 = arith.constant dense<0xFF800000> : vector<16xf32>
    %53 = vector.multi_reduction <maximumf>, %52, %cst_32 [1] : vector<16x16xf32> to vector<16xf32>
    %54 = vector.shape_cast %53 : vector<16xf32> to vector<16x1xf32>
    %55 = vector.broadcast %54 : vector<16x1xf32> to vector<16x16xf32>
    %56 = arith.subf %52, %55 : vector<16x16xf32>
    %57 = math.exp %56 : vector<16x16xf32>
    %cst_33 = arith.constant dense<0.000000e+00> : vector<16xf32>
    %58 = vector.multi_reduction <add>, %57, %cst_33 [1] : vector<16x16xf32> to vector<16xf32>
    %59 = vector.shape_cast %58 : vector<16xf32> to vector<16x1xf32>
    %60 = tpu.reciprocal %59 {approx = true} : vector<16x1xf32> -> vector<16x1xf32>
    %61 = vector.broadcast %60 : vector<16x1xf32> to vector<16x16xf32>
    %62 = arith.mulf %57, %61 : vector<16x16xf32>
    %63 = arith.truncf %62 : vector<16x16xf32> to vector<16x16xbf16>
    %cst_34 = arith.constant dense<0.000000e+00> : vector<16x64xf32>
    %64 = tpu.matmul %63, %50, %cst_34 {dimension_numbers = #tpu.dot_dimension_numbers<[1], [0], [0], [1], [0, 0, 1, 1], [], []>} : vector<16x16xbf16>, vector<16x64xbf16>, vector<16x64xf32> -> vector<16x64xf32>
    %c0_35 = arith.constant 0 : index
    %c64 = arith.constant 64 : index
    %65 = vector.load %arg14[%c0_35, %c64] : memref<32x512xf32, #tpu.memory_space<vmem>>, vector<16x64xf32>
    tpu.vector_store %arg14[%c0_35, %c64], %64 {strides = array<i32>} : memref<32x512xf32, #tpu.memory_space<vmem>>, vector<16x64xf32>,
    %66 = vector.extract_strided_slice %24 {offsets = [0, 128], sizes = [16, 64], strides = [1, 1]} : vector<32x512xbf16> to vector<16x64xbf16>
    %67 = vector.extract_strided_slice %27 {offsets = [128, 0], sizes = [64, 16], strides = [1, 1]} : vector<512x32xbf16> to vector<64x16xbf16>
    %68 = vector.extract_strided_slice %25 {offsets = [0, 128], sizes = [16, 64], strides = [1, 1]} : vector<32x512xbf16> to vector<16x64xbf16>
    %cst_36 = arith.constant dense<0.000000e+00> : vector<16x16xf32>
    %69 = tpu.matmul %66, %67, %cst_36 {dimension_numbers = #tpu.dot_dimension_numbers<[1], [0], [0], [1], [0, 0, 1, 1], [], []>} : vector<16x64xbf16>, vector<64x16xbf16>, vector<16x16xf32> -> vector<16x16xf32>
    %70 = arith.addf %69, %29 : vector<16x16xf32>
    %cst_37 = arith.constant dense<0xFF800000> : vector<16xf32>
    %71 = vector.multi_reduction <maximumf>, %70, %cst_37 [1] : vector<16x16xf32> to vector<16xf32>
    %72 = vector.shape_cast %71 : vector<16xf32> to vector<16x1xf32>
    %73 = vector.broadcast %72 : vector<16x1xf32> to vector<16x16xf32>
    %74 = arith.subf %70, %73 : vector<16x16xf32>
    %75 = math.exp %74 : vector<16x16xf32>
    %cst_38 = arith.constant dense<0.000000e+00> : vector<16xf32>
    %76 = vector.multi_reduction <add>, %75, %cst_38 [1] : vector<16x16xf32> to vector<16xf32>
    %77 = vector.shape_cast %76 : vector<16xf32> to vector<16x1xf32>
    %78 = tpu.reciprocal %77 {approx = true} : vector<16x1xf32> -> vector<16x1xf32>
    %79 = vector.broadcast %78 : vector<16x1xf32> to vector<16x16xf32>
    %80 = arith.mulf %75, %79 : vector<16x16xf32>
    %81 = arith.truncf %80 : vector<16x16xf32> to vector<16x16xbf16>
    %cst_39 = arith.constant dense<0.000000e+00> : vector<16x64xf32>
    %82 = tpu.matmul %81, %68, %cst_39 {dimension_numbers = #tpu.dot_dimension_numbers<[1], [0], [0], [1], [0, 0, 1, 1], [], []>} : vector<16x16xbf16>, vector<16x64xbf16>, vector<16x64xf32> -> vector<16x64xf32>
    %c0_40 = arith.constant 0 : index
    %c128 = arith.constant 128 : index
    %83 = vector.load %arg14[%c0_40, %c128] : memref<32x512xf32, #tpu.memory_space<vmem>>, vector<16x64xf32>
    tpu.vector_store %arg14[%c0_40, %c128], %82 {strides = array<i32>} : memref<32x512xf32, #tpu.memory_space<vmem>>, vector<16x64xf32>,
    %84 = vector.extract_strided_slice %24 {offsets = [0, 192], sizes = [16, 64], strides = [1, 1]} : vector<32x512xbf16> to vector<16x64xbf16>
    %85 = vector.extract_strided_slice %27 {offsets = [192, 0], sizes = [64, 16], strides = [1, 1]} : vector<512x32xbf16> to vector<64x16xbf16>
    %86 = vector.extract_strided_slice %25 {offsets = [0, 192], sizes = [16, 64], strides = [1, 1]} : vector<32x512xbf16> to vector<16x64xbf16>
    %cst_41 = arith.constant dense<0.000000e+00> : vector<16x16xf32>
    %87 = tpu.matmul %84, %85, %cst_41 {dimension_numbers = #tpu.dot_dimension_numbers<[1], [0], [0], [1], [0, 0, 1, 1], [], []>} : vector<16x64xbf16>, vector<64x16xbf16>, vector<16x16xf32> -> vector<16x16xf32>
    %88 = arith.addf %87, %29 : vector<16x16xf32>
    %cst_42 = arith.constant dense<0xFF800000> : vector<16xf32>
    %89 = vector.multi_reduction <maximumf>, %88, %cst_42 [1] : vector<16x16xf32> to vector<16xf32>
    %90 = vector.shape_cast %89 : vector<16xf32> to vector<16x1xf32>
    %91 = vector.broadcast %90 : vector<16x1xf32> to vector<16x16xf32>
    %92 = arith.subf %88, %91 : vector<16x16xf32>
    %93 = math.exp %92 : vector<16x16xf32>
    %cst_43 = arith.constant dense<0.000000e+00> : vector<16xf32>
    %94 = vector.multi_reduction <add>, %93, %cst_43 [1] : vector<16x16xf32> to vector<16xf32>
    %95 = vector.shape_cast %94 : vector<16xf32> to vector<16x1xf32>
    %96 = tpu.reciprocal %95 {approx = true} : vector<16x1xf32> -> vector<16x1xf32>
    %97 = vector.broadcast %96 : vector<16x1xf32> to vector<16x16xf32>
    %98 = arith.mulf %93, %97 : vector<16x16xf32>
    %99 = arith.truncf %98 : vector<16x16xf32> to vector<16x16xbf16>
    %cst_44 = arith.constant dense<0.000000e+00> : vector<16x64xf32>
    %100 = tpu.matmul %99, %86, %cst_44 {dimension_numbers = #tpu.dot_dimension_numbers<[1], [0], [0], [1], [0, 0, 1, 1], [], []>} : vector<16x16xbf16>, vector<16x64xbf16>, vector<16x64xf32> -> vector<16x64xf32>
    %c0_45 = arith.constant 0 : index
    %c192 = arith.constant 192 : index
    %101 = vector.load %arg14[%c0_45, %c192] : memref<32x512xf32, #tpu.memory_space<vmem>>, vector<16x64xf32>
    tpu.vector_store %arg14[%c0_45, %c192], %100 {strides = array<i32>} : memref<32x512xf32, #tpu.memory_space<vmem>>, vector<16x64xf32>,
    %102 = vector.extract_strided_slice %24 {offsets = [0, 256], sizes = [16, 64], strides = [1, 1]} : vector<32x512xbf16> to vector<16x64xbf16>
    %103 = vector.extract_strided_slice %27 {offsets = [256, 0], sizes = [64, 16], strides = [1, 1]} : vector<512x32xbf16> to vector<64x16xbf16>
    %104 = vector.extract_strided_slice %25 {offsets = [0, 256], sizes = [16, 64], strides = [1, 1]} : vector<32x512xbf16> to vector<16x64xbf16>
    %cst_46 = arith.constant dense<0.000000e+00> : vector<16x16xf32>
    %105 = tpu.matmul %102, %103, %cst_46 {dimension_numbers = #tpu.dot_dimension_numbers<[1], [0], [0], [1], [0, 0, 1, 1], [], []>} : vector<16x64xbf16>, vector<64x16xbf16>, vector<16x16xf32> -> vector<16x16xf32>
    %106 = arith.addf %105, %29 : vector<16x16xf32>
    %cst_47 = arith.constant dense<0xFF800000> : vector<16xf32>
    %107 = vector.multi_reduction <maximumf>, %106, %cst_47 [1] : vector<16x16xf32> to vector<16xf32>
    %108 = vector.shape_cast %107 : vector<16xf32> to vector<16x1xf32>
    %109 = vector.broadcast %108 : vector<16x1xf32> to vector<16x16xf32>
    %110 = arith.subf %106, %109 : vector<16x16xf32>
    %111 = math.exp %110 : vector<16x16xf32>
    %cst_48 = arith.constant dense<0.000000e+00> : vector<16xf32>
    %112 = vector.multi_reduction <add>, %111, %cst_48 [1] : vector<16x16xf32> to vector<16xf32>
    %113 = vector.shape_cast %112 : vector<16xf32> to vector<16x1xf32>
    %114 = tpu.reciprocal %113 {approx = true} : vector<16x1xf32> -> vector<16x1xf32>
    %115 = vector.broadcast %114 : vector<16x1xf32> to vector<16x16xf32>
    %116 = arith.mulf %111, %115 : vector<16x16xf32>
    %117 = arith.truncf %116 : vector<16x16xf32> to vector<16x16xbf16>
    %cst_49 = arith.constant dense<0.000000e+00> : vector<16x64xf32>
    %118 = tpu.matmul %117, %104, %cst_49 {dimension_numbers = #tpu.dot_dimension_numbers<[1], [0], [0], [1], [0, 0, 1, 1], [], []>} : vector<16x16xbf16>, vector<16x64xbf16>, vector<16x64xf32> -> vector<16x64xf32>
    %c0_50 = arith.constant 0 : index
    %c256 = arith.constant 256 : index
    %119 = vector.load %arg14[%c0_50, %c256] : memref<32x512xf32, #tpu.memory_space<vmem>>, vector<16x64xf32>
    tpu.vector_store %arg14[%c0_50, %c256], %118 {strides = array<i32>} : memref<32x512xf32, #tpu.memory_space<vmem>>, vector<16x64xf32>,
    %120 = vector.extract_strided_slice %24 {offsets = [0, 320], sizes = [16, 64], strides = [1, 1]} : vector<32x512xbf16> to vector<16x64xbf16>
    %121 = vector.extract_strided_slice %27 {offsets = [320, 0], sizes = [64, 16], strides = [1, 1]} : vector<512x32xbf16> to vector<64x16xbf16>
    %122 = vector.extract_strided_slice %25 {offsets = [0, 320], sizes = [16, 64], strides = [1, 1]} : vector<32x512xbf16> to vector<16x64xbf16>
    %cst_51 = arith.constant dense<0.000000e+00> : vector<16x16xf32>
    %123 = tpu.matmul %120, %121, %cst_51 {dimension_numbers = #tpu.dot_dimension_numbers<[1], [0], [0], [1], [0, 0, 1, 1], [], []>} : vector<16x64xbf16>, vector<64x16xbf16>, vector<16x16xf32> -> vector<16x16xf32>
    %124 = arith.addf %123, %29 : vector<16x16xf32>
    %cst_52 = arith.constant dense<0xFF800000> : vector<16xf32>
    %125 = vector.multi_reduction <maximumf>, %124, %cst_52 [1] : vector<16x16xf32> to vector<16xf32>
    %126 = vector.shape_cast %125 : vector<16xf32> to vector<16x1xf32>
    %127 = vector.broadcast %126 : vector<16x1xf32> to vector<16x16xf32>
    %128 = arith.subf %124, %127 : vector<16x16xf32>
    %129 = math.exp %128 : vector<16x16xf32>
    %cst_53 = arith.constant dense<0.000000e+00> : vector<16xf32>
    %130 = vector.multi_reduction <add>, %129, %cst_53 [1] : vector<16x16xf32> to vector<16xf32>
    %131 = vector.shape_cast %130 : vector<16xf32> to vector<16x1xf32>
    %132 = tpu.reciprocal %131 {approx = true} : vector<16x1xf32> -> vector<16x1xf32>
    %133 = vector.broadcast %132 : vector<16x1xf32> to vector<16x16xf32>
    %134 = arith.mulf %129, %133 : vector<16x16xf32>
    %135 = arith.truncf %134 : vector<16x16xf32> to vector<16x16xbf16>
    %cst_54 = arith.constant dense<0.000000e+00> : vector<16x64xf32>
    %136 = tpu.matmul %135, %122, %cst_54 {dimension_numbers = #tpu.dot_dimension_numbers<[1], [0], [0], [1], [0, 0, 1, 1], [], []>} : vector<16x16xbf16>, vector<16x64xbf16>, vector<16x64xf32> -> vector<16x64xf32>
    %c0_55 = arith.constant 0 : index
    %c320 = arith.constant 320 : index
    %137 = vector.load %arg14[%c0_55, %c320] : memref<32x512xf32, #tpu.memory_space<vmem>>, vector<16x64xf32>
    tpu.vector_store %arg14[%c0_55, %c320], %136 {strides = array<i32>} : memref<32x512xf32, #tpu.memory_space<vmem>>, vector<16x64xf32>,
    %138 = vector.extract_strided_slice %24 {offsets = [0, 384], sizes = [16, 64], strides = [1, 1]} : vector<32x512xbf16> to vector<16x64xbf16>
    %139 = vector.extract_strided_slice %27 {offsets = [384, 0], sizes = [64, 16], strides = [1, 1]} : vector<512x32xbf16> to vector<64x16xbf16>
    %140 = vector.extract_strided_slice %25 {offsets = [0, 384], sizes = [16, 64], strides = [1, 1]} : vector<32x512xbf16> to vector<16x64xbf16>
    %cst_56 = arith.constant dense<0.000000e+00> : vector<16x16xf32>
    %141 = tpu.matmul %138, %139, %cst_56 {dimension_numbers = #tpu.dot_dimension_numbers<[1], [0], [0], [1], [0, 0, 1, 1], [], []>} : vector<16x64xbf16>, vector<64x16xbf16>, vector<16x16xf32> -> vector<16x16xf32>
    %142 = arith.addf %141, %29 : vector<16x16xf32>
    %cst_57 = arith.constant dense<0xFF800000> : vector<16xf32>
    %143 = vector.multi_reduction <maximumf>, %142, %cst_57 [1] : vector<16x16xf32> to vector<16xf32>
    %144 = vector.shape_cast %143 : vector<16xf32> to vector<16x1xf32>
    %145 = vector.broadcast %144 : vector<16x1xf32> to vector<16x16xf32>
    %146 = arith.subf %142, %145 : vector<16x16xf32>
    %147 = math.exp %146 : vector<16x16xf32>
    %cst_58 = arith.constant dense<0.000000e+00> : vector<16xf32>
    %148 = vector.multi_reduction <add>, %147, %cst_58 [1] : vector<16x16xf32> to vector<16xf32>
    %149 = vector.shape_cast %148 : vector<16xf32> to vector<16x1xf32>
    %150 = tpu.reciprocal %149 {approx = true} : vector<16x1xf32> -> vector<16x1xf32>
    %151 = vector.broadcast %150 : vector<16x1xf32> to vector<16x16xf32>
    %152 = arith.mulf %147, %151 : vector<16x16xf32>
    %153 = arith.truncf %152 : vector<16x16xf32> to vector<16x16xbf16>
    %cst_59 = arith.constant dense<0.000000e+00> : vector<16x64xf32>
    %154 = tpu.matmul %153, %140, %cst_59 {dimension_numbers = #tpu.dot_dimension_numbers<[1], [0], [0], [1], [0, 0, 1, 1], [], []>} : vector<16x16xbf16>, vector<16x64xbf16>, vector<16x64xf32> -> vector<16x64xf32>
    %c0_60 = arith.constant 0 : index
    %c384 = arith.constant 384 : index
    %155 = vector.load %arg14[%c0_60, %c384] : memref<32x512xf32, #tpu.memory_space<vmem>>, vector<16x64xf32>
    tpu.vector_store %arg14[%c0_60, %c384], %154 {strides = array<i32>} : memref<32x512xf32, #tpu.memory_space<vmem>>, vector<16x64xf32>,
    %156 = vector.extract_strided_slice %24 {offsets = [0, 448], sizes = [16, 64], strides = [1, 1]} : vector<32x512xbf16> to vector<16x64xbf16>
    %157 = vector.extract_strided_slice %27 {offsets = [448, 0], sizes = [64, 16], strides = [1, 1]} : vector<512x32xbf16> to vector<64x16xbf16>
    %158 = vector.extract_strided_slice %25 {offsets = [0, 448], sizes = [16, 64], strides = [1, 1]} : vector<32x512xbf16> to vector<16x64xbf16>
    %cst_61 = arith.constant dense<0.000000e+00> : vector<16x16xf32>
    %159 = tpu.matmul %156, %157, %cst_61 {dimension_numbers = #tpu.dot_dimension_numbers<[1], [0], [0], [1], [0, 0, 1, 1], [], []>} : vector<16x64xbf16>, vector<64x16xbf16>, vector<16x16xf32> -> vector<16x16xf32>
    %160 = arith.addf %159, %29 : vector<16x16xf32>
    %cst_62 = arith.constant dense<0xFF800000> : vector<16xf32>
    %161 = vector.multi_reduction <maximumf>, %160, %cst_62 [1] : vector<16x16xf32> to vector<16xf32>
    %162 = vector.shape_cast %161 : vector<16xf32> to vector<16x1xf32>
    %163 = vector.broadcast %162 : vector<16x1xf32> to vector<16x16xf32>
    %164 = arith.subf %160, %163 : vector<16x16xf32>
    %165 = math.exp %164 : vector<16x16xf32>
    %cst_63 = arith.constant dense<0.000000e+00> : vector<16xf32>
    %166 = vector.multi_reduction <add>, %165, %cst_63 [1] : vector<16x16xf32> to vector<16xf32>
    %167 = vector.shape_cast %166 : vector<16xf32> to vector<16x1xf32>
    %168 = tpu.reciprocal %167 {approx = true} : vector<16x1xf32> -> vector<16x1xf32>
    %169 = vector.broadcast %168 : vector<16x1xf32> to vector<16x16xf32>
    %170 = arith.mulf %165, %169 : vector<16x16xf32>
    %171 = arith.truncf %170 : vector<16x16xf32> to vector<16x16xbf16>
    %cst_64 = arith.constant dense<0.000000e+00> : vector<16x64xf32>
    %172 = tpu.matmul %171, %158, %cst_64 {dimension_numbers = #tpu.dot_dimension_numbers<[1], [0], [0], [1], [0, 0, 1, 1], [], []>} : vector<16x16xbf16>, vector<16x64xbf16>, vector<16x64xf32> -> vector<16x64xf32>
    %c0_65 = arith.constant 0 : index
    %c448 = arith.constant 448 : index
    %173 = vector.load %arg14[%c0_65, %c448] : memref<32x512xf32, #tpu.memory_space<vmem>>, vector<16x64xf32>
    tpu.vector_store %arg14[%c0_65, %c448], %172 {strides = array<i32>} : memref<32x512xf32, #tpu.memory_space<vmem>>, vector<16x64xf32>,
    %c1 = arith.constant 1 : index
    %c0_66 = arith.constant 0 : index
    %c0_67 = arith.constant 0 : index
    %174 = vector.load %arg4[%c1, %c0_66, %c0_67] : memref<2x16x16xf32, #tpu.memory_space<vmem>>, vector<1x16x16xf32>
    %175 = vector.shape_cast %174 : vector<1x16x16xf32> to vector<16x16xf32>
    %176 = vector.extract_strided_slice %24 {offsets = [16, 0], sizes = [16, 64], strides = [1, 1]} : vector<32x512xbf16> to vector<16x64xbf16>
    %177 = vector.extract_strided_slice %27 {offsets = [0, 16], sizes = [64, 16], strides = [1, 1]} : vector<512x32xbf16> to vector<64x16xbf16>
    %178 = vector.extract_strided_slice %25 {offsets = [16, 0], sizes = [16, 64], strides = [1, 1]} : vector<32x512xbf16> to vector<16x64xbf16>
    %cst_68 = arith.constant dense<0.000000e+00> : vector<16x16xf32>
    %179 = tpu.matmul %176, %177, %cst_68 {dimension_numbers = #tpu.dot_dimension_numbers<[1], [0], [0], [1], [0, 0, 1, 1], [], []>} : vector<16x64xbf16>, vector<64x16xbf16>, vector<16x16xf32> -> vector<16x16xf32>
    %180 = arith.addf %179, %175 : vector<16x16xf32>
    %cst_69 = arith.constant dense<0xFF800000> : vector<16xf32>
    %181 = vector.multi_reduction <maximumf>, %180, %cst_69 [1] : vector<16x16xf32> to vector<16xf32>
    %182 = vector.shape_cast %181 : vector<16xf32> to vector<16x1xf32>
    %183 = vector.broadcast %182 : vector<16x1xf32> to vector<16x16xf32>
    %184 = arith.subf %180, %183 : vector<16x16xf32>
    %185 = math.exp %184 : vector<16x16xf32>
    %cst_70 = arith.constant dense<0.000000e+00> : vector<16xf32>
    %186 = vector.multi_reduction <add>, %185, %cst_70 [1] : vector<16x16xf32> to vector<16xf32>
    %187 = vector.shape_cast %186 : vector<16xf32> to vector<16x1xf32>
    %188 = tpu.reciprocal %187 {approx = true} : vector<16x1xf32> -> vector<16x1xf32>
    %189 = vector.broadcast %188 : vector<16x1xf32> to vector<16x16xf32>
    %190 = arith.mulf %185, %189 : vector<16x16xf32>
    %191 = arith.truncf %190 : vector<16x16xf32> to vector<16x16xbf16>
    %cst_71 = arith.constant dense<0.000000e+00> : vector<16x64xf32>
    %192 = tpu.matmul %191, %178, %cst_71 {dimension_numbers = #tpu.dot_dimension_numbers<[1], [0], [0], [1], [0, 0, 1, 1], [], []>} : vector<16x16xbf16>, vector<16x64xbf16>, vector<16x64xf32> -> vector<16x64xf32>
    %c16 = arith.constant 16 : index
    %c0_72 = arith.constant 0 : index
    %193 = vector.load %arg14[%c16, %c0_72] : memref<32x512xf32, #tpu.memory_space<vmem>>, vector<16x64xf32>
    tpu.vector_store %arg14[%c16, %c0_72], %192 {strides = array<i32>} : memref<32x512xf32, #tpu.memory_space<vmem>>, vector<16x64xf32>,
    %194 = vector.extract_strided_slice %24 {offsets = [16, 64], sizes = [16, 64], strides = [1, 1]} : vector<32x512xbf16> to vector<16x64xbf16>
    %195 = vector.extract_strided_slice %27 {offsets = [64, 16], sizes = [64, 16], strides = [1, 1]} : vector<512x32xbf16> to vector<64x16xbf16>
    %196 = vector.extract_strided_slice %25 {offsets = [16, 64], sizes = [16, 64], strides = [1, 1]} : vector<32x512xbf16> to vector<16x64xbf16>
    %cst_73 = arith.constant dense<0.000000e+00> : vector<16x16xf32>
    %197 = tpu.matmul %194, %195, %cst_73 {dimension_numbers = #tpu.dot_dimension_numbers<[1], [0], [0], [1], [0, 0, 1, 1], [], []>} : vector<16x64xbf16>, vector<64x16xbf16>, vector<16x16xf32> -> vector<16x16xf32>
    %198 = arith.addf %197, %175 : vector<16x16xf32>
    %cst_74 = arith.constant dense<0xFF800000> : vector<16xf32>
    %199 = vector.multi_reduction <maximumf>, %198, %cst_74 [1] : vector<16x16xf32> to vector<16xf32>
    %200 = vector.shape_cast %199 : vector<16xf32> to vector<16x1xf32>
    %201 = vector.broadcast %200 : vector<16x1xf32> to vector<16x16xf32>
    %202 = arith.subf %198, %201 : vector<16x16xf32>
    %203 = math.exp %202 : vector<16x16xf32>
    %cst_75 = arith.constant dense<0.000000e+00> : vector<16xf32>
    %204 = vector.multi_reduction <add>, %203, %cst_75 [1] : vector<16x16xf32> to vector<16xf32>
    %205 = vector.shape_cast %204 : vector<16xf32> to vector<16x1xf32>
    %206 = tpu.reciprocal %205 {approx = true} : vector<16x1xf32> -> vector<16x1xf32>
    %207 = vector.broadcast %206 : vector<16x1xf32> to vector<16x16xf32>
    %208 = arith.mulf %203, %207 : vector<16x16xf32>
    %209 = arith.truncf %208 : vector<16x16xf32> to vector<16x16xbf16>
    %cst_76 = arith.constant dense<0.000000e+00> : vector<16x64xf32>
    %210 = tpu.matmul %209, %196, %cst_76 {dimension_numbers = #tpu.dot_dimension_numbers<[1], [0], [0], [1], [0, 0, 1, 1], [], []>} : vector<16x16xbf16>, vector<16x64xbf16>, vector<16x64xf32> -> vector<16x64xf32>
    %c16_77 = arith.constant 16 : index
    %c64_78 = arith.constant 64 : index
    %211 = vector.load %arg14[%c16_77, %c64_78] : memref<32x512xf32, #tpu.memory_space<vmem>>, vector<16x64xf32>
    tpu.vector_store %arg14[%c16_77, %c64_78], %210 {strides = array<i32>} : memref<32x512xf32, #tpu.memory_space<vmem>>, vector<16x64xf32>,
    %212 = vector.extract_strided_slice %24 {offsets = [16, 128], sizes = [16, 64], strides = [1, 1]} : vector<32x512xbf16> to vector<16x64xbf16>
    %213 = vector.extract_strided_slice %27 {offsets = [128, 16], sizes = [64, 16], strides = [1, 1]} : vector<512x32xbf16> to vector<64x16xbf16>
    %214 = vector.extract_strided_slice %25 {offsets = [16, 128], sizes = [16, 64], strides = [1, 1]} : vector<32x512xbf16> to vector<16x64xbf16>
    %cst_79 = arith.constant dense<0.000000e+00> : vector<16x16xf32>
    %215 = tpu.matmul %212, %213, %cst_79 {dimension_numbers = #tpu.dot_dimension_numbers<[1], [0], [0], [1], [0, 0, 1, 1], [], []>} : vector<16x64xbf16>, vector<64x16xbf16>, vector<16x16xf32> -> vector<16x16xf32>
    %216 = arith.addf %215, %175 : vector<16x16xf32>
    %cst_80 = arith.constant dense<0xFF800000> : vector<16xf32>
    %217 = vector.multi_reduction <maximumf>, %216, %cst_80 [1] : vector<16x16xf32> to vector<16xf32>
    %218 = vector.shape_cast %217 : vector<16xf32> to vector<16x1xf32>
    %219 = vector.broadcast %218 : vector<16x1xf32> to vector<16x16xf32>
    %220 = arith.subf %216, %219 : vector<16x16xf32>
    %221 = math.exp %220 : vector<16x16xf32>
    %cst_81 = arith.constant dense<0.000000e+00> : vector<16xf32>
    %222 = vector.multi_reduction <add>, %221, %cst_81 [1] : vector<16x16xf32> to vector<16xf32>
    %223 = vector.shape_cast %222 : vector<16xf32> to vector<16x1xf32>
    %224 = tpu.reciprocal %223 {approx = true} : vector<16x1xf32> -> vector<16x1xf32>
    %225 = vector.broadcast %224 : vector<16x1xf32> to vector<16x16xf32>
    %226 = arith.mulf %221, %225 : vector<16x16xf32>
    %227 = arith.truncf %226 : vector<16x16xf32> to vector<16x16xbf16>
    %cst_82 = arith.constant dense<0.000000e+00> : vector<16x64xf32>
    %228 = tpu.matmul %227, %214, %cst_82 {dimension_numbers = #tpu.dot_dimension_numbers<[1], [0], [0], [1], [0, 0, 1, 1], [], []>} : vector<16x16xbf16>, vector<16x64xbf16>, vector<16x64xf32> -> vector<16x64xf32>
    %c16_83 = arith.constant 16 : index
    %c128_84 = arith.constant 128 : index
    %229 = vector.load %arg14[%c16_83, %c128_84] : memref<32x512xf32, #tpu.memory_space<vmem>>, vector<16x64xf32>
    tpu.vector_store %arg14[%c16_83, %c128_84], %228 {strides = array<i32>} : memref<32x512xf32, #tpu.memory_space<vmem>>, vector<16x64xf32>,
    %230 = vector.extract_strided_slice %24 {offsets = [16, 192], sizes = [16, 64], strides = [1, 1]} : vector<32x512xbf16> to vector<16x64xbf16>
    %231 = vector.extract_strided_slice %27 {offsets = [192, 16], sizes = [64, 16], strides = [1, 1]} : vector<512x32xbf16> to vector<64x16xbf16>
    %232 = vector.extract_strided_slice %25 {offsets = [16, 192], sizes = [16, 64], strides = [1, 1]} : vector<32x512xbf16> to vector<16x64xbf16>
    %cst_85 = arith.constant dense<0.000000e+00> : vector<16x16xf32>
    %233 = tpu.matmul %230, %231, %cst_85 {dimension_numbers = #tpu.dot_dimension_numbers<[1], [0], [0], [1], [0, 0, 1, 1], [], []>} : vector<16x64xbf16>, vector<64x16xbf16>, vector<16x16xf32> -> vector<16x16xf32>
    %234 = arith.addf %233, %175 : vector<16x16xf32>
    %cst_86 = arith.constant dense<0xFF800000> : vector<16xf32>
    %235 = vector.multi_reduction <maximumf>, %234, %cst_86 [1] : vector<16x16xf32> to vector<16xf32>
    %236 = vector.shape_cast %235 : vector<16xf32> to vector<16x1xf32>
    %237 = vector.broadcast %236 : vector<16x1xf32> to vector<16x16xf32>
    %238 = arith.subf %234, %237 : vector<16x16xf32>
    %239 = math.exp %238 : vector<16x16xf32>
    %cst_87 = arith.constant dense<0.000000e+00> : vector<16xf32>
    %240 = vector.multi_reduction <add>, %239, %cst_87 [1] : vector<16x16xf32> to vector<16xf32>
    %241 = vector.shape_cast %240 : vector<16xf32> to vector<16x1xf32>
    %242 = tpu.reciprocal %241 {approx = true} : vector<16x1xf32> -> vector<16x1xf32>
    %243 = vector.broadcast %242 : vector<16x1xf32> to vector<16x16xf32>
    %244 = arith.mulf %239, %243 : vector<16x16xf32>
    %245 = arith.truncf %244 : vector<16x16xf32> to vector<16x16xbf16>
    %cst_88 = arith.constant dense<0.000000e+00> : vector<16x64xf32>
    %246 = tpu.matmul %245, %232, %cst_88 {dimension_numbers = #tpu.dot_dimension_numbers<[1], [0], [0], [1], [0, 0, 1, 1], [], []>} : vector<16x16xbf16>, vector<16x64xbf16>, vector<16x64xf32> -> vector<16x64xf32>
    %c16_89 = arith.constant 16 : index
    %c192_90 = arith.constant 192 : index
    %247 = vector.load %arg14[%c16_89, %c192_90] : memref<32x512xf32, #tpu.memory_space<vmem>>, vector<16x64xf32>
    tpu.vector_store %arg14[%c16_89, %c192_90], %246 {strides = array<i32>} : memref<32x512xf32, #tpu.memory_space<vmem>>, vector<16x64xf32>,
    %248 = vector.extract_strided_slice %24 {offsets = [16, 256], sizes = [16, 64], strides = [1, 1]} : vector<32x512xbf16> to vector<16x64xbf16>
    %249 = vector.extract_strided_slice %27 {offsets = [256, 16], sizes = [64, 16], strides = [1, 1]} : vector<512x32xbf16> to vector<64x16xbf16>
    %250 = vector.extract_strided_slice %25 {offsets = [16, 256], sizes = [16, 64], strides = [1, 1]} : vector<32x512xbf16> to vector<16x64xbf16>
    %cst_91 = arith.constant dense<0.000000e+00> : vector<16x16xf32>
    %251 = tpu.matmul %248, %249, %cst_91 {dimension_numbers = #tpu.dot_dimension_numbers<[1], [0], [0], [1], [0, 0, 1, 1], [], []>} : vector<16x64xbf16>, vector<64x16xbf16>, vector<16x16xf32> -> vector<16x16xf32>
    %252 = arith.addf %251, %175 : vector<16x16xf32>
    %cst_92 = arith.constant dense<0xFF800000> : vector<16xf32>
    %253 = vector.multi_reduction <maximumf>, %252, %cst_92 [1] : vector<16x16xf32> to vector<16xf32>
    %254 = vector.shape_cast %253 : vector<16xf32> to vector<16x1xf32>
    %255 = vector.broadcast %254 : vector<16x1xf32> to vector<16x16xf32>
    %256 = arith.subf %252, %255 : vector<16x16xf32>
    %257 = math.exp %256 : vector<16x16xf32>
    %cst_93 = arith.constant dense<0.000000e+00> : vector<16xf32>
    %258 = vector.multi_reduction <add>, %257, %cst_93 [1] : vector<16x16xf32> to vector<16xf32>
    %259 = vector.shape_cast %258 : vector<16xf32> to vector<16x1xf32>
    %260 = tpu.reciprocal %259 {approx = true} : vector<16x1xf32> -> vector<16x1xf32>
    %261 = vector.broadcast %260 : vector<16x1xf32> to vector<16x16xf32>
    %262 = arith.mulf %257, %261 : vector<16x16xf32>
    %263 = arith.truncf %262 : vector<16x16xf32> to vector<16x16xbf16>
    %cst_94 = arith.constant dense<0.000000e+00> : vector<16x64xf32>
    %264 = tpu.matmul %263, %250, %cst_94 {dimension_numbers = #tpu.dot_dimension_numbers<[1], [0], [0], [1], [0, 0, 1, 1], [], []>} : vector<16x16xbf16>, vector<16x64xbf16>, vector<16x64xf32> -> vector<16x64xf32>
    %c16_95 = arith.constant 16 : index
    %c256_96 = arith.constant 256 : index
    %265 = vector.load %arg14[%c16_95, %c256_96] : memref<32x512xf32, #tpu.memory_space<vmem>>, vector<16x64xf32>
    tpu.vector_store %arg14[%c16_95, %c256_96], %264 {strides = array<i32>} : memref<32x512xf32, #tpu.memory_space<vmem>>, vector<16x64xf32>,
    %266 = vector.extract_strided_slice %24 {offsets = [16, 320], sizes = [16, 64], strides = [1, 1]} : vector<32x512xbf16> to vector<16x64xbf16>
    %267 = vector.extract_strided_slice %27 {offsets = [320, 16], sizes = [64, 16], strides = [1, 1]} : vector<512x32xbf16> to vector<64x16xbf16>
    %268 = vector.extract_strided_slice %25 {offsets = [16, 320], sizes = [16, 64], strides = [1, 1]} : vector<32x512xbf16> to vector<16x64xbf16>
    %cst_97 = arith.constant dense<0.000000e+00> : vector<16x16xf32>
    %269 = tpu.matmul %266, %267, %cst_97 {dimension_numbers = #tpu.dot_dimension_numbers<[1], [0], [0], [1], [0, 0, 1, 1], [], []>} : vector<16x64xbf16>, vector<64x16xbf16>, vector<16x16xf32> -> vector<16x16xf32>
    %270 = arith.addf %269, %175 : vector<16x16xf32>
    %cst_98 = arith.constant dense<0xFF800000> : vector<16xf32>
    %271 = vector.multi_reduction <maximumf>, %270, %cst_98 [1] : vector<16x16xf32> to vector<16xf32>
    %272 = vector.shape_cast %271 : vector<16xf32> to vector<16x1xf32>
    %273 = vector.broadcast %272 : vector<16x1xf32> to vector<16x16xf32>
    %274 = arith.subf %270, %273 : vector<16x16xf32>
    %275 = math.exp %274 : vector<16x16xf32>
    %cst_99 = arith.constant dense<0.000000e+00> : vector<16xf32>
    %276 = vector.multi_reduction <add>, %275, %cst_99 [1] : vector<16x16xf32> to vector<16xf32>
    %277 = vector.shape_cast %276 : vector<16xf32> to vector<16x1xf32>
    %278 = tpu.reciprocal %277 {approx = true} : vector<16x1xf32> -> vector<16x1xf32>
    %279 = vector.broadcast %278 : vector<16x1xf32> to vector<16x16xf32>
    %280 = arith.mulf %275, %279 : vector<16x16xf32>
    %281 = arith.truncf %280 : vector<16x16xf32> to vector<16x16xbf16>
    %cst_100 = arith.constant dense<0.000000e+00> : vector<16x64xf32>
    %282 = tpu.matmul %281, %268, %cst_100 {dimension_numbers = #tpu.dot_dimension_numbers<[1], [0], [0], [1], [0, 0, 1, 1], [], []>} : vector<16x16xbf16>, vector<16x64xbf16>, vector<16x64xf32> -> vector<16x64xf32>
    %c16_101 = arith.constant 16 : index
    %c320_102 = arith.constant 320 : index
    %283 = vector.load %arg14[%c16_101, %c320_102] : memref<32x512xf32, #tpu.memory_space<vmem>>, vector<16x64xf32>
    tpu.vector_store %arg14[%c16_101, %c320_102], %282 {strides = array<i32>} : memref<32x512xf32, #tpu.memory_space<vmem>>, vector<16x64xf32>,
    %284 = vector.extract_strided_slice %24 {offsets = [16, 384], sizes = [16, 64], strides = [1, 1]} : vector<32x512xbf16> to vector<16x64xbf16>
    %285 = vector.extract_strided_slice %27 {offsets = [384, 16], sizes = [64, 16], strides = [1, 1]} : vector<512x32xbf16> to vector<64x16xbf16>
    %286 = vector.extract_strided_slice %25 {offsets = [16, 384], sizes = [16, 64], strides = [1, 1]} : vector<32x512xbf16> to vector<16x64xbf16>
    %cst_103 = arith.constant dense<0.000000e+00> : vector<16x16xf32>
    %287 = tpu.matmul %284, %285, %cst_103 {dimension_numbers = #tpu.dot_dimension_numbers<[1], [0], [0], [1], [0, 0, 1, 1], [], []>} : vector<16x64xbf16>, vector<64x16xbf16>, vector<16x16xf32> -> vector<16x16xf32>
    %288 = arith.addf %287, %175 : vector<16x16xf32>
    %cst_104 = arith.constant dense<0xFF800000> : vector<16xf32>
    %289 = vector.multi_reduction <maximumf>, %288, %cst_104 [1] : vector<16x16xf32> to vector<16xf32>
    %290 = vector.shape_cast %289 : vector<16xf32> to vector<16x1xf32>
    %291 = vector.broadcast %290 : vector<16x1xf32> to vector<16x16xf32>
    %292 = arith.subf %288, %291 : vector<16x16xf32>
    %293 = math.exp %292 : vector<16x16xf32>
    %cst_105 = arith.constant dense<0.000000e+00> : vector<16xf32>
    %294 = vector.multi_reduction <add>, %293, %cst_105 [1] : vector<16x16xf32> to vector<16xf32>
    %295 = vector.shape_cast %294 : vector<16xf32> to vector<16x1xf32>
    %296 = tpu.reciprocal %295 {approx = true} : vector<16x1xf32> -> vector<16x1xf32>
    %297 = vector.broadcast %296 : vector<16x1xf32> to vector<16x16xf32>
    %298 = arith.mulf %293, %297 : vector<16x16xf32>
    %299 = arith.truncf %298 : vector<16x16xf32> to vector<16x16xbf16>
    %cst_106 = arith.constant dense<0.000000e+00> : vector<16x64xf32>
    %300 = tpu.matmul %299, %286, %cst_106 {dimension_numbers = #tpu.dot_dimension_numbers<[1], [0], [0], [1], [0, 0, 1, 1], [], []>} : vector<16x16xbf16>, vector<16x64xbf16>, vector<16x64xf32> -> vector<16x64xf32>
    %c16_107 = arith.constant 16 : index
    %c384_108 = arith.constant 384 : index
    %301 = vector.load %arg14[%c16_107, %c384_108] : memref<32x512xf32, #tpu.memory_space<vmem>>, vector<16x64xf32>
    tpu.vector_store %arg14[%c16_107, %c384_108], %300 {strides = array<i32>} : memref<32x512xf32, #tpu.memory_space<vmem>>, vector<16x64xf32>,
    %302 = vector.extract_strided_slice %24 {offsets = [16, 448], sizes = [16, 64], strides = [1, 1]} : vector<32x512xbf16> to vector<16x64xbf16>
    %303 = vector.extract_strided_slice %27 {offsets = [448, 16], sizes = [64, 16], strides = [1, 1]} : vector<512x32xbf16> to vector<64x16xbf16>
    %304 = vector.extract_strided_slice %25 {offsets = [16, 448], sizes = [16, 64], strides = [1, 1]} : vector<32x512xbf16> to vector<16x64xbf16>
    %cst_109 = arith.constant dense<0.000000e+00> : vector<16x16xf32>
    %305 = tpu.matmul %302, %303, %cst_109 {dimension_numbers = #tpu.dot_dimension_numbers<[1], [0], [0], [1], [0, 0, 1, 1], [], []>} : vector<16x64xbf16>, vector<64x16xbf16>, vector<16x16xf32> -> vector<16x16xf32>
    %306 = arith.addf %305, %175 : vector<16x16xf32>
    %cst_110 = arith.constant dense<0xFF800000> : vector<16xf32>
    %307 = vector.multi_reduction <maximumf>, %306, %cst_110 [1] : vector<16x16xf32> to vector<16xf32>
    %308 = vector.shape_cast %307 : vector<16xf32> to vector<16x1xf32>
    %309 = vector.broadcast %308 : vector<16x1xf32> to vector<16x16xf32>
    %310 = arith.subf %306, %309 : vector<16x16xf32>
    %311 = math.exp %310 : vector<16x16xf32>
    %cst_111 = arith.constant dense<0.000000e+00> : vector<16xf32>
    %312 = vector.multi_reduction <add>, %311, %cst_111 [1] : vector<16x16xf32> to vector<16xf32>
    %313 = vector.shape_cast %312 : vector<16xf32> to vector<16x1xf32>
    %314 = tpu.reciprocal %313 {approx = true} : vector<16x1xf32> -> vector<16x1xf32>
    %315 = vector.broadcast %314 : vector<16x1xf32> to vector<16x16xf32>
    %316 = arith.mulf %311, %315 : vector<16x16xf32>
    %317 = arith.truncf %316 : vector<16x16xf32> to vector<16x16xbf16>
    %cst_112 = arith.constant dense<0.000000e+00> : vector<16x64xf32>
    %318 = tpu.matmul %317, %304, %cst_112 {dimension_numbers = #tpu.dot_dimension_numbers<[1], [0], [0], [1], [0, 0, 1, 1], [], []>} : vector<16x16xbf16>, vector<16x64xbf16>, vector<16x64xf32> -> vector<16x64xf32>
    %c16_113 = arith.constant 16 : index
    %c448_114 = arith.constant 448 : index
    %319 = vector.load %arg14[%c16_113, %c448_114] : memref<32x512xf32, #tpu.memory_space<vmem>>, vector<16x64xf32>
    tpu.vector_store %arg14[%c16_113, %c448_114], %318 {strides = array<i32>} : memref<32x512xf32, #tpu.memory_space<vmem>>, vector<16x64xf32>,
    %c0_115 = arith.constant 0 : index
    %c0_116 = arith.constant 0 : index
    %320 = vector.load %arg14[%c0_115, %c0_116] : memref<32x512xf32, #tpu.memory_space<vmem>>, vector<32x512xf32>
    %321 = arith.truncf %320 : vector<32x512xf32> to vector<32x512xbf16>
    %c0_117 = arith.constant 0 : index
    %c0_118 = arith.constant 0 : index
    %322 = vector.load %arg11[%c0_117, %c0_118] : memref<512x512xbf16, #tpu.memory_space<vmem>>, vector<512x512xbf16>
    %cst_119 = arith.constant dense<0.000000e+00> : vector<32x512xf32>
    %323 = tpu.matmul %321, %322, %cst_119 {dimension_numbers = #tpu.dot_dimension_numbers<[1], [0], [0], [1], [0, 0, 1, 1], [], []>} : vector<32x512xbf16>, vector<512x512xbf16>, vector<32x512xf32> -> vector<32x512xf32>
    %c0_120 = arith.constant 0 : index
    %c0_121 = arith.constant 0 : index
    %324 = vector.load %arg12[%c0_120, %c0_121] : memref<1x512xf32, #tpu.memory_space<vmem>>, vector<1x512xf32>
    %325 = vector.broadcast %324 : vector<1x512xf32> to vector<32x512xf32>
    %326 = arith.addf %323, %325 : vector<32x512xf32>
    %327 = vector.shape_cast %326 : vector<32x512xf32> to vector<2x16x512xf32>
    %c0_122 = arith.constant 0 : index
    %c0_123 = arith.constant 0 : index
    %c0_124 = arith.constant 0 : index
    %328 = vector.load %arg13[%c0_122, %c0_123, %c0_124] : memref<2x16x512xf32, #tpu.memory_space<vmem>>, vector<2x16x512xf32>
    tpu.vector_store %arg13[%c0_122, %c0_123, %c0_124], %327 {strides = array<i32>} : memref<2x16x512xf32, #tpu.memory_space<vmem>>, vector<2x16x512xf32>,
    return
  }
  func.func @transform_0(%arg0: i32) -> (i32, i32, i32) {
    %c0_i32 = arith.constant 0 : i32
    %c0_i32_0 = arith.constant 0 : i32
    %c0_i32_1 = arith.constant 0 : i32
    return %arg0, %c0_i32, %c0_i32_0 : i32, i32, i32
  }
  func.func @transform_1(%arg0: i32) -> (i32, i32, i32) {
    %c0_i32 = arith.constant 0 : i32
    %c0_i32_0 = arith.constant 0 : i32
    %c0_i32_1 = arith.constant 0 : i32
    return %arg0, %c0_i32, %c0_i32_0 : i32, i32, i32
  }
  func.func @transform_2(%arg0: i32) -> (i32, i32, i32) {
    %c0_i32 = arith.constant 0 : i32
    %c0_i32_0 = arith.constant 0 : i32
    %c0_i32_1 = arith.constant 0 : i32
    return %arg0, %c0_i32, %c0_i32_0 : i32, i32, i32
  }
  func.func @transform_3(%arg0: i32) -> (i32, i32, i32) {
    %c0_i32 = arith.constant 0 : i32
    %c0_i32_0 = arith.constant 0 : i32
    %c0_i32_1 = arith.constant 0 : i32
    return %arg0, %c0_i32, %c0_i32_0 : i32, i32, i32
  }
  func.func @transform_4(%arg0: i32) -> (i32, i32) {
    %c0_i32 = arith.constant 0 : i32
    %c0_i32_0 = arith.constant 0 : i32
    %c0_i32_1 = arith.constant 0 : i32
    return %c0_i32, %c0_i32_0 : i32, i32
  }
  func.func @transform_5(%arg0: i32) -> (i32, i32) {
    %c0_i32 = arith.constant 0 : i32
    %c0_i32_0 = arith.constant 0 : i32
    %c0_i32_1 = arith.constant 0 : i32
    return %c0_i32, %c0_i32_0 : i32, i32
  }
  func.func @transform_6(%arg0: i32) -> (i32, i32) {
    %c0_i32 = arith.constant 0 : i32
    %c0_i32_0 = arith.constant 0 : i32
    %c0_i32_1 = arith.constant 0 : i32
    return %c0_i32, %c0_i32_0 : i32, i32
  }
  func.func @transform_7(%arg0: i32) -> (i32, i32) {
    %c0_i32 = arith.constant 0 : i32
    %c0_i32_0 = arith.constant 0 : i32
    %c0_i32_1 = arith.constant 0 : i32
    return %c0_i32, %c0_i32_0 : i32, i32
  }
  func.func @transform_8(%arg0: i32) -> (i32, i32) {
    %c0_i32 = arith.constant 0 : i32
    %c0_i32_0 = arith.constant 0 : i32
    %c0_i32_1 = arith.constant 0 : i32
    return %c0_i32, %c0_i32_0 : i32, i32
  }
  func.func @transform_9(%arg0: i32) -> (i32, i32) {
    %c0_i32 = arith.constant 0 : i32
    %c0_i32_0 = arith.constant 0 : i32
    %c0_i32_1 = arith.constant 0 : i32
    return %c0_i32, %c0_i32_0 : i32, i32
  }
  func.func @transform_10(%arg0: i32) -> (i32, i32) {
    %c0_i32 = arith.constant 0 : i32
    %c0_i32_0 = arith.constant 0 : i32
    %c0_i32_1 = arith.constant 0 : i32
    return %c0_i32, %c0_i32_0 : i32, i32
  }
  func.func @transform_11(%arg0: i32) -> (i32, i32) {
    %c0_i32 = arith.constant 0 : i32
    %c0_i32_0 = arith.constant 0 : i32
    %c0_i32_1 = arith.constant 0 : i32
    return %c0_i32, %c0_i32_0 : i32, i32
  }
  func.func @transform_12(%arg0: i32) -> (i32, i32, i32) {
    %c0_i32 = arith.constant 0 : i32
    %c0_i32_0 = arith.constant 0 : i32
    %c0_i32_1 = arith.constant 0 : i32
    return %arg0, %c0_i32, %c0_i32_0 : i32, i32, i32
  }
}

</mosaic_0001>

<bundles_post_ra>
// kernel: transformer_attention_forward.1
= control target key start
LH: loop header
LB: loop body
LE: loop exit
PB: predicated region body
PF: predicated region fallthrough
CT: control target
= control target key end

     0   :  { %s11594_s0 = inlined_call_operand.vmem [shape: f32[4,16,512], index: 0, kind: input, shape index: {}]   ;;  %s11595_s1 = inlined_call_operand.vmem [shape: f32[4,16,512], index: 1, kind: input, shape index: {}]   ;;  %s11596_s2 = inlined_call_operand.vmem [shape: f32[4,16,512], index: 2, kind: input, shape index: {}]   ;;  %s11597_s3 = inlined_call_operand.vmem [shape: f32[4,16,16], index: 3, kind: input, shape index: {}]   ;;  %s11598_s4 = inlined_call_operand.vmem [shape: bf16[512,512], index: 4, kind: input, shape index: {}]   ;;  %s11599_s5 = inlined_call_operand.vmem [shape: f32[1,512], index: 5, kind: input, shape index: {}]   ;;  %s11600_s6 = inlined_call_operand.vmem [shape: bf16[512,512], index: 6, kind: input, shape index: {}]   ;;  %s11601_s7 = inlined_call_operand.vmem [shape: f32[1,512], index: 7, kind: input, shape index: {}]   ;;  %s11602_s8 = inlined_call_operand.vmem [shape: bf16[512,512], index: 8, kind: input, shape index: {}]   ;;  %s11603_s9 = inlined_call_operand.vmem [shape: f32[1,512], index: 9, kind: input, shape index: {}]   ;;  %s11604_s10 = inlined_call_operand.vmem [shape: bf16[512,512], index: 10, kind: input, shape index: {}]   ;;  %s11605_s11 = inlined_call_operand.vmem [shape: f32[1,512], index: 11, kind: input, shape index: {}]   ;;  %s11606_s12 = inlined_call_operand.hbm [shape: f32[4,16,512], index: 12, kind: output, shape index: {}]  }
   0x1   :  { %11616 = sst [smem:[#allocation14_spill]] %s11594_s0 }
   0x2   :  { %17 = vsyncpa [#allocation4], 0 }
   0x3   :  { %19 = vsyncpa [#allocation4 + $0x1], 0  ;;  %s9017_s21 = smov 0   ;;  %s9019_s22 = smov 0  }
   0x4   :  { %s9021_s23 = smov 0   ;;  %s9023_s24 = smov 0  }
   0x5 LB: > { %11617 = sst [smem:[#allocation6_spill]] %s8939_s23  ;;  %s9038_s25 = sadd.s32 4294967295, %s8943_s24   ;;  %s8943_s24 = sphi %s9023_s24, %s11634_s24   ;;  %s8939_s23 = sphi %s9021_s23, %s11636_s23   ;;  %s8935_s22 = sphi %s9019_s22, %s11638_s22   ;;  %s8931_s21 = sphi %s9017_s21, %s11637_s21  }
   0x6   : > { %s6967_s26 = sadd.s32 4294967294, %s8943_s24   ;;  %s9042_s27 = sadd.s32 1, %s8943_s24  }
   0x7   : > { %11618 = sst [smem:[#allocation7_spill]] %s9042_s27  ;;  %s304_s28 = sadd.s32 1, %s8939_s23 }
   0x8   : > { %s301_s29 = ssub.s32 %s8943_s24, %s9042_s27  ;;  %p314_p0 = scmp.ne.s32.totalorder %s8939_s23, %s8935_s22 }
   0x9   : > { %p302_p1 = scmp.eq.s32.totalorder %s301_s29, 0  ;;  %p315_p2 = scmp.eq.s32.totalorder %s9038_s25, 1 }
   0xa   : > { %p320_p3 = scmp.ne.s32.totalorder %s8935_s22, %s8931_s21  ;;  %p321_p4 = scmp.eq.s32.totalorder %s6967_s26, 1 }
   0xb   : > { %s9053_s30 = scalar_select %p302_p1, %s8939_s23, %s304_s28  }
   0xc   : > { %p9055_p5 = por %p315_p2, %p314_p0  ;;  %p9059_p6 = por %p321_p4, %p320_p3 }
   0xd   : > { %11619 = sst [smem:[#allocation8_spill]] %s9053_s30  ;;  %p6970_p7 = scmp.ge.s32.totalorder %s8943_s24, 1 }
   0xe   : > { %p403_p8 = scmp.lt.s32.totalorder %s8943_s24, 3 }
  0x10   : > { %p404_p9 = pnand %p6970_p7, %p403_p8 }
  0x12   : > { %407 = sbr.rel (%p404_p9) target bundleno = 9232 (0x2410), region = 68 }
  0x17   : > { %v7987_v0 = vld [vmem:[%s11598_s4 + $0xe4] ss:$16 sps:$4 sm:$0xff]   ;;  %v7991_v2 = vld [vmem:[%s11598_s4 + $0xe0] ss:$16 sps:$4 sm:$0xff]   ;;  %s6972_s15 = sshll.u32 %s9038_s25, 1  ;;  %s11622_s0 = sld [smem:[#allocation14_spill]] }
  0x18   : > { %v7989_v1 = vld [vmem:[%s11598_s4 + $0x2e4] ss:$16 sps:$4 sm:$0xff]   ;;  %1356 = vmatprep.subr.bf16.mxu0 %v7987_v0  ;;  %v7992_v3 = vld [vmem:[%s11598_s4 + $0x2e0] ss:$16 sps:$4 sm:$0xff]   ;;  %p465_p10 = scmp.lt.s32.totalorder %s6972_s15, 3  ;;  %vm8947_vm0 = vmmov 0  }
  0x19   : > { %1409 = vmatprep.subr.bf16.mxu1 %v7989_v1  ;;  %v7993_v4 = vld [vmem:[%s11598_s4 + $0xc4] ss:$16 sps:$4 sm:$0xff]   ;;  %1357 = vmatpush1.bf16.msra.mxu0 %v7991_v2  ;;  %v7997_v6 = vld [vmem:[%s11598_s4 + $0xc0] ss:$16 sps:$4 sm:$0xff]   ;;  %vm3750_vm1 = vcmask 523264   ;;  %vm3795_vm2 = vcmask 130048  }
  0x1a   : > { %1410 = vmatpush1.bf16.msra.mxu1 %v7992_v3  ;;  %v7995_v5 = vld [vmem:[%s11598_s4 + $0x2c4] ss:$16 sps:$4 sm:$0xff]   ;;  %1358 = vmatprep.subr.bf16.mxu0 %v7993_v4  ;;  %v7998_v7 = vld [vmem:[%s11598_s4 + $0x2c0] ss:$16 sps:$4 sm:$0xff]   ;;  %s11640_s15 = smov (!%p465_p10, %s6972_s15), 3  ;;  %vm3991_vm3 = vcmask 1048064  }
  0x1b   : > { %1411 = vmatprep.subr.bf16.mxu1 %v7995_v5  ;;  %v7999_v8 = vld [vmem:[%s11598_s4 + $0xa4] ss:$16 sps:$4 sm:$0xff]   ;;  %v8003_v10 = vld [vmem:[%s11598_s4 + $0xa0] ss:$16 sps:$4 sm:$0xff]   ;;  %s9192_s18 = sshll.u32 %s11640_s15, 6  ;;  %s7539_s29 = sshll.u32 %s11640_s15, 4 }
  0x1c   : > { %v8001_v9 = vld [vmem:[%s11598_s4 + $0x2a4] ss:$16 sps:$4 sm:$0xff]   ;;  %v8004_v11 = vld [vmem:[%s11598_s4 + $0x2a0] ss:$16 sps:$4 sm:$0xff]   ;;  %s9530_s19 = scalar_lea.vmem %s11595_s1, %s9192_s18  ;;  %s10011_s26 = scalar_lea.vmem %s11596_s2, %s9192_s18 }
  0x1d   : > { %1359 = vmatpush1.bf16.msra.mxu0 %v7997_v6  ;;  %v8005_v12 = vld [vmem:[%s11598_s4 + $0x84] ss:$16 sps:$4 sm:$0xff]   ;;  %v8009_v14 = vld [vmem:[%s11598_s4 + $0x80] ss:$16 sps:$4 sm:$0xff]   ;;  %s9207_s17 = scalar_lea.vmem %s11622_s0, %s9192_s18  ;;  %s10558_s18 = scalar_lea.vmem %s11597_s3, %s7539_s29 }
  0x1e   : > { %1412 = vmatpush1.bf16.msra.mxu1 %v7998_v7  ;;  %1360 = vmatprep.subr.bf16.mxu0 %v7999_v8  ;;  %v8007_v13 = vld [vmem:[%s11598_s4 + $0x284] ss:$16 sps:$4 sm:$0xff]   ;;  %v8010_v15 = vld [vmem:[%s11598_s4 + $0x280] ss:$16 sps:$4 sm:$0xff]   ;;  %v495_v46 = vld [vmem:[%s9207_s17 + $0x8] sm:$0xff]  ;;  %s8948_s15 = smov 112  }
  0x1f   : > { %1413 = vmatprep.subr.bf16.mxu1 %v8001_v9  ;;  %v8011_v16 = vld [vmem:[%s11598_s4 + $0x64] ss:$16 sps:$4 sm:$0xff]   ;;  %v8015_v18 = vld [vmem:[%s11598_s4 + $0x60] ss:$16 sps:$4 sm:$0xff]   ;;  %v499_v47 = vld [vmem:[%s9207_s17 + $0x28] sm:$0xff]  ;;  %s461_s23 = sand.u32 1, %s8935_s22  }
  0x20   : > { %v8013_v17 = vld [vmem:[%s11598_s4 + $0x264] ss:$16 sps:$4 sm:$0xff]   ;;  %v8016_v19 = vld [vmem:[%s11598_s4 + $0x260] ss:$16 sps:$4 sm:$0xff]   ;;  %v497_v48 = vld [vmem:[%s9207_s17 + $0x18] sm:$0xff]  ;;  %v9228_v53 = vpack.c.bf16 %v499_v47, %v495_v46  ;;  %s7541_s16 = sshll.u32 %s9038_s25, 11 }
  0x21   : > { %1361 = vmatpush1.bf16.msra.mxu0 %v8003_v10  ;;  %v8017_v20 = vld [vmem:[%s11598_s4 + $0x44] ss:$16 sps:$4 sm:$0xff]   ;;  %v8021_v22 = vld [vmem:[%s11598_s4 + $0x40] ss:$16 sps:$4 sm:$0xff]   ;;  %v501_v49 = vld [vmem:[%s9207_s17 + $0x38] sm:$0xff]  ;;  %s11546_s0 = scalar_lea.hbm %s11606_s12, %s7541_s16  ;;  %s11554_s25 = scalar_lea.sflag [#allocation4], %s461_s23 }
  0x22   : > { %1414 = vmatpush1.bf16.msra.mxu1 %v8004_v11  ;;  %1362 = vmatprep.subr.bf16.mxu0 %v8005_v12  ;;  %v8019_v21 = vld [vmem:[%s11598_s4 + $0x244] ss:$16 sps:$4 sm:$0xff]   ;;  %v8022_v23 = vld [vmem:[%s11598_s4 + $0x240] ss:$16 sps:$4 sm:$0xff]   ;;  %v9230_v54 = vpack.c.bf16 %v501_v49, %v497_v48  ;;  %v8085_v10 = vld [vmem:[%s11598_s4 + $0xec] ss:$16 sps:$4 sm:$0xff]  }
  0x23   : > { %1415 = vmatprep.subr.bf16.mxu1 %v8007_v13  ;;  %v8023_v24 = vld [vmem:[%s11598_s4 + $0x24] ss:$16 sps:$4 sm:$0xff]   ;;  %v8027_v26 = vld [vmem:[%s11598_s4 + $0x20] ss:$16 sps:$4 sm:$0xff]   ;;  %1388 = vmatprep.mubr.bf16.mxu0 %v9228_v53  ;;  %v8088_v11 = vld [vmem:[%s11598_s4 + $0x2ec] ss:$16 sps:$4 sm:$0xff]  }
  0x24   : > { %v8025_v25 = vld [vmem:[%s11598_s4 + $0x224] ss:$16 sps:$4 sm:$0xff]   ;;  %v8028_v27 = vld [vmem:[%s11598_s4 + $0x220] ss:$16 sps:$4 sm:$0xff]   ;;  %1441 = vmatprep.mubr.bf16.mxu1 %v9230_v54  ;;  %v8124_v46 = vld [vmem:[%s11598_s4 + $0x22c] ss:$16 sps:$4 sm:$0xff]  }
  0x25   : > { %1363 = vmatpush1.bf16.msra.mxu0 %v8009_v14  ;;  %v8029_v28 = vld [vmem:[%s11598_s4 + $0x4] ss:$16 sps:$4 sm:$0xff]   ;;  %v8033_v30 = vld [vmem:[%s11598_s4] ss:$16 sps:$4 sm:$0xff]   ;;  %v8083_v14 = vld [vmem:[%s11598_s4 + $0xe8] ss:$16 sps:$4 sm:$0xff]  }
  0x26   : > { %1416 = vmatpush1.bf16.msra.mxu1 %v8010_v15  ;;  %1364 = vmatprep.subr.bf16.mxu0 %v8011_v16  ;;  %v8031_v29 = vld [vmem:[%s11598_s4 + $0x204] ss:$16 sps:$4 sm:$0xff]   ;;  %v8034_v31 = vld [vmem:[%s11598_s4 + $0x200] ss:$16 sps:$4 sm:$0xff]   ;;  %v8086_v15 = vld [vmem:[%s11598_s4 + $0x2e8] ss:$16 sps:$4 sm:$0xff]  }
  0x27   : > { %1417 = vmatprep.subr.bf16.mxu1 %v8013_v17  ;;  %v8035_v32 = vld [vmem:[%s11598_s4 + $0x1e4] ss:$16 sps:$4 sm:$0xff]   ;;  %v8039_v34 = vld [vmem:[%s11598_s4 + $0x1e0] ss:$16 sps:$4 sm:$0xff]   ;;  %v8091_v16 = vld [vmem:[%s11598_s4 + $0xcc] ss:$16 sps:$4 sm:$0xff]  }
  0x28   : > { %v8037_v33 = vld [vmem:[%s11598_s4 + $0x3e4] ss:$16 sps:$4 sm:$0xff]   ;;  %v8040_v35 = vld [vmem:[%s11598_s4 + $0x3e0] ss:$16 sps:$4 sm:$0xff]   ;;  %v8094_v17 = vld [vmem:[%s11598_s4 + $0x2cc] ss:$16 sps:$4 sm:$0xff]  }
  0x29   : > { %1365 = vmatpush1.bf16.msra.mxu0 %v8015_v18  ;;  %v8041_v36 = vld [vmem:[%s11598_s4 + $0x1c4] ss:$16 sps:$4 sm:$0xff]   ;;  %v8045_v38 = vld [vmem:[%s11598_s4 + $0x1c0] ss:$16 sps:$4 sm:$0xff]   ;;  %v8089_v18 = vld [vmem:[%s11598_s4 + $0xc8] ss:$16 sps:$4 sm:$0xff]  }
  0x2a   : > { %1418 = vmatpush1.bf16.msra.mxu1 %v8016_v19  ;;  %1366 = vmatprep.subr.bf16.mxu0 %v8017_v20  ;;  %v8043_v37 = vld [vmem:[%s11598_s4 + $0x3c4] ss:$16 sps:$4 sm:$0xff]   ;;  %v8046_v39 = vld [vmem:[%s11598_s4 + $0x3c0] ss:$16 sps:$4 sm:$0xff]   ;;  %v8092_v19 = vld [vmem:[%s11598_s4 + $0x2c8] ss:$16 sps:$4 sm:$0xff]  }
  0x2b   : > { %1419 = vmatprep.subr.bf16.mxu1 %v8019_v21  ;;  %v8047_v40 = vld [vmem:[%s11598_s4 + $0x1a4] ss:$16 sps:$4 sm:$0xff]   ;;  %v8051_v42 = vld [vmem:[%s11598_s4 + $0x1a0] ss:$16 sps:$4 sm:$0xff]   ;;  %v8097_v20 = vld [vmem:[%s11598_s4 + $0xac] ss:$16 sps:$4 sm:$0xff]  }
  0x2c   : > { %v8049_v41 = vld [vmem:[%s11598_s4 + $0x3a4] ss:$16 sps:$4 sm:$0xff]   ;;  %v8052_v43 = vld [vmem:[%s11598_s4 + $0x3a0] ss:$16 sps:$4 sm:$0xff]   ;;  %v8100_v21 = vld [vmem:[%s11598_s4 + $0x2ac] ss:$16 sps:$4 sm:$0xff]  }
  0x2d   : > { %1367 = vmatpush1.bf16.msra.mxu0 %v8021_v22  ;;  %v8053_v44 = vld [vmem:[%s11598_s4 + $0x184] ss:$16 sps:$4 sm:$0xff]   ;;  %v8057_v50 = vld [vmem:[%s11598_s4 + $0x180] ss:$16 sps:$4 sm:$0xff]   ;;  %v8095_v22 = vld [vmem:[%s11598_s4 + $0xa8] ss:$16 sps:$4 sm:$0xff]  }
  0x2e   : > { %1420 = vmatpush1.bf16.msra.mxu1 %v8022_v23  ;;  %1368 = vmatprep.subr.bf16.mxu0 %v8023_v24  ;;  %v8055_v45 = vld [vmem:[%s11598_s4 + $0x384] ss:$16 sps:$4 sm:$0xff]   ;;  %v8058_v51 = vld [vmem:[%s11598_s4 + $0x380] ss:$16 sps:$4 sm:$0xff]   ;;  %v8098_v23 = vld [vmem:[%s11598_s4 + $0x2a8] ss:$16 sps:$4 sm:$0xff]  }
  0x2f   : > { %1421 = vmatprep.subr.bf16.mxu1 %v8025_v25  ;;  %v8059_v52 = vld [vmem:[%s11598_s4 + $0x164] ss:$16 sps:$4 sm:$0xff]   ;;  %v8063_v56 = vld [vmem:[%s11598_s4 + $0x160] ss:$16 sps:$4 sm:$0xff]   ;;  %v8103_v24 = vld [vmem:[%s11598_s4 + $0x8c] ss:$16 sps:$4 sm:$0xff]  }
  0x30   : > { %v8061_v55 = vld [vmem:[%s11598_s4 + $0x364] ss:$16 sps:$4 sm:$0xff]   ;;  %v8064_v57 = vld [vmem:[%s11598_s4 + $0x360] ss:$16 sps:$4 sm:$0xff]   ;;  %v8106_v25 = vld [vmem:[%s11598_s4 + $0x28c] ss:$16 sps:$4 sm:$0xff]  }
  0x31   : > { %1369 = vmatpush1.bf16.msra.mxu0 %v8027_v26  ;;  %v8065_v58 = vld [vmem:[%s11598_s4 + $0x144] ss:$16 sps:$4 sm:$0xff]   ;;  %v8069_v60 = vld [vmem:[%s11598_s4 + $0x140] ss:$16 sps:$4 sm:$0xff]   ;;  %v8101_v26 = vld [vmem:[%s11598_s4 + $0x88] ss:$16 sps:$4 sm:$0xff]  }
  0x32   : > { %1422 = vmatpush1.bf16.msra.mxu1 %v8028_v27  ;;  %1370 = vmatprep.subr.bf16.mxu0 %v8029_v28  ;;  %v8067_v59 = vld [vmem:[%s11598_s4 + $0x344] ss:$16 sps:$4 sm:$0xff]   ;;  %v8070_v61 = vld [vmem:[%s11598_s4 + $0x340] ss:$16 sps:$4 sm:$0xff]   ;;  %v8104_v27 = vld [vmem:[%s11598_s4 + $0x288] ss:$16 sps:$4 sm:$0xff]  }
  0x33   : > { %1423 = vmatprep.subr.bf16.mxu1 %v8031_v29  ;;  %v8071_v62 = vld [vmem:[%s11598_s4 + $0x124] ss:$16 sps:$4 sm:$0xff]   ;;  %v8075_v0 = vld [vmem:[%s11598_s4 + $0x120] ss:$16 sps:$4 sm:$0xff]   ;;  %v8109_v28 = vld [vmem:[%s11598_s4 + $0x6c] ss:$16 sps:$4 sm:$0xff]  }
  0x34   : > { %v8073_v63 = vld [vmem:[%s11598_s4 + $0x324] ss:$16 sps:$4 sm:$0xff]   ;;  %v8076_v1 = vld [vmem:[%s11598_s4 + $0x320] ss:$16 sps:$4 sm:$0xff]   ;;  %v8112_v29 = vld [vmem:[%s11598_s4 + $0x26c] ss:$16 sps:$4 sm:$0xff]  }
  0x35   : > { %1371 = vmatpush1.bf16.msra.mxu0 %v8033_v30  ;;  %v8077_v2 = vld [vmem:[%s11598_s4 + $0x104] ss:$16 sps:$4 sm:$0xff]   ;;  %v8081_v4 = vld [vmem:[%s11598_s4 + $0x100] ss:$16 sps:$4 sm:$0xff]   ;;  %v8107_v30 = vld [vmem:[%s11598_s4 + $0x68] ss:$16 sps:$4 sm:$0xff]  }
  0x36   : > { %1424 = vmatpush1.bf16.msra.mxu1 %v8034_v31  ;;  %1372 = vmatprep.subr.bf16.mxu0 %v8035_v32  ;;  %v8079_v3 = vld [vmem:[%s11598_s4 + $0x304] ss:$16 sps:$4 sm:$0xff]   ;;  %v8082_v5 = vld [vmem:[%s11598_s4 + $0x300] ss:$16 sps:$4 sm:$0xff]   ;;  %v8110_v31 = vld [vmem:[%s11598_s4 + $0x268] ss:$16 sps:$4 sm:$0xff]  }
  0x37   : > { %1425 = vmatprep.subr.bf16.mxu1 %v8037_v33  ;;  %v494_v6 = vld [vmem:[%s9207_s17] sm:$0xff]  ;;  %v496_v8 = vld [vmem:[%s9207_s17 + $0x10] sm:$0xff]  ;;  %v8115_v32 = vld [vmem:[%s11598_s4 + $0x4c] ss:$16 sps:$4 sm:$0xff]  }
  0x38   : > { %v498_v7 = vld [vmem:[%s9207_s17 + $0x20] sm:$0xff]  ;;  %v500_v9 = vld [vmem:[%s9207_s17 + $0x30] sm:$0xff]  ;;  %v8118_v33 = vld [vmem:[%s11598_s4 + $0x24c] ss:$16 sps:$4 sm:$0xff]  }
  0x39   : > { %1373 = vmatpush2.bf16.msra.mxu0 %v8039_v34  ;;  %v9289_v12 = vpack.c.bf16 %v498_v7, %v494_v6  ;;  %v9291_v13 = vpack.c.bf16 %v500_v9, %v496_v8  ;;  %v503_v34 = vld [vmem:[%s9207_s17 + $0x48] sm:$0xff]  ;;  %v504_v47 = vld [vmem:[%s9207_s17 + $0x50] sm:$0xff] }
  0x3a   : > { %1426 = vmatpush2.bf16.msra.mxu1 %v8040_v35  ;;  %1374 = vmatprep.subr.bf16.mxu0 %v8041_v36  ;;  %v507_v35 = vld [vmem:[%s9207_s17 + $0x68] sm:$0xff]  ;;  %v502_v36 = vld [vmem:[%s9207_s17 + $0x40] sm:$0xff]  ;;  %v508_v48 = vld [vmem:[%s9207_s17 + $0x70] sm:$0xff] }
  0x3b   : > { %1427 = vmatprep.subr.bf16.mxu1 %v8043_v37  ;;  %v9358_v37 = vpack.c.bf16 %v507_v35, %v503_v34  ;;  %v9384_v49 = vpack.c.bf16 %v508_v48, %v504_v47  ;;  %v8149_v6 = vld [vmem:[%s11598_s4 + $0x188] ss:$16 sps:$4 sm:$0xff]   ;;  %v8157_v8 = vld [vmem:[%s11598_s4 + $0x16c] ss:$16 sps:$4 sm:$0xff]   ;;  %v8205_v47 = vld [vmem:[%s11600_s6 + $0x64] ss:$16 sps:$4 sm:$0xff]  }
  0x3c   : > { %v8152_v7 = vld [vmem:[%s11598_s4 + $0x388] ss:$16 sps:$4 sm:$0xff]   ;;  %v8160_v9 = vld [vmem:[%s11598_s4 + $0x36c] ss:$16 sps:$4 sm:$0xff]   ;;  %v8208_v48 = vld [vmem:[%s11600_s6 + $0x264] ss:$16 sps:$4 sm:$0xff]  }
  0x3d   : > { %1375 = vmatpush2.bf16.msra.mxu0 %v8045_v38  ;;  %v506_v38 = vld [vmem:[%s9207_s17 + $0x60] sm:$0xff]  ;;  %v519_v34 = vld [vmem:[%s9530_s19 + $0x8] sm:$0xff] }
  0x3e   : > { %1428 = vmatpush2.bf16.msra.mxu1 %v8046_v39  ;;  %1376 = vmatprep.subr.bf16.mxu0 %v8047_v40  ;;  %v505_v39 = vld [vmem:[%s9207_s17 + $0x58] sm:$0xff]  ;;  %v523_v35 = vld [vmem:[%s9530_s19 + $0x28] sm:$0xff] }
  0x3f   : > { %1429 = vmatprep.subr.bf16.mxu1 %v8049_v41  ;;  %v509_v40 = vld [vmem:[%s9207_s17 + $0x78] sm:$0xff]  ;;  %s8945_s17 = smov 64  }
  0x40   : > { %v8113_v41 = vld [vmem:[%s11598_s4 + $0x48] ss:$16 sps:$4 sm:$0xff]  }
  0x41   : > { %1377 = vmatpush2.bf16.msra.mxu0 %v8051_v42  ;;  %v9366_v42 = vpack.c.bf16 %v506_v38, %v502_v36  ;;  %v521_v36 = vld [vmem:[%s9530_s19 + $0x18] sm:$0xff] }
  0x42   : > { %1430 = vmatpush2.bf16.msra.mxu1 %v8052_v43  ;;  %1378 = vmatprep.subr.bf16.mxu0 %v8053_v44  ;;  %v9368_v43 = vpack.c.bf16 %v509_v40, %v505_v39  ;;  %v8116_v44 = vld [vmem:[%s11598_s4 + $0x248] ss:$16 sps:$4 sm:$0xff]   ;;  %v8191_v39 = vld [vmem:[%s11600_s6 + $0xa0] ss:$16 sps:$4 sm:$0xff]  }
  0x43   : > { %1431 = vmatprep.subr.bf16.mxu1 %v8055_v45  ;;  %v8121_v45 = vld [vmem:[%s11598_s4 + $0x2c] ss:$16 sps:$4 sm:$0xff]   ;;  %v8194_v40 = vld [vmem:[%s11600_s6 + $0x2a0] ss:$16 sps:$4 sm:$0xff]  }
  0x44   : > { %v525_v38 = vld [vmem:[%s9530_s19 + $0x38] sm:$0xff] }
  0x45   : > { %1379 = vmatpush2.bf16.msra.mxu0 %v8057_v50  ;;  %v8119_v50 = vld [vmem:[%s11598_s4 + $0x28] ss:$16 sps:$4 sm:$0xff]  }
  0x46   : > { %1432 = vmatpush2.bf16.msra.mxu1 %v8058_v51  ;;  %1380 = vmatprep.subr.bf16.mxu0 %v8059_v52  ;;  %v8122_v51 = vld [vmem:[%s11598_s4 + $0x228] ss:$16 sps:$4 sm:$0xff]   ;;  %v8127_v52 = vld [vmem:[%s11598_s4 + $0xc] ss:$16 sps:$4 sm:$0xff]  }
  0x47   : > { %1433 = vmatprep.subr.bf16.mxu1 %v8061_v55  ;;  %v8130_v55 = vld [vmem:[%s11598_s4 + $0x20c] ss:$16 sps:$4 sm:$0xff]  }
  0x49   : > { %1381 = vmatpush2.bf16.msra.mxu0 %v8063_v56  ;;  %v8125_v56 = vld [vmem:[%s11598_s4 + $0x8] ss:$16 sps:$4 sm:$0xff]  }
  0x4a   : > { %1434 = vmatpush2.bf16.msra.mxu1 %v8064_v57  ;;  %1382 = vmatprep.subr.bf16.mxu0 %v8065_v58  ;;  %v8133_v57 = vld [vmem:[%s11598_s4 + $0x1ec] ss:$16 sps:$4 sm:$0xff]  }
  0x4b   : > { %1435 = vmatprep.subr.bf16.mxu1 %v8067_v59  ;;  %v8136_v58 = vld [vmem:[%s11598_s4 + $0x3ec] ss:$16 sps:$4 sm:$0xff]   ;;  %v8131_v59 = vld [vmem:[%s11598_s4 + $0x1e8] ss:$16 sps:$4 sm:$0xff]  }
  0x4d   : > { %1383 = vmatpush2.bf16.msra.mxu0 %v8069_v60  ;;  %v8139_v60 = vld [vmem:[%s11598_s4 + $0x1cc] ss:$16 sps:$4 sm:$0xff]  }
  0x4e   : > { %1436 = vmatpush2.bf16.msra.mxu1 %v8070_v61  ;;  %1384 = vmatprep.subr.bf16.mxu0 %v8071_v62  ;;  %v8142_v61 = vld [vmem:[%s11598_s4 + $0x3cc] ss:$16 sps:$4 sm:$0xff]   ;;  %v8137_v62 = vld [vmem:[%s11598_s4 + $0x1c8] ss:$16 sps:$4 sm:$0xff]  }
  0x4f   : > { %1437 = vmatprep.subr.bf16.mxu1 %v8073_v63  ;;  %v8140_v63 = vld [vmem:[%s11598_s4 + $0x3c8] ss:$16 sps:$4 sm:$0xff]  }
  0x51   : > { %1385 = vmatpush2.bf16.msra.mxu0 %v8075_v0  ;;  %v8145_v0 = vld [vmem:[%s11598_s4 + $0x1ac] ss:$16 sps:$4 sm:$0xff]  }
  0x52   : > { %1438 = vmatpush2.bf16.msra.mxu1 %v8076_v1  ;;  %1386 = vmatprep.subr.bf16.mxu0 %v8077_v2  ;;  %v8148_v1 = vld [vmem:[%s11598_s4 + $0x3ac] ss:$16 sps:$4 sm:$0xff]   ;;  %v8143_v2 = vld [vmem:[%s11598_s4 + $0x1a8] ss:$16 sps:$4 sm:$0xff]  }
  0x53   : > { %1439 = vmatprep.subr.bf16.mxu1 %v8079_v3  ;;  %v8146_v3 = vld [vmem:[%s11598_s4 + $0x3a8] ss:$16 sps:$4 sm:$0xff]  }
  0x55   : > { %1387 = vmatpush2.bf16.msra.mxu0 %v8081_v4  ;;  %v8151_v4 = vld [vmem:[%s11598_s4 + $0x18c] ss:$16 sps:$4 sm:$0xff]  }
  0x56   : > { %1440 = vmatpush2.bf16.msra.mxu1 %v8082_v5  ;;  %1462 = vmatprep.subr.bf16.mxu0 %v8085_v10  ;;  %v8154_v5 = vld [vmem:[%s11598_s4 + $0x38c] ss:$16 sps:$4 sm:$0xff]   ;;  %v8155_v10 = vld [vmem:[%s11598_s4 + $0x168] ss:$16 sps:$4 sm:$0xff]  }
  0x57   : > { %1515 = vmatprep.subr.bf16.mxu1 %v8088_v11  ;;  %v8158_v11 = vld [vmem:[%s11598_s4 + $0x368] ss:$16 sps:$4 sm:$0xff]  }
  0x58   : > { %1389 = vmatmul.mubr.bf16.vlgmr.msra.gmra.mxu0 %v9289_v12 }
  0x59   : > { %1442 = vmatmul.mubr.bf16.vlgmr.msra.gmra.mxu1 %v9291_v13  ;;  %1463 = vmatpush1.bf16.msra.mxu0 %v8083_v14  ;;  %v8163_v14 = vld [vmem:[%s11598_s4 + $0x14c] ss:$16 sps:$4 sm:$0xff]  }
  0x5a   : > { %1516 = vmatpush1.bf16.msra.mxu1 %v8086_v15  ;;  %1464 = vmatprep.subr.bf16.mxu0 %v8091_v16  ;;  %v8166_v15 = vld [vmem:[%s11598_s4 + $0x34c] ss:$16 sps:$4 sm:$0xff]   ;;  %v8161_v16 = vld [vmem:[%s11598_s4 + $0x148] ss:$16 sps:$4 sm:$0xff]  }
  0x5b   : > { %1517 = vmatprep.subr.bf16.mxu1 %v8094_v17  ;;  %1398 = vmatprep.mubr.bf16.mxu0 %v9358_v37  ;;  %v8164_v17 = vld [vmem:[%s11598_s4 + $0x348] ss:$16 sps:$4 sm:$0xff]  }
  0x5c   : > { %1451 = vmatprep.mubr.bf16.mxu1 %v9368_v43 }
  0x5d   : > { %1465 = vmatpush1.bf16.msra.mxu0 %v8089_v18  ;;  %v8169_v18 = vld [vmem:[%s11598_s4 + $0x12c] ss:$16 sps:$4 sm:$0xff]  }
  0x5e   : > { %1518 = vmatpush1.bf16.msra.mxu1 %v8092_v19  ;;  %1466 = vmatprep.subr.bf16.mxu0 %v8097_v20  ;;  %v8172_v19 = vld [vmem:[%s11598_s4 + $0x32c] ss:$16 sps:$4 sm:$0xff]   ;;  %v8167_v20 = vld [vmem:[%s11598_s4 + $0x128] ss:$16 sps:$4 sm:$0xff]  }
  0x5f   : > { %1519 = vmatprep.subr.bf16.mxu1 %v8100_v21  ;;  %v8170_v21 = vld [vmem:[%s11598_s4 + $0x328] ss:$16 sps:$4 sm:$0xff]  }
  0x60   : > { %1399 = vmatmul.mubr.bf16.gmra.mxu0 %v9366_v42 }
  0x61   : > { %1467 = vmatpush1.bf16.msra.mxu0 %v8095_v22  ;;  %1494 = vmatprep.mubr.bf16.mxu0 %v9228_v53  ;;  %v8128_v53 = vld [vmem:[%s11598_s4 + $0x208] ss:$16 sps:$4 sm:$0xff]   ;;  %v8175_v22 = vld [vmem:[%s11598_s4 + $0x10c] ss:$16 sps:$4 sm:$0xff]  }
  0x62   : > { %1520 = vmatpush1.bf16.msra.mxu1 %v8098_v23  ;;  %1468 = vmatprep.subr.bf16.mxu0 %v8103_v24  ;;  %v8178_v23 = vld [vmem:[%s11598_s4 + $0x30c] ss:$16 sps:$4 sm:$0xff]   ;;  %v8173_v24 = vld [vmem:[%s11598_s4 + $0x108] ss:$16 sps:$4 sm:$0xff]  }
  0x63   : > { %1521 = vmatprep.subr.bf16.mxu1 %v8106_v25  ;;  %1452 = vmatmul.mubr.bf16.gmra.mxu1 %v9384_v49  ;;  %v8176_v25 = vld [vmem:[%s11598_s4 + $0x308] ss:$16 sps:$4 sm:$0xff]  }
  0x64   : > { %1547 = vmatprep.mubr.bf16.mxu1 %v9230_v54  ;;  %v8134_v54 = vld [vmem:[%s11598_s4 + $0x3e8] ss:$16 sps:$4 sm:$0xff]  }
  0x65   : > { %1469 = vmatpush1.bf16.msra.mxu0 %v8101_v26  ;;  %v8181_v26 = vld [vmem:[%s11600_s6 + $0xe4] ss:$16 sps:$4 sm:$0xff]  }
  0x66   : > { %1522 = vmatpush1.bf16.msra.mxu1 %v8104_v27  ;;  %1470 = vmatprep.subr.bf16.mxu0 %v8109_v28  ;;  %v8184_v27 = vld [vmem:[%s11600_s6 + $0x2e4] ss:$16 sps:$4 sm:$0xff]   ;;  %v8179_v28 = vld [vmem:[%s11600_s6 + $0xe0] ss:$16 sps:$4 sm:$0xff]  }
  0x67   : > { %1523 = vmatprep.subr.bf16.mxu1 %v8112_v29  ;;  %v8182_v29 = vld [vmem:[%s11600_s6 + $0x2e0] ss:$16 sps:$4 sm:$0xff]  }
  0x69   : > { %1471 = vmatpush1.bf16.msra.mxu0 %v8107_v30  ;;  %v8187_v30 = vld [vmem:[%s11600_s6 + $0xc4] ss:$16 sps:$4 sm:$0xff]  }
  0x6a   : > { %1524 = vmatpush1.bf16.msra.mxu1 %v8110_v31  ;;  %1472 = vmatprep.subr.bf16.mxu0 %v8115_v32  ;;  %v8190_v31 = vld [vmem:[%s11600_s6 + $0x2c4] ss:$16 sps:$4 sm:$0xff]   ;;  %v8185_v32 = vld [vmem:[%s11600_s6 + $0xc0] ss:$16 sps:$4 sm:$0xff]  }
  0x6b   : > { %1525 = vmatprep.subr.bf16.mxu1 %v8118_v33  ;;  %v8196_v33 = vld [vmem:[%s11600_s6 + $0x2a4] ss:$16 sps:$4 sm:$0xff]  }
  0x6d   : > { %1473 = vmatpush1.bf16.msra.mxu0 %v8113_v41  ;;  %v8202_v41 = vld [vmem:[%s11600_s6 + $0x284] ss:$16 sps:$4 sm:$0xff]  }
  0x6e   : > { %1526 = vmatpush1.bf16.msra.mxu1 %v8116_v44  ;;  %1474 = vmatprep.subr.bf16.mxu0 %v8121_v45  ;;  %v8200_v44 = vld [vmem:[%s11600_s6 + $0x280] ss:$16 sps:$4 sm:$0xff]   ;;  %v9565_v45 = vpack.c.bf16 %v523_v35, %v519_v34  ;;  %v527_v34 = vld [vmem:[%s9530_s19 + $0x48] sm:$0xff] }
  0x6f   : > { %1527 = vmatprep.subr.bf16.mxu1 %v8124_v46  ;;  %v9567_v46 = vpack.c.bf16 %v525_v38, %v521_v36  ;;  %v531_v35 = vld [vmem:[%s9530_s19 + $0x68] sm:$0xff]  ;;  %v529_v36 = vld [vmem:[%s9530_s19 + $0x58] sm:$0xff] }
  0x70   : > { %v533_v38 = vld [vmem:[%s9530_s19 + $0x78] sm:$0xff] }
  0x71   : > { %1475 = vmatpush1.bf16.msra.mxu0 %v8119_v50  ;;  %v8203_v50 = vld [vmem:[%s11600_s6 + $0x60] ss:$16 sps:$4 sm:$0xff]  }
  0x72   : > { %1528 = vmatpush1.bf16.msra.mxu1 %v8122_v51  ;;  %1476 = vmatprep.subr.bf16.mxu0 %v8127_v52  ;;  %v8206_v51 = vld [vmem:[%s11600_s6 + $0x260] ss:$16 sps:$4 sm:$0xff]  }
  0x73   : > { %1529 = vmatprep.subr.bf16.mxu1 %v8130_v55  ;;  %v8209_v52 = vld [vmem:[%s11600_s6 + $0x40] ss:$16 sps:$4 sm:$0xff]  }
  0x74   : > { %v8212_v55 = vld [vmem:[%s11600_s6 + $0x240] ss:$16 sps:$4 sm:$0xff]  }
  0x75   : > { %1477 = vmatpush1.bf16.msra.mxu0 %v8125_v56  ;;  %v8217_v56 = vld [vmem:[%s11600_s6 + $0x24] ss:$16 sps:$4 sm:$0xff]  }
  0x76   : > { %1530 = vmatpush1.bf16.msra.mxu1 %v8128_v53  ;;  %1478 = vmatprep.subr.bf16.mxu0 %v8133_v57  ;;  %v8220_v53 = vld [vmem:[%s11600_s6 + $0x224] ss:$16 sps:$4 sm:$0xff]   ;;  %v8215_v57 = vld [vmem:[%s11600_s6 + $0x20] ss:$16 sps:$4 sm:$0xff]  }
  0x77   : > { %1531 = vmatprep.subr.bf16.mxu1 %v8136_v58  ;;  %v8218_v58 = vld [vmem:[%s11600_s6 + $0x220] ss:$16 sps:$4 sm:$0xff]  }
  0x79   : > { %1479 = vmatpush2.bf16.msra.mxu0 %v8131_v59  ;;  %v8223_v59 = vld [vmem:[%s11600_s6 + $0x4] ss:$16 sps:$4 sm:$0xff]  }
  0x7a   : > { %1532 = vmatpush2.bf16.msra.mxu1 %v8134_v54  ;;  %1480 = vmatprep.subr.bf16.mxu0 %v8139_v60  ;;  %v8226_v54 = vld [vmem:[%s11600_s6 + $0x204] ss:$16 sps:$4 sm:$0xff]   ;;  %v8221_v60 = vld [vmem:[%s11600_s6] ss:$16 sps:$4 sm:$0xff]  }
  0x7b   : > { %1533 = vmatprep.subr.bf16.mxu1 %v8142_v61  ;;  %v8224_v61 = vld [vmem:[%s11600_s6 + $0x200] ss:$16 sps:$4 sm:$0xff]  }
  0x7d   : > { %1481 = vmatpush2.bf16.msra.mxu0 %v8137_v62  ;;  %v8229_v62 = vld [vmem:[%s11600_s6 + $0x1e4] ss:$16 sps:$4 sm:$0xff]  }
  0x7e   : > { %1534 = vmatpush2.bf16.msra.mxu1 %v8140_v63  ;;  %1482 = vmatprep.subr.bf16.mxu0 %v8145_v0  ;;  %v8232_v63 = vld [vmem:[%s11600_s6 + $0x3e4] ss:$16 sps:$4 sm:$0xff]   ;;  %v8227_v0 = vld [vmem:[%s11600_s6 + $0x1e0] ss:$16 sps:$4 sm:$0xff]  }
  0x7f   : > { %1535 = vmatprep.subr.bf16.mxu1 %v8148_v1  ;;  %v8230_v1 = vld [vmem:[%s11600_s6 + $0x3e0] ss:$16 sps:$4 sm:$0xff]  }
  0x81   : > { %1483 = vmatpush2.bf16.msra.mxu0 %v8143_v2  ;;  %v8235_v2 = vld [vmem:[%s11600_s6 + $0x1c4] ss:$16 sps:$4 sm:$0xff]  }
  0x82   : > { %1536 = vmatpush2.bf16.msra.mxu1 %v8146_v3  ;;  %1484 = vmatprep.subr.bf16.mxu0 %v8151_v4  ;;  %v8238_v3 = vld [vmem:[%s11600_s6 + $0x3c4] ss:$16 sps:$4 sm:$0xff]   ;;  %v8233_v4 = vld [vmem:[%s11600_s6 + $0x1c0] ss:$16 sps:$4 sm:$0xff]  }
  0x83   : > { %1537 = vmatprep.subr.bf16.mxu1 %v8154_v5  ;;  %v8236_v5 = vld [vmem:[%s11600_s6 + $0x3c0] ss:$16 sps:$4 sm:$0xff]  }
  0x85   : > { %1485 = vmatpush2.bf16.msra.mxu0 %v8149_v6  ;;  %v8241_v6 = vld [vmem:[%s11600_s6 + $0x1a4] ss:$16 sps:$4 sm:$0xff]  }
  0x86   : > { %1538 = vmatpush2.bf16.msra.mxu1 %v8152_v7  ;;  %1486 = vmatprep.subr.bf16.mxu0 %v8157_v8  ;;  %v8244_v7 = vld [vmem:[%s11600_s6 + $0x3a4] ss:$16 sps:$4 sm:$0xff]   ;;  %v8239_v8 = vld [vmem:[%s11600_s6 + $0x1a0] ss:$16 sps:$4 sm:$0xff]  }
  0x87   : > { %1539 = vmatprep.subr.bf16.mxu1 %v8160_v9  ;;  %v8242_v9 = vld [vmem:[%s11600_s6 + $0x3a0] ss:$16 sps:$4 sm:$0xff]  }
  0x89   : > { %1487 = vmatpush2.bf16.msra.mxu0 %v8155_v10  ;;  %v8247_v10 = vld [vmem:[%s11600_s6 + $0x184] ss:$16 sps:$4 sm:$0xff]  }
  0x8a   : > { %1540 = vmatpush2.bf16.msra.mxu1 %v8158_v11  ;;  %1488 = vmatprep.subr.bf16.mxu0 %v8163_v14  ;;  %v8250_v11 = vld [vmem:[%s11600_s6 + $0x384] ss:$16 sps:$4 sm:$0xff]   ;;  %v8245_v14 = vld [vmem:[%s11600_s6 + $0x180] ss:$16 sps:$4 sm:$0xff]  }
  0x8b   : > { %1541 = vmatprep.subr.bf16.mxu1 %v8166_v15  ;;  %v8248_v15 = vld [vmem:[%s11600_s6 + $0x380] ss:$16 sps:$4 sm:$0xff]  }
  0x8d   : > { %1489 = vmatpush2.bf16.msra.mxu0 %v8161_v16  ;;  %v8253_v16 = vld [vmem:[%s11600_s6 + $0x164] ss:$16 sps:$4 sm:$0xff]  }
  0x8e   : > { %1542 = vmatpush2.bf16.msra.mxu1 %v8164_v17  ;;  %1490 = vmatprep.subr.bf16.mxu0 %v8169_v18  ;;  %v8256_v17 = vld [vmem:[%s11600_s6 + $0x364] ss:$16 sps:$4 sm:$0xff]   ;;  %v8251_v18 = vld [vmem:[%s11600_s6 + $0x160] ss:$16 sps:$4 sm:$0xff]  }
  0x8f   : > { %1543 = vmatprep.subr.bf16.mxu1 %v8172_v19  ;;  %v8254_v19 = vld [vmem:[%s11600_s6 + $0x360] ss:$16 sps:$4 sm:$0xff]  }
  0x91   : > { %1491 = vmatpush2.bf16.msra.mxu0 %v8167_v20  ;;  %v8259_v20 = vld [vmem:[%s11600_s6 + $0x144] ss:$16 sps:$4 sm:$0xff]  }
  0x92   : > { %1544 = vmatpush2.bf16.msra.mxu1 %v8170_v21  ;;  %1492 = vmatprep.subr.bf16.mxu0 %v8175_v22  ;;  %v8262_v21 = vld [vmem:[%s11600_s6 + $0x344] ss:$16 sps:$4 sm:$0xff]   ;;  %v8257_v22 = vld [vmem:[%s11600_s6 + $0x140] ss:$16 sps:$4 sm:$0xff]  }
  0x93   : > { %1545 = vmatprep.subr.bf16.mxu1 %v8178_v23  ;;  %v8260_v23 = vld [vmem:[%s11600_s6 + $0x340] ss:$16 sps:$4 sm:$0xff]  }
  0x95   : > { %1493 = vmatpush2.bf16.msra.mxu0 %v8173_v24  ;;  %v8265_v24 = vld [vmem:[%s11600_s6 + $0x124] ss:$16 sps:$4 sm:$0xff]  }
  0x96   : > { %1546 = vmatpush2.bf16.msra.mxu1 %v8176_v25  ;;  %2358 = vmatprep.subr.bf16.mxu0 %v8181_v26  ;;  %v8268_v25 = vld [vmem:[%s11600_s6 + $0x324] ss:$16 sps:$4 sm:$0xff]   ;;  %v8263_v26 = vld [vmem:[%s11600_s6 + $0x120] ss:$16 sps:$4 sm:$0xff]  }
  0x97   : > { %2411 = vmatprep.subr.bf16.mxu1 %v8184_v27  ;;  %v8266_v27 = vld [vmem:[%s11600_s6 + $0x320] ss:$16 sps:$4 sm:$0xff]  }
  0x98   : > { %1495 = vmatmul.mubr.bf16.vlgmr.msra.gmra.mxu0 %v9289_v12  ;;  %v8188_v12 = vld [vmem:[%s11600_s6 + $0x2c0] ss:$16 sps:$4 sm:$0xff]  }
  0x99   : > { %1548 = vmatmul.mubr.bf16.vlgmr.msra.gmra.mxu1 %v9291_v13  ;;  %2359 = vmatpush1.bf16.msra.mxu0 %v8179_v28  ;;  %v8193_v13 = vld [vmem:[%s11600_s6 + $0xa4] ss:$16 sps:$4 sm:$0xff]  }
  0x9a   : > { %2412 = vmatpush1.bf16.msra.mxu1 %v8182_v29  ;;  %2360 = vmatprep.subr.bf16.mxu0 %v8187_v30  ;;  %v8271_v28 = vld [vmem:[%s11600_s6 + $0x104] ss:$16 sps:$4 sm:$0xff]   ;;  %v8269_v30 = vld [vmem:[%s11600_s6 + $0x100] ss:$16 sps:$4 sm:$0xff]  }
  0x9b   : > { %2413 = vmatprep.subr.bf16.mxu1 %v8190_v31  ;;  %1504 = vmatprep.mubr.bf16.mxu0 %v9358_v37  ;;  %v8199_v37 = vld [vmem:[%s11600_s6 + $0x84] ss:$16 sps:$4 sm:$0xff]   ;;  %v8272_v31 = vld [vmem:[%s11600_s6 + $0x300] ss:$16 sps:$4 sm:$0xff]  }
  0x9c   : > { %1557 = vmatprep.mubr.bf16.mxu1 %v9368_v43  ;;  %v8197_v43 = vld [vmem:[%s11600_s6 + $0x80] ss:$16 sps:$4 sm:$0xff]   ;;  %v8274_v29 = vld [vmem:[%s11600_s6 + $0x304] ss:$16 sps:$4 sm:$0xff]  }
  0x9d   : > { %2361 = vmatpush1.bf16.msra.mxu0 %v8185_v32  ;;  %v518_v32 = vld [vmem:[%s9530_s19] sm:$0xff] }
  0x9e   : > { %2414 = vmatpush1.bf16.msra.mxu1 %v8188_v12  ;;  %2362 = vmatprep.subr.bf16.mxu0 %v8193_v13  ;;  %v522_v12 = vld [vmem:[%s9530_s19 + $0x20] sm:$0xff]  ;;  %v520_v13 = vld [vmem:[%s9530_s19 + $0x10] sm:$0xff] }
  0x9f   : > { %2415 = vmatprep.subr.bf16.mxu1 %v8196_v33  ;;  %v524_v33 = vld [vmem:[%s9530_s19 + $0x30] sm:$0xff] }
  0xa0   : > { %1505 = vmatmul.mubr.bf16.gmra.mxu0 %v9366_v42  ;;  %v8211_v42 = vld [vmem:[%s11600_s6 + $0x44] ss:$16 sps:$4 sm:$0xff]  }
  0xa1   : > { %1558 = vmatmul.mubr.bf16.gmra.mxu1 %v9384_v49  ;;  %2363 = vmatpush1.bf16.msra.mxu0 %v8191_v39  ;;  %v8214_v49 = vld [vmem:[%s11600_s6 + $0x244] ss:$16 sps:$4 sm:$0xff]   ;;  %v9725_v39 = vpack.c.bf16 %v522_v12, %v518_v32  ;;  %v8323_v32 = vld [vmem:[%s11600_s6 + $0x228] ss:$16 sps:$4 sm:$0xff]  }
  0xa2   : > { %2416 = vmatpush1.bf16.msra.mxu1 %v8194_v40  ;;  %2364 = vmatprep.subr.bf16.mxu0 %v8199_v37  ;;  %v9727_v40 = vpack.c.bf16 %v524_v33, %v520_v13  ;;  %v9729_v37 = vpack.c.bf16 %v531_v35, %v527_v34  ;;  %v8328_v35 = vld [vmem:[%s11600_s6 + $0x1ac] ss:$16 sps:$4 sm:$0xff]  }
  0xa3   : > { %2417 = vmatprep.subr.bf16.mxu1 %v8202_v41  ;;  %2390 = vmatprep.mubr.bf16.mxu0 %v9565_v45  ;;  %v9731_v41 = vpack.c.bf16 %v533_v38, %v529_v36  ;;  %v8326_v38 = vld [vmem:[%s11600_s6 + $0x1a8] ss:$16 sps:$4 sm:$0xff]  }
  0xa4   : > { %2443 = vmatprep.mubr.bf16.mxu1 %v9567_v46 }
  0xa5   : > { %2365 = vmatpush1.bf16.msra.mxu0 %v8197_v43  ;;  %v526_v43 = vld [vmem:[%s9530_s19 + $0x40] sm:$0xff] }
  0xa6   : > { %2418 = vmatpush1.bf16.msra.mxu1 %v8200_v44  ;;  %2366 = vmatprep.subr.bf16.mxu0 %v8205_v47  ;;  %v530_v44 = vld [vmem:[%s9530_s19 + $0x60] sm:$0xff]  ;;  %v528_v47 = vld [vmem:[%s9530_s19 + $0x50] sm:$0xff] }
  0xa7   : > { %2419 = vmatprep.subr.bf16.mxu1 %v8208_v48  ;;  %v532_v48 = vld [vmem:[%s9530_s19 + $0x70] sm:$0xff]  ;;  %s8949_s19 = smov [#allocation3]  }
  0xa9   : > { %2367 = vmatpush1.bf16.msra.mxu0 %v8203_v50  ;;  %v9741_v50 = vpack.c.bf16 %v530_v44, %v526_v43  ;;  %v8331_v43 = vld [vmem:[%s11600_s6 + $0x20c] ss:$16 sps:$4 sm:$0xff]  }
  0xaa   : > { %2420 = vmatpush1.bf16.msra.mxu1 %v8206_v51  ;;  %2368 = vmatprep.subr.bf16.mxu0 %v8211_v42  ;;  %v9743_v51 = vpack.c.bf16 %v532_v48, %v528_v47  ;;  %v8275_v42 = vld [vmem:[%s11600_s6 + $0xe8] ss:$16 sps:$4 sm:$0xff]  }
  0xab   : > { %2421 = vmatprep.subr.bf16.mxu1 %v8214_v49  ;;  %v8277_v49 = vld [vmem:[%s11600_s6 + $0xec] ss:$16 sps:$4 sm:$0xff]  }
  0xad   : > { %2369 = vmatpush1.bf16.msra.mxu0 %v8209_v52  ;;  %v8280_v52 = vld [vmem:[%s11600_s6 + $0xcc] ss:$16 sps:$4 sm:$0xff]  }
  0xae   : > { %2422 = vmatpush1.bf16.msra.mxu1 %v8212_v55  ;;  %2370 = vmatprep.subr.bf16.mxu0 %v8217_v56  ;;  %v8287_v55 = vld [vmem:[%s11600_s6 + $0x2e8] ss:$16 sps:$4 sm:$0xff]   ;;  %v8283_v56 = vld [vmem:[%s11600_s6 + $0xac] ss:$16 sps:$4 sm:$0xff]  }
  0xaf   : > { %2423 = vmatprep.subr.bf16.mxu1 %v8220_v53  ;;  %v8295_v53 = vld [vmem:[%s11600_s6 + $0x2cc] ss:$16 sps:$4 sm:$0xff]  }
  0xb1   : > { %2371 = vmatpush1.bf16.msra.mxu0 %v8215_v57  ;;  %v8281_v57 = vld [vmem:[%s11600_s6 + $0xa8] ss:$16 sps:$4 sm:$0xff]  }
  0xb2   : > { %2424 = vmatpush1.bf16.msra.mxu1 %v8218_v58  ;;  %2372 = vmatprep.subr.bf16.mxu0 %v8223_v59  ;;  %v8293_v58 = vld [vmem:[%s11600_s6 + $0x2c8] ss:$16 sps:$4 sm:$0xff]   ;;  %v8301_v59 = vld [vmem:[%s11600_s6 + $0x2ac] ss:$16 sps:$4 sm:$0xff]  }
  0xb3   : > { %2425 = vmatprep.subr.bf16.mxu1 %v8226_v54  ;;  %v8286_v54 = vld [vmem:[%s11600_s6 + $0x8c] ss:$16 sps:$4 sm:$0xff]  }
  0xb5   : > { %2373 = vmatpush1.bf16.msra.mxu0 %v8221_v60  ;;  %v8299_v60 = vld [vmem:[%s11600_s6 + $0x2a8] ss:$16 sps:$4 sm:$0xff]  }
  0xb6   : > { %2426 = vmatpush1.bf16.msra.mxu1 %v8224_v61  ;;  %2374 = vmatprep.subr.bf16.mxu0 %v8229_v62  ;;  %v8284_v61 = vld [vmem:[%s11600_s6 + $0x88] ss:$16 sps:$4 sm:$0xff]   ;;  %v8307_v62 = vld [vmem:[%s11600_s6 + $0x28c] ss:$16 sps:$4 sm:$0xff]  }
  0xb7   : > { %2427 = vmatprep.subr.bf16.mxu1 %v8232_v63  ;;  %v8292_v63 = vld [vmem:[%s11600_s6 + $0x6c] ss:$16 sps:$4 sm:$0xff]  }
  0xb9   : > { %2375 = vmatpush2.bf16.msra.mxu0 %v8227_v0  ;;  %v8305_v0 = vld [vmem:[%s11600_s6 + $0x288] ss:$16 sps:$4 sm:$0xff]  }
  0xba   : > { %2428 = vmatpush2.bf16.msra.mxu1 %v8230_v1  ;;  %2376 = vmatprep.subr.bf16.mxu0 %v8235_v2  ;;  %v8290_v1 = vld [vmem:[%s11600_s6 + $0x68] ss:$16 sps:$4 sm:$0xff]   ;;  %v8313_v2 = vld [vmem:[%s11600_s6 + $0x26c] ss:$16 sps:$4 sm:$0xff]  }
  0xbb   : > { %2429 = vmatprep.subr.bf16.mxu1 %v8238_v3  ;;  %v8298_v3 = vld [vmem:[%s11600_s6 + $0x4c] ss:$16 sps:$4 sm:$0xff]  }
  0xbd   : > { %2377 = vmatpush2.bf16.msra.mxu0 %v8233_v4  ;;  %v8311_v4 = vld [vmem:[%s11600_s6 + $0x268] ss:$16 sps:$4 sm:$0xff]  }
  0xbe   : > { %2430 = vmatpush2.bf16.msra.mxu1 %v8236_v5  ;;  %2378 = vmatprep.subr.bf16.mxu0 %v8241_v6  ;;  %v8296_v5 = vld [vmem:[%s11600_s6 + $0x48] ss:$16 sps:$4 sm:$0xff]   ;;  %v8304_v6 = vld [vmem:[%s11600_s6 + $0x2c] ss:$16 sps:$4 sm:$0xff]  }
  0xbf   : > { %2431 = vmatprep.subr.bf16.mxu1 %v8244_v7  ;;  %v8302_v7 = vld [vmem:[%s11600_s6 + $0x28] ss:$16 sps:$4 sm:$0xff]  }
  0xc1   : > { %2379 = vmatpush2.bf16.msra.mxu0 %v8239_v8  ;;  %v8310_v8 = vld [vmem:[%s11600_s6 + $0xc] ss:$16 sps:$4 sm:$0xff]  }
  0xc2   : > { %2432 = vmatpush2.bf16.msra.mxu1 %v8242_v9  ;;  %2380 = vmatprep.subr.bf16.mxu0 %v8247_v10  ;;  %v8308_v9 = vld [vmem:[%s11600_s6 + $0x8] ss:$16 sps:$4 sm:$0xff]   ;;  %v696_v10 = vlaneseq }
  0xc3   : > { %2433 = vmatprep.subr.bf16.mxu1 %v8250_v11 }
  0xc4   : > { %v9827_v11 = vshrl.u32 %v696_v10, 7  ;;  %v8361_v10 = vld [vmem:[%s11600_s6 + $0x36c] ss:$16 sps:$4 sm:$0xff]  }
  0xc5   : > { %2381 = vmatpush2.bf16.msra.mxu0 %v8245_v14 }
  0xc6   : > { %2434 = vmatpush2.bf16.msra.mxu1 %v8248_v15  ;;  %2382 = vmatprep.subr.bf16.mxu0 %v8253_v16  ;;  %v9830_v14 = vsub.s32 0, %v9827_v11  ;;  %v9833_v15 = vsub.s32 1, %v9827_v11  ;;  %v9838_v16 = vld [vmem:[%s11599_s5] sm:$0xf] }
  0xc7   : > { %2435 = vmatprep.subr.bf16.mxu1 %v8256_v17  ;;  %v8314_v17 = vld [vmem:[%s11600_s6 + $0x1e8] ss:$16 sps:$4 sm:$0xff]  }
  0xc8   : > { %11623 = vst [vmem:[#allocation9_spill] sm:$0xff] %v9830_v14  ;;  %11624 = vst [vmem:[#allocation10_spill] sm:$0xff] %v9833_v15 }
  0xc9   : > { %2383 = vmatpush2.bf16.msra.mxu0 %v8251_v18  ;;  %v8316_v18 = vld [vmem:[%s11600_s6 + $0x1ec] ss:$16 sps:$4 sm:$0xff]  }
  0xca   : > { %2436 = vmatpush2.bf16.msra.mxu1 %v8254_v19  ;;  %2384 = vmatprep.subr.bf16.mxu0 %v8259_v20  ;;  %v8319_v19 = vld [vmem:[%s11600_s6 + $0x24c] ss:$16 sps:$4 sm:$0xff]   ;;  %v9851_v20 = vrot.slane %v9838_v16, %v9830_v14 }
  0xcb   : > { %2437 = vmatprep.subr.bf16.mxu1 %v8262_v21  ;;  %v9855_v21 = vrot.slane %v9838_v16, %v9833_v15 }
  0xcd   : > { %2385 = vmatpush2.bf16.msra.mxu0 %v8257_v22  ;;  %v8317_v22 = vld [vmem:[%s11600_s6 + $0x248] ss:$16 sps:$4 sm:$0xff]  }
  0xce   : > { %2438 = vmatpush2.bf16.msra.mxu1 %v8260_v23  ;;  %2386 = vmatprep.subr.bf16.mxu0 %v8265_v24 }
  0xcf   : > { %2439 = vmatprep.subr.bf16.mxu1 %v8268_v25  ;;  %v8322_v25 = vld [vmem:[%s11600_s6 + $0x1cc] ss:$16 sps:$4 sm:$0xff]  }
  0xd1   : > { %2387 = vmatpush2.bf16.msra.mxu0 %v8263_v26 }
  0xd2   : > { %2440 = vmatpush2.bf16.msra.mxu1 %v8266_v27  ;;  %2388 = vmatprep.subr.bf16.mxu0 %v8271_v28  ;;  %v8320_v28 = vld [vmem:[%s11600_s6 + $0x1c8] ss:$16 sps:$4 sm:$0xff]  }
  0xd3   : > { %2441 = vmatprep.subr.bf16.mxu1 %v8274_v29  ;;  %v8325_v29 = vld [vmem:[%s11600_s6 + $0x22c] ss:$16 sps:$4 sm:$0xff]  }
  0xd5   : > { %2389 = vmatpush2.bf16.msra.mxu0 %v8269_v30 }
  0xd6   : > { %2442 = vmatpush2.bf16.msra.mxu1 %v8272_v31  ;;  %2464 = vmatprep.subr.bf16.mxu0 %v8277_v49 }
  0xd8   : > { %2391 = vmatmul.mubr.bf16.vlgmr.msra.gmra.mxu0 %v9725_v39 }
  0xd9   : > { %2444 = vmatmul.mubr.bf16.vlgmr.msra.gmra.mxu1 %v9727_v40  ;;  %2400 = vmatprep.mubr.bf16.mxu0 %v9729_v37 }
  0xda   : > { %2453 = vmatprep.mubr.bf16.mxu1 %v9731_v41  ;;  %2465 = vmatpush1.bf16.msra.mxu0 %v8275_v42  ;;  %v8329_v42 = vld [vmem:[%s11600_s6 + $0x208] ss:$16 sps:$4 sm:$0xff]  }
  0xdb   : > { %2466 = vmatprep.subr.bf16.mxu0 %v8280_v52 }
  0xe0   : > { %2401 = vmatmul.mubr.bf16.gmra.mxu0 %v9741_v50 }
  0xe1   : > { %2454 = vmatmul.mubr.bf16.gmra.mxu1 %v9743_v51  ;;  %2496 = vmatprep.mubr.bf16.mxu0 %v9565_v45  ;;  %v8278_v45 = vld [vmem:[%s11600_s6 + $0xc8] ss:$16 sps:$4 sm:$0xff]  }
  0xe2   : > { %2549 = vmatprep.mubr.bf16.mxu1 %v9567_v46  ;;  %v8289_v46 = vld [vmem:[%s11600_s6 + $0x2ec] ss:$16 sps:$4 sm:$0xff]   ;;  %2467 = vmatpush1.bf16.msra.mxu0 %v8278_v45 }
  0xe3   : > { %2517 = vmatprep.subr.bf16.mxu1 %v8289_v46  ;;  %2468 = vmatprep.subr.bf16.mxu0 %v8283_v56  ;;  %v8334_v45 = vld [vmem:[%s11600_s6 + $0x18c] ss:$16 sps:$4 sm:$0xff]   ;;  %v8332_v46 = vld [vmem:[%s11600_s6 + $0x188] ss:$16 sps:$4 sm:$0xff]  }
  0xe4   : > { %2518 = vmatpush1.bf16.msra.mxu1 %v8287_v55  ;;  %v8337_v56 = vld [vmem:[%s11600_s6 + $0x3ec] ss:$16 sps:$4 sm:$0xff]  }
  0xe5   : > { %2519 = vmatprep.subr.bf16.mxu1 %v8295_v53 }
  0xe6   : > { %2469 = vmatpush1.bf16.msra.mxu0 %v8281_v57  ;;  %v8335_v57 = vld [vmem:[%s11600_s6 + $0x3e8] ss:$16 sps:$4 sm:$0xff]  }
  0xe7   : > { %2470 = vmatprep.subr.bf16.mxu0 %v8286_v54  ;;  %v8343_v54 = vld [vmem:[%s11600_s6 + $0x3cc] ss:$16 sps:$4 sm:$0xff]  }
  0xe8   : > { %2520 = vmatpush1.bf16.msra.mxu1 %v8293_v58  ;;  %v8340_v58 = vld [vmem:[%s11600_s6 + $0x16c] ss:$16 sps:$4 sm:$0xff]  }
  0xe9   : > { %2521 = vmatprep.subr.bf16.mxu1 %v8301_v59  ;;  %v8338_v59 = vld [vmem:[%s11600_s6 + $0x168] ss:$16 sps:$4 sm:$0xff]  }
  0xea   : > { %2471 = vmatpush1.bf16.msra.mxu0 %v8284_v61  ;;  %v8344_v61 = vld [vmem:[%s11600_s6 + $0x148] ss:$16 sps:$4 sm:$0xff]  }
  0xeb   : > { %2472 = vmatprep.subr.bf16.mxu0 %v8292_v63  ;;  %v8347_v63 = vld [vmem:[%s11600_s6 + $0x3a8] ss:$16 sps:$4 sm:$0xff]  }
  0xec   : > { %2522 = vmatpush1.bf16.msra.mxu1 %v8299_v60  ;;  %v8341_v60 = vld [vmem:[%s11600_s6 + $0x3c8] ss:$16 sps:$4 sm:$0xff]  }
  0xed   : > { %2523 = vmatprep.subr.bf16.mxu1 %v8307_v62  ;;  %v8346_v62 = vld [vmem:[%s11600_s6 + $0x14c] ss:$16 sps:$4 sm:$0xff]  }
  0xee   : > { %2473 = vmatpush1.bf16.msra.mxu0 %v8290_v1  ;;  %v8352_v1 = vld [vmem:[%s11600_s6 + $0x12c] ss:$16 sps:$4 sm:$0xff]  }
  0xef   : > { %2474 = vmatprep.subr.bf16.mxu0 %v8298_v3  ;;  %v8355_v3 = vld [vmem:[%s11600_s6 + $0x38c] ss:$16 sps:$4 sm:$0xff]  }
  0xf0   : > { %2524 = vmatpush1.bf16.msra.mxu1 %v8305_v0  ;;  %v8349_v0 = vld [vmem:[%s11600_s6 + $0x3ac] ss:$16 sps:$4 sm:$0xff]  }
  0xf1   : > { %2525 = vmatprep.subr.bf16.mxu1 %v8313_v2 }
  0xf2   : > { %2475 = vmatpush1.bf16.msra.mxu0 %v8296_v5  ;;  %v8350_v5 = vld [vmem:[%s11600_s6 + $0x128] ss:$16 sps:$4 sm:$0xff]  }
  0xf3   : > { %2476 = vmatprep.subr.bf16.mxu0 %v8304_v6 }
  0xf4   : > { %2526 = vmatpush1.bf16.msra.mxu1 %v8311_v4 }
  0xf5   : > { %2527 = vmatprep.subr.bf16.mxu1 %v8319_v19 }
  0xf6   : > { %2477 = vmatpush1.bf16.msra.mxu0 %v8302_v7  ;;  %v8353_v7 = vld [vmem:[%s11600_s6 + $0x388] ss:$16 sps:$4 sm:$0xff]  }
  0xf7   : > { %2478 = vmatprep.subr.bf16.mxu0 %v8310_v8  ;;  %v8358_v8 = vld [vmem:[%s11600_s6 + $0x10c] ss:$16 sps:$4 sm:$0xff]  }
  0xf8   : > { %2528 = vmatpush1.bf16.msra.mxu1 %v8317_v22 }
  0xf9   : > { %2529 = vmatprep.subr.bf16.mxu1 %v8325_v29  ;;  %v8367_v29 = vld [vmem:[%s11600_s6 + $0x34c] ss:$16 sps:$4 sm:$0xff]  }
  0xfa   : > { %2479 = vmatpush1.bf16.msra.mxu0 %v8308_v9 }
  0xfb   : > { %2480 = vmatprep.subr.bf16.mxu0 %v8316_v18 }
  0xfc   : > { %2530 = vmatpush1.bf16.msra.mxu1 %v8323_v32  ;;  %v8362_v32 = vld [vmem:[%s11602_s8 + $0xe0] ss:$16 sps:$4 sm:$0xff]  }
  0xfd   : > { %2531 = vmatprep.subr.bf16.mxu1 %v8331_v43  ;;  %v8371_v43 = vld [vmem:[%s11600_s6 + $0x328] ss:$16 sps:$4 sm:$0xff]  }
  0xfe   : > { %2481 = vmatpush2.bf16.msra.mxu0 %v8314_v17 }
  0xff   : > { %2482 = vmatprep.subr.bf16.mxu0 %v8322_v25 }
 0x100   : > { %2532 = vmatpush1.bf16.msra.mxu1 %v8329_v42  ;;  %v8385_v42 = vld [vmem:[%s11602_s8 + $0x2e4] ss:$16 sps:$4 sm:$0xff]  }
 0x101   : > { %2533 = vmatprep.subr.bf16.mxu1 %v8337_v56  ;;  %v547_v56 = vld [vmem:[%s10011_s26 + $0x28] sm:$0xff] }
 0x102   : > { %2483 = vmatpush2.bf16.msra.mxu0 %v8320_v28 }
 0x103   : > { %2484 = vmatprep.subr.bf16.mxu0 %v8328_v35  ;;  %v8373_v35 = vld [vmem:[%s11600_s6 + $0x32c] ss:$16 sps:$4 sm:$0xff]  }
 0x104   : > { %2534 = vmatpush2.bf16.msra.mxu1 %v8335_v57 }
 0x105   : > { %2535 = vmatprep.subr.bf16.mxu1 %v8343_v54  ;;  %v8394_v54 = vld [vmem:[%s11602_s8 + $0x44] ss:$16 sps:$4 sm:$0xff]  }
 0x106   : > { %2485 = vmatpush2.bf16.msra.mxu0 %v8326_v38  ;;  %v8368_v38 = vld [vmem:[%s11602_s8 + $0xc0] ss:$16 sps:$4 sm:$0xff]  }
 0x107   : > { %2486 = vmatprep.subr.bf16.mxu0 %v8334_v45  ;;  %v8391_v45 = vld [vmem:[%s11602_s8 + $0x2c4] ss:$16 sps:$4 sm:$0xff]  }
 0x108   : > { %2536 = vmatpush2.bf16.msra.mxu1 %v8341_v60  ;;  %v545_v60 = vld [vmem:[%s10011_s26 + $0x18] sm:$0xff] }
 0x109   : > { %2537 = vmatprep.subr.bf16.mxu1 %v8349_v0  ;;  %v8400_v0 = vld [vmem:[%s11602_s8 + $0x24] ss:$16 sps:$4 sm:$0xff]  }
 0x10a   : > { %2487 = vmatpush2.bf16.msra.mxu0 %v8332_v46  ;;  %v543_v46 = vld [vmem:[%s10011_s26 + $0x8] sm:$0xff] }
 0x10b   : > { %2488 = vmatprep.subr.bf16.mxu0 %v8340_v58  ;;  %v10027_v57 = vpack.c.bf16 %v547_v56, %v543_v46  ;;  %v8386_v58 = vld [vmem:[%s11602_s8 + $0x60] ss:$16 sps:$4 sm:$0xff]  }
 0x10c   : > { %2538 = vmatpush2.bf16.msra.mxu1 %v8347_v63  ;;  %v8395_v63 = vld [vmem:[%s11602_s8 + $0x2a0] ss:$16 sps:$4 sm:$0xff]  }
 0x10d   : > { %2539 = vmatprep.subr.bf16.mxu1 %v8355_v3  ;;  %v8401_v3 = vld [vmem:[%s11602_s8 + $0x280] ss:$16 sps:$4 sm:$0xff]  }
 0x10e   : > { %2489 = vmatpush2.bf16.msra.mxu0 %v8338_v59  ;;  %v8389_v59 = vld [vmem:[%s11602_s8 + $0x2c0] ss:$16 sps:$4 sm:$0xff]  }
 0x10f   : > { %2490 = vmatprep.subr.bf16.mxu0 %v8346_v62  ;;  %v549_v62 = vld [vmem:[%s10011_s26 + $0x38] sm:$0xff]  ;;  %v8431_v56 = vld [vmem:[%s11602_s8 + $0x3e0] ss:$16 sps:$4 sm:$0xff]  }
 0x110   : > { %2540 = vmatpush2.bf16.msra.mxu1 %v8353_v7  ;;  %v8407_v7 = vld [vmem:[%s11602_s8 + $0x260] ss:$16 sps:$4 sm:$0xff]  }
 0x111   : > { %2541 = vmatprep.subr.bf16.mxu1 %v8361_v10  ;;  %v10090_v10 = vsub.s32 3, %v9827_v11 }
 0x112   : > { %2491 = vmatpush2.bf16.msra.mxu0 %v8344_v61  ;;  %v8392_v61 = vld [vmem:[%s11602_s8 + $0x40] ss:$16 sps:$4 sm:$0xff]  }
 0x113   : > { %2492 = vmatprep.subr.bf16.mxu0 %v8352_v1  ;;  %v10058_v1 = vpack.c.bf16 %v549_v62, %v545_v60  ;;  %11626 = vst [vmem:[#allocation12_spill] sm:$0xff] %v10090_v10 }
 0x116   : > { %2493 = vmatpush2.bf16.msra.mxu0 %v8350_v5  ;;  %v8409_v5 = vld [vmem:[%s11602_s8 + $0x264] ss:$16 sps:$4 sm:$0xff]  }
 0x117   : > { %2494 = vmatprep.subr.bf16.mxu0 %v8358_v8  ;;  %v8412_v8 = vld [vmem:[%s11602_s8 + $0x1e4] ss:$16 sps:$4 sm:$0xff]  }
 0x118   : > { %v1390_v23 = vpop.f32.mrf.mxu0 }
 0x119   : > { %v1443_v24 = vpop.f32.mrf.mxu1  ;;  %v1391_v30 = vadd.f32 %v1390_v23, %v9851_v20  ;;  %v8356_v23 = vld [vmem:[%s11600_s6 + $0x108] ss:$16 sps:$4 sm:$0xff]  }
 0x11a   : > { %v1392_v26 = vpop.f32.mrf.mxu0  ;;  %2495 = vmatpush2.bf16.msra.mxu0 %v8356_v23  ;;  %v10108_v23 = vrot.slane %v9838_v16, %v10090_v10 }
 0x11b   : > { %v1445_v27 = vpop.f32.mrf.mxu1  ;;  %v1393_v31 = vadd.f32 %v1392_v26, %v9855_v21  ;;  %v1444_v44 = vadd.f32 %v1443_v24, %v1391_v30  ;;  %v8359_v26 = vld [vmem:[%s11600_s6 + $0x368] ss:$16 sps:$4 sm:$0xff]  }
 0x11c   : > { %v1394_v12 = vpop.f32.mrf.mxu0  ;;  %2542 = vmatpush2.bf16.msra.mxu1 %v8359_v26  ;;  %v8416_v26 = vld [vmem:[%s11602_s8 + $0x1c0] ss:$16 sps:$4 sm:$0xff]  }
 0x11d   : > { %v1447_v13 = vpop.f32.mrf.mxu1  ;;  %v1446_v33 = vadd.f32 %v1445_v27, %v1393_v31  ;;  %v1395_v34 = vadd.f32 %v1394_v12, %v9851_v20  ;;  %v8364_v27 = vld [vmem:[%s11602_s8 + $0xe4] ss:$16 sps:$4 sm:$0xff]   ;;  %2543 = vmatprep.subr.bf16.mxu1 %v8367_v29  ;;  %2497 = vmatmul.mubr.bf16.vlgmr.msra.gmra.mxu0 %v9725_v39 }
 0x11e   : > { %v1396_v36 = vpop.f32.mrf.mxu0  ;;  %3360 = vmatprep.subr.bf16.mxu0 %v8364_v27  ;;  %2506 = vmatprep.mubr.bf16.mxu0 %v9729_v37  ;;  %v8376_v39 = vld [vmem:[%s11602_s8 + $0xa4] ss:$16 sps:$4 sm:$0xff]   ;;  %v8374_v37 = vld [vmem:[%s11602_s8 + $0xa0] ss:$16 sps:$4 sm:$0xff]  }
 0x11f   : > { %v1448_v47 = vadd.f32 %v1447_v13, %v1395_v34  ;;  %v1397_v48 = vadd.f32 %v1396_v36, %v9855_v21  ;;  %v1449_v49 = vpop.f32.mrf.mxu1  ;;  %v8365_v13 = vld [vmem:[%s11600_s6 + $0x348] ss:$16 sps:$4 sm:$0xff]   ;;  %3361 = vmatpush1.bf16.msra.mxu0 %v8362_v32 }
 0x120   : > { %v1400_v2 = vpop.f32.mrf.mxu0  ;;  %2544 = vmatpush2.bf16.msra.mxu1 %v8365_v13 }
 0x121   : > { %v1450_v52 = vadd.f32 %v1449_v49, %v1397_v48  ;;  %v9888_v55 = vpack.c.bf16 %v1448_v47, %v1444_v44  ;;  %v1401_v4 = vadd.f32 %v1400_v2, %v9851_v20  ;;  %2545 = vmatprep.subr.bf16.mxu1 %v8373_v35  ;;  %v8379_v44 = vld [vmem:[%s11600_s6 + $0x30c] ss:$16 sps:$4 sm:$0xff]   ;;  %v8377_v47 = vld [vmem:[%s11600_s6 + $0x308] ss:$16 sps:$4 sm:$0xff]   ;;  %v8382_v48 = vld [vmem:[%s11602_s8 + $0x84] ss:$16 sps:$4 sm:$0xff]  }
 0x122   : > { %v1402_v6 = vpop.f32.mrf.mxu0  ;;  %v8380_v49 = vld [vmem:[%s11602_s8 + $0x80] ss:$16 sps:$4 sm:$0xff]  }
 0x123   : > { %v9899_v53 = vpack.c.bf16 %v1450_v52, %v1446_v33  ;;  %3866 = vrot.lane.b32.xlu1 %v9888_v55, %s8945_s17  ;;  %v1403_v9 = vadd.f32 %v1402_v6, %v9855_v21  ;;  %v1453_v17 = vpop.f32.mrf.mxu1  ;;  %v8383_v52 = vld [vmem:[%s11602_s8 + $0x2e0] ss:$16 sps:$4 sm:$0xff]   ;;  %v10078_v6 = vsub.s32 2, %v9827_v11  ;;  %v8421_v11 = vld [vmem:[%s11602_s8 + $0x224] ss:$16 sps:$4 sm:$0xff]  }
 0x124   : > { %v1404_v18 = vpop.f32.mrf.mxu0  ;;  %v1454_v19 = vadd.f32 %v1453_v17, %v1401_v4  ;;  %2546 = vmatpush2.bf16.msra.mxu1 %v8371_v43  ;;  %v8398_v2 = vld [vmem:[%s11602_s8 + $0x20] ss:$16 sps:$4 sm:$0xff]   ;;  %v8406_v4 = vld [vmem:[%s11602_s8 + $0x4] ss:$16 sps:$4 sm:$0xff]  }
 0x125   : > { %v1405_v22 = vadd.f32 %v1404_v18, %v9851_v20  ;;  %v1455_v24 = vpop.f32.mrf.mxu1  ;;  %2547 = vmatprep.subr.bf16.mxu1 %v8379_v44  ;;  %2507 = vmatmul.mubr.bf16.gmra.mxu0 %v9741_v50  ;;  %v8388_v50 = vld [vmem:[%s11602_s8 + $0x64] ss:$16 sps:$4 sm:$0xff]   ;;  %11625 = vst [vmem:[#allocation11_spill] sm:$0xff] %v10078_v6  ;;  %v8410_v17 = vld [vmem:[%s11602_s8 + $0x1e0] ss:$16 sps:$4 sm:$0xff]   ;;  %v707_v18 = vrot.slane %v9838_v16, %v10078_v6 }
 0x126   : > { %v1406_v25 = vpop.f32.mrf.mxu0  ;;  %v1456_v28 = vadd.f32 %v1455_v24, %v1403_v9  ;;  %3392 = vmatprep.mubr.bf16.mxu0 %v10027_v57  ;;  %v8415_v9 = vld [vmem:[%s11602_s8 + $0x244] ss:$16 sps:$4 sm:$0xff]  }
 0x127   : > { %v1407_v20 = vadd.f32 %v1406_v25, %v9855_v21  ;;  %v1457_v30 = vpop.f32.mrf.mxu1  ;;  %v8370_v21 = vld [vmem:[%s11602_s8 + $0xc4] ss:$16 sps:$4 sm:$0xff]  }
 0x128   : > { %v1458_v31 = vadd.f32 %v1457_v30, %v1405_v22  ;;  %3362 = vmatprep.subr.bf16.mxu0 %v8370_v21  ;;  %2548 = vmatpush2.bf16.msra.mxu1 %v8377_v47  ;;  %v8418_v22 = vld [vmem:[%s11602_s8 + $0x1c4] ss:$16 sps:$4 sm:$0xff]   ;;  %v8422_v21 = vld [vmem:[%s11602_s8 + $0x1a0] ss:$16 sps:$4 sm:$0xff]  }
 0x129   : > { %v1459_v12 = vpop.f32.mrf.mxu1  ;;  %3363 = vmatpush1.bf16.msra.mxu0 %v8368_v38  ;;  %3413 = vmatprep.subr.bf16.mxu1 %v8385_v42  ;;  %v8427_v30 = vld [vmem:[%s11602_s8 + $0x204] ss:$16 sps:$4 sm:$0xff]   ;;  %v8425_v38 = vld [vmem:[%s11602_s8 + $0x200] ss:$16 sps:$4 sm:$0xff]  }
 0x12a   : > { %v9973_v33 = vpack.c.bf16 %v1458_v31, %v1454_v19  ;;  %v1460_v34 = vadd.f32 %v1459_v12, %v1407_v20  ;;  %3364 = vmatprep.subr.bf16.mxu0 %v8376_v39  ;;  %v8413_v19 = vld [vmem:[%s11602_s8 + $0x240] ss:$16 sps:$4 sm:$0xff]   ;;  %v8424_v20 = vld [vmem:[%s11602_s8 + $0x1a4] ss:$16 sps:$4 sm:$0xff]  }
 0x12b   : > { %2550 = vmatmul.mubr.bf16.vlgmr.msra.gmra.mxu1 %v9727_v40  ;;  %v8397_v40 = vld [vmem:[%s11602_s8 + $0x2a4] ss:$16 sps:$4 sm:$0xff]  }
 0x12c   : > { %v9979_v36 = vpack.c.bf16 %v1460_v34, %v1456_v28  ;;  %3414 = vmatpush1.bf16.msra.mxu1 %v8383_v52  ;;  %2559 = vmatprep.mubr.bf16.mxu1 %v9731_v41  ;;  %v8403_v41 = vld [vmem:[%s11602_s8 + $0x284] ss:$16 sps:$4 sm:$0xff]   ;;  %v8419_v28 = vld [vmem:[%s11602_s8 + $0x220] ss:$16 sps:$4 sm:$0xff]  }
 0x12d   : > { %3365 = vmatpush1.bf16.msra.mxu0 %v8374_v37  ;;  %3415 = vmatprep.subr.bf16.mxu1 %v8391_v45  ;;  %v8430_v43 = vld [vmem:[%s11602_s8 + $0x184] ss:$16 sps:$4 sm:$0xff]   ;;  %v8428_v52 = vld [vmem:[%s11602_s8 + $0x180] ss:$16 sps:$4 sm:$0xff]  }
 0x12e   : > { %3366 = vmatprep.subr.bf16.mxu0 %v8382_v48  ;;  %v8433_v37 = vld [vmem:[%s11602_s8 + $0x3e4] ss:$16 sps:$4 sm:$0xff]  }
 0x130   : > { %3416 = vmatpush1.bf16.msra.mxu1 %v8389_v59 }
 0x131   : > { %3367 = vmatpush1.bf16.msra.mxu0 %v8380_v49  ;;  %3417 = vmatprep.subr.bf16.mxu1 %v8397_v40  ;;  %v8439_v40 = vld [vmem:[%s11602_s8 + $0x3c4] ss:$16 sps:$4 sm:$0xff]  }
 0x132   : > { %3368 = vmatprep.subr.bf16.mxu0 %v8388_v50 }
 0x133   : > { %2560 = vmatmul.mubr.bf16.gmra.mxu1 %v9743_v51  ;;  %v8404_v51 = vld [vmem:[%s11602_s8] ss:$16 sps:$4 sm:$0xff]  }
 0x134   : > { %3418 = vmatpush1.bf16.msra.mxu1 %v8395_v63  ;;  %3445 = vmatprep.mubr.bf16.mxu1 %v10058_v1 }
 0x135   : > { %3369 = vmatpush1.bf16.msra.mxu0 %v8386_v58  ;;  %3419 = vmatprep.subr.bf16.mxu1 %v8403_v41  ;;  %v8436_v58 = vld [vmem:[%s11602_s8 + $0x164] ss:$16 sps:$4 sm:$0xff]   ;;  %v8434_v41 = vld [vmem:[%s11602_s8 + $0x160] ss:$16 sps:$4 sm:$0xff]  }
 0x136   : > { %3370 = vmatprep.subr.bf16.mxu0 %v8394_v54 }
 0x138   : > { %3420 = vmatpush1.bf16.msra.mxu1 %v8401_v3 }
 0x139   : > { %3371 = vmatpush1.bf16.msra.mxu0 %v8392_v61  ;;  %3421 = vmatprep.subr.bf16.mxu1 %v8409_v5  ;;  %v8442_v5 = vld [vmem:[%s11602_s8 + $0x144] ss:$16 sps:$4 sm:$0xff]  }
 0x13a   : > { %3372 = vmatprep.subr.bf16.mxu0 %v8400_v0 }
 0x13c   : > { %3422 = vmatpush1.bf16.msra.mxu1 %v8407_v7 }
 0x13d   : > { %3373 = vmatpush1.bf16.msra.mxu0 %v8398_v2  ;;  %3423 = vmatprep.subr.bf16.mxu1 %v8415_v9 }
 0x13e   : > { %3374 = vmatprep.subr.bf16.mxu0 %v8406_v4  ;;  %v8437_v4 = vld [vmem:[%s11602_s8 + $0x3c0] ss:$16 sps:$4 sm:$0xff]  }
 0x140   : > { %3424 = vmatpush1.bf16.msra.mxu1 %v8413_v19 }
 0x141   : > { %3375 = vmatpush1.bf16.msra.mxu0 %v8404_v51  ;;  %3425 = vmatprep.subr.bf16.mxu1 %v8421_v11  ;;  %v8443_v11 = vld [vmem:[%s11602_s8 + $0x3a0] ss:$16 sps:$4 sm:$0xff]  }
 0x142   : > { %3376 = vmatprep.subr.bf16.mxu0 %v8412_v8  ;;  %v8445_v8 = vld [vmem:[%s11602_s8 + $0x3a4] ss:$16 sps:$4 sm:$0xff]  }
 0x144   : > { %3426 = vmatpush1.bf16.msra.mxu1 %v8419_v28  ;;  %v8454_v28 = vld [vmem:[%s11602_s8 + $0x104] ss:$16 sps:$4 sm:$0xff]  }
 0x145   : > { %3377 = vmatpush2.bf16.msra.mxu0 %v8410_v17  ;;  %3427 = vmatprep.subr.bf16.mxu1 %v8427_v30  ;;  %v546_v30 = vld [vmem:[%s10011_s26 + $0x20] sm:$0xff] }
 0x146   : > { %3378 = vmatprep.subr.bf16.mxu0 %v8418_v22 }
 0x148   : > { %3428 = vmatpush1.bf16.msra.mxu1 %v8425_v38  ;;  %v8469_v38 = vld [vmem:[%s11602_s8 + $0x324] ss:$16 sps:$4 sm:$0xff]  }
 0x149   : > { %3379 = vmatpush2.bf16.msra.mxu0 %v8416_v26  ;;  %3429 = vmatprep.subr.bf16.mxu1 %v8433_v37  ;;  %v8446_v26 = vld [vmem:[%s11602_s8 + $0x120] ss:$16 sps:$4 sm:$0xff]   ;;  %v8475_v37 = vld [vmem:[%s11602_s8 + $0x304] ss:$16 sps:$4 sm:$0xff]  }
 0x14a   : > { %3380 = vmatprep.subr.bf16.mxu0 %v8424_v20  ;;  %v8457_v20 = vld [vmem:[%s11602_s8 + $0x364] ss:$16 sps:$4 sm:$0xff]  }
 0x14c   : > { %3430 = vmatpush2.bf16.msra.mxu1 %v8431_v56 }
 0x14d   : > { %3381 = vmatpush2.bf16.msra.mxu0 %v8422_v21  ;;  %3431 = vmatprep.subr.bf16.mxu1 %v8439_v40  ;;  %v8458_v21 = vld [vmem:[%s11602_s8 + $0xe8] ss:$16 sps:$4 sm:$0xff]  }
 0x14e   : > { %3382 = vmatprep.subr.bf16.mxu0 %v8430_v43  ;;  %v8464_v43 = vld [vmem:[%s11602_s8 + $0xc8] ss:$16 sps:$4 sm:$0xff]  }
 0x14f   : > { %v8482_v40 = vld [vmem:[%s11602_s8 + $0x68] ss:$16 sps:$4 sm:$0xff]  }
 0x150   : > { %3432 = vmatpush2.bf16.msra.mxu1 %v8437_v4  ;;  %v8494_v4 = vld [vmem:[%s11602_s8 + $0x28] ss:$16 sps:$4 sm:$0xff]  }
 0x151   : > { %3383 = vmatpush2.bf16.msra.mxu0 %v8428_v52  ;;  %3433 = vmatprep.subr.bf16.mxu1 %v8445_v8  ;;  %v548_v52 = vld [vmem:[%s10011_s26 + $0x30] sm:$0xff]  ;;  %v8500_v8 = vld [vmem:[%s11602_s8 + $0x8] ss:$16 sps:$4 sm:$0xff]  }
 0x152   : > { %3384 = vmatprep.subr.bf16.mxu0 %v8436_v58  ;;  %v8479_v58 = vld [vmem:[%s11602_s8 + $0x2e8] ss:$16 sps:$4 sm:$0xff]  }
 0x154   : > { %3434 = vmatpush2.bf16.msra.mxu1 %v8443_v11  ;;  %v8506_v11 = vld [vmem:[%s11602_s8 + $0x1e8] ss:$16 sps:$4 sm:$0xff]  }
 0x155   : > { %3385 = vmatpush2.bf16.msra.mxu0 %v8434_v41  ;;  %v8491_v41 = vld [vmem:[%s11602_s8 + $0x2a8] ss:$16 sps:$4 sm:$0xff]  }
 0x156   : > { %3386 = vmatprep.subr.bf16.mxu0 %v8442_v5  ;;  %v8497_v5 = vld [vmem:[%s11602_s8 + $0x288] ss:$16 sps:$4 sm:$0xff]  }
 0x158   : > { %v1496_v24 = vpop.f32.mrf.mxu0 }
 0x159   : > { %v1549_v25 = vpop.f32.mrf.mxu1  ;;  %v1497_v27 = vadd.f32 %v1496_v24, %v707_v18  ;;  %v8451_v24 = vld [vmem:[%s11602_s8 + $0x384] ss:$16 sps:$4 sm:$0xff]  }
 0x15a   : > { %v1498_v16 = vpop.f32.mrf.mxu0  ;;  %3435 = vmatprep.subr.bf16.mxu1 %v8451_v24  ;;  %v8509_v24 = vld [vmem:[%s11602_s8 + $0x248] ss:$16 sps:$4 sm:$0xff]  }
 0x15b   : > { %v1551_v29 = vpop.f32.mrf.mxu1  ;;  %v1550_v31 = vadd.f32 %v1549_v25, %v1497_v27  ;;  %v1499_v32 = vadd.f32 %v1498_v16, %v10108_v23  ;;  %v8449_v27 = vld [vmem:[%s11602_s8 + $0x380] ss:$16 sps:$4 sm:$0xff]  }
 0x15c   : > { %v1500_v12 = vpop.f32.mrf.mxu0  ;;  %v8452_v16 = vld [vmem:[%s11602_s8 + $0x100] ss:$16 sps:$4 sm:$0xff]   ;;  %3436 = vmatpush2.bf16.msra.mxu1 %v8449_v27 }
 0x15d   : > { %v1553_v13 = vpop.f32.mrf.mxu1  ;;  %v1552_v34 = vadd.f32 %v1551_v29, %v1499_v32  ;;  %v1501_v35 = vadd.f32 %v1500_v12, %v707_v18  ;;  %v542_v29 = vld [vmem:[%s10011_s26] sm:$0xff]  ;;  %v8460_v32 = vld [vmem:[%s11602_s8 + $0xec] ss:$16 sps:$4 sm:$0xff]   ;;  %3437 = vmatprep.subr.bf16.mxu1 %v8457_v20 }
 0x15e   : > { %v1502_v39 = vpop.f32.mrf.mxu0  ;;  %v8463_v12 = vld [vmem:[%s11602_s8 + $0x344] ss:$16 sps:$4 sm:$0xff]  }
 0x15f   : > { %v1555_v44 = vpop.f32.mrf.mxu1  ;;  %v1554_v47 = vadd.f32 %v1553_v13, %v1501_v35  ;;  %v1503_v48 = vadd.f32 %v1502_v39, %v10108_v23  ;;  %v10208_v13 = vpack.c.bf16 %v546_v30, %v542_v29  ;;  %v8466_v35 = vld [vmem:[%s11602_s8 + $0xcc] ss:$16 sps:$4 sm:$0xff]   ;;  %v8467_v39 = vld [vmem:[%s11602_s8 + $0x320] ss:$16 sps:$4 sm:$0xff]   ;;  %v8515_v30 = vld [vmem:[%s11602_s8 + $0x228] ss:$16 sps:$4 sm:$0xff]  }
 0x160   : > { %v1506_v42 = vpop.f32.mrf.mxu0  ;;  %v8514_v29 = vld [vmem:[%s11602_s8 + $0x1cc] ss:$16 sps:$4 sm:$0xff]  }
 0x161   : > { %v1559_v49 = vpop.f32.mrf.mxu1  ;;  %v10139_v50 = vpack.c.bf16 %v1554_v47, %v1550_v31  ;;  %v1556_v45 = vadd.f32 %v1555_v44, %v1503_v48  ;;  %v1507_v46 = vadd.f32 %v1506_v42, %v707_v18  ;;  %v8455_v31 = vld [vmem:[%s11602_s8 + $0x360] ss:$16 sps:$4 sm:$0xff]   ;;  %v8472_v44 = vld [vmem:[%s11602_s8 + $0xac] ss:$16 sps:$4 sm:$0xff]   ;;  %v8470_v47 = vld [vmem:[%s11602_s8 + $0xa8] ss:$16 sps:$4 sm:$0xff]  }
 0x162   : > { %v1508_v59 = vpop.f32.mrf.mxu0  ;;  %3438 = vmatpush2.bf16.msra.mxu1 %v8455_v31  ;;  %v8473_v48 = vld [vmem:[%s11602_s8 + $0x300] ss:$16 sps:$4 sm:$0xff]   ;;  %v8478_v42 = vld [vmem:[%s11602_s8 + $0x8c] ss:$16 sps:$4 sm:$0xff]  }
 0x163   : > { %v1561_v54 = vpop.f32.mrf.mxu1  ;;  %v10150_v60 = vpack.c.bf16 %v1556_v45, %v1552_v34  ;;  %v1509_v61 = vadd.f32 %v1508_v59, %v10108_v23  ;;  %v1560_v62 = vadd.f32 %v1559_v49, %v1507_v46  ;;  %v8461_v34 = vld [vmem:[%s11602_s8 + $0x340] ss:$16 sps:$4 sm:$0xff]   ;;  %3439 = vmatprep.subr.bf16.mxu1 %v8463_v12  ;;  %v8481_v45 = vld [vmem:[%s11602_s8 + $0x2ec] ss:$16 sps:$4 sm:$0xff]   ;;  %v8476_v46 = vld [vmem:[%s11602_s8 + $0x88] ss:$16 sps:$4 sm:$0xff]  }
 0x164   : > { %v1510_v63 = vpop.f32.mrf.mxu0  ;;  %v544_v49 = vld [vmem:[%s10011_s26 + $0x10] sm:$0xff]  ;;  %v8484_v59 = vld [vmem:[%s11602_s8 + $0x6c] ss:$16 sps:$4 sm:$0xff]  }
 0x165   : > { %v1563_v0 = vpop.f32.mrf.mxu1  ;;  %v1511_v2 = vadd.f32 %v1510_v63, %v707_v18  ;;  %v1562_v3 = vadd.f32 %v1561_v54, %v1509_v61  ;;  %v8440_v18 = vld [vmem:[%s11602_s8 + $0x140] ss:$16 sps:$4 sm:$0xff]   ;;  %v10252_v56 = vpack.c.bf16 %v548_v52, %v544_v49  ;;  %v8487_v54 = vld [vmem:[%s11602_s8 + $0x2cc] ss:$16 sps:$4 sm:$0xff]   ;;  %v8485_v61 = vld [vmem:[%s11602_s8 + $0x2c8] ss:$16 sps:$4 sm:$0xff]  }
 0x166   : > { %v1512_v51 = vpop.f32.mrf.mxu0  ;;  %3387 = vmatpush2.bf16.msra.mxu0 %v8440_v18  ;;  %3440 = vmatpush2.bf16.msra.mxu1 %v8461_v34  ;;  %v8493_v63 = vld [vmem:[%s11602_s8 + $0x2ac] ss:$16 sps:$4 sm:$0xff]   ;;  %v10312_v18 = vld [vmem:[%s11601_s7] sm:$0xf] }
 0x167   : > { %v1565_v7 = vpop.f32.mrf.mxu1  ;;  %v1513_v9 = vadd.f32 %v1512_v51, %v10108_v23  ;;  %v1564_v17 = vadd.f32 %v1563_v0, %v1511_v2  ;;  %v8448_v23 = vld [vmem:[%s11602_s8 + $0x124] ss:$16 sps:$4 sm:$0xff]   ;;  %3441 = vmatprep.subr.bf16.mxu1 %v8469_v38  ;;  %v8488_v0 = vld [vmem:[%s11602_s8 + $0x48] ss:$16 sps:$4 sm:$0xff]   ;;  %v8496_v2 = vld [vmem:[%s11602_s8 + $0x2c] ss:$16 sps:$4 sm:$0xff]  }
 0x168   : > { %3388 = vmatprep.subr.bf16.mxu0 %v8448_v23  ;;  %v8502_v51 = vld [vmem:[%s11602_s8 + $0xc] ss:$16 sps:$4 sm:$0xff]   ;;  %v1701_v23 = vrot.slane %v10312_v18, %v9830_v14 }
 0x169   : > { %v10169_v19 = vpack.c.bf16 %v1564_v17, %v1560_v62  ;;  %v1566_v22 = vadd.f32 %v1565_v7, %v1513_v9  ;;  %v8490_v62 = vld [vmem:[%s11602_s8 + $0x4c] ss:$16 sps:$4 sm:$0xff]   ;;  %v8503_v9 = vld [vmem:[%s11602_s8 + $0x268] ss:$16 sps:$4 sm:$0xff]  }
 0x16a   : > { %3389 = vmatpush2.bf16.msra.mxu0 %v8446_v26  ;;  %3442 = vmatpush2.bf16.msra.mxu1 %v8467_v39  ;;  %v8505_v7 = vld [vmem:[%s11602_s8 + $0x26c] ss:$16 sps:$4 sm:$0xff]   ;;  %v10327_v26 = vrot.slane %v10312_v18, %v9833_v15 }
 0x16b   : > { %v10180_v25 = vpack.c.bf16 %v1566_v22, %v1562_v3  ;;  %3390 = vmatprep.subr.bf16.mxu0 %v8454_v28  ;;  %3443 = vmatprep.subr.bf16.mxu1 %v8475_v37  ;;  %v8499_v3 = vld [vmem:[%s11602_s8 + $0x28c] ss:$16 sps:$4 sm:$0xff]  }
 0x16c   : > { %v8508_v17 = vld [vmem:[%s11602_s8 + $0x1ec] ss:$16 sps:$4 sm:$0xff]  }
 0x16d   : > { %v8511_v22 = vld [vmem:[%s11602_s8 + $0x24c] ss:$16 sps:$4 sm:$0xff]  }
 0x16e   : > { %3391 = vmatpush2.bf16.msra.mxu0 %v8452_v16  ;;  %3444 = vmatpush2.bf16.msra.mxu1 %v8473_v48  ;;  %v8512_v16 = vld [vmem:[%s11602_s8 + $0x1c8] ss:$16 sps:$4 sm:$0xff]   ;;  %v8517_v12 = vld [vmem:[%s11602_s8 + $0x22c] ss:$16 sps:$4 sm:$0xff]  }
 0x16f   : > { %3466 = vmatprep.subr.bf16.mxu0 %v8460_v32  ;;  %3519 = vmatprep.subr.bf16.mxu1 %v8481_v45  ;;  %v8518_v48 = vld [vmem:[%s11602_s8 + $0x1a8] ss:$16 sps:$4 sm:$0xff]   ;;  %v8523_v49 = vld [vmem:[%s11602_s8 + $0x20c] ss:$16 sps:$4 sm:$0xff]  }
 0x171   : > { %3393 = vmatmul.mubr.bf16.vlgmr.msra.gmra.mxu0 %v10208_v13  ;;  %3446 = vmatmul.mubr.bf16.vlgmr.msra.gmra.mxu1 %v10252_v56 }
 0x172   : > { %3467 = vmatpush1.bf16.msra.mxu0 %v8458_v21  ;;  %3520 = vmatpush1.bf16.msra.mxu1 %v8479_v58 }
 0x173   : > { %3468 = vmatprep.subr.bf16.mxu0 %v8466_v35  ;;  %3521 = vmatprep.subr.bf16.mxu1 %v8487_v54 }
 0x176   : > { %3469 = vmatpush1.bf16.msra.mxu0 %v8464_v43  ;;  %3522 = vmatpush1.bf16.msra.mxu1 %v8485_v61  ;;  %v8526_v61 = vld [vmem:[%s11602_s8 + $0x18c] ss:$16 sps:$4 sm:$0xff]  }
 0x177   : > { %3470 = vmatprep.subr.bf16.mxu0 %v8472_v44  ;;  %3523 = vmatprep.subr.bf16.mxu1 %v8493_v63  ;;  %v8520_v44 = vld [vmem:[%s11602_s8 + $0x1ac] ss:$16 sps:$4 sm:$0xff]  }
 0x17a   : > { %3471 = vmatpush1.bf16.msra.mxu0 %v8470_v47  ;;  %3524 = vmatpush1.bf16.msra.mxu1 %v8491_v41  ;;  %v8529_v41 = vld [vmem:[%s11602_s8 + $0x3ec] ss:$16 sps:$4 sm:$0xff]  }
 0x17b   : > { %3472 = vmatprep.subr.bf16.mxu0 %v8478_v42  ;;  %3525 = vmatprep.subr.bf16.mxu1 %v8499_v3  ;;  %v8521_v42 = vld [vmem:[%s11602_s8 + $0x208] ss:$16 sps:$4 sm:$0xff]  }
 0x17e   : > { %3473 = vmatpush1.bf16.msra.mxu0 %v8476_v46  ;;  %3526 = vmatpush1.bf16.msra.mxu1 %v8497_v5 }
 0x17f   : > { %3474 = vmatprep.subr.bf16.mxu0 %v8484_v59  ;;  %3527 = vmatprep.subr.bf16.mxu1 %v8505_v7  ;;  %v8532_v7 = vld [vmem:[%s11602_s8 + $0x16c] ss:$16 sps:$4 sm:$0xff]  }
 0x182   : > { %3475 = vmatpush1.bf16.msra.mxu0 %v8482_v40  ;;  %3528 = vmatpush1.bf16.msra.mxu1 %v8503_v9  ;;  %v8524_v40 = vld [vmem:[%s11602_s8 + $0x188] ss:$16 sps:$4 sm:$0xff]  }
 0x183   : > { %3476 = vmatprep.subr.bf16.mxu0 %v8490_v62  ;;  %3529 = vmatprep.subr.bf16.mxu1 %v8511_v22  ;;  %v8527_v62 = vld [vmem:[%s11602_s8 + $0x3e8] ss:$16 sps:$4 sm:$0xff]   ;;  %v8535_v22 = vld [vmem:[%s11602_s8 + $0x3cc] ss:$16 sps:$4 sm:$0xff]  }
 0x184   : > { %v8530_v9 = vld [vmem:[%s11602_s8 + $0x168] ss:$16 sps:$4 sm:$0xff]  }
 0x186   : > { %3477 = vmatpush1.bf16.msra.mxu0 %v8488_v0  ;;  %3530 = vmatpush1.bf16.msra.mxu1 %v8509_v24  ;;  %v8538_v24 = vld [vmem:[%s11602_s8 + $0x14c] ss:$16 sps:$4 sm:$0xff]  }
 0x187   : > { %3478 = vmatprep.subr.bf16.mxu0 %v8496_v2  ;;  %3531 = vmatprep.subr.bf16.mxu1 %v8517_v12  ;;  %v8544_v12 = vld [vmem:[%s11602_s8 + $0x12c] ss:$16 sps:$4 sm:$0xff]  }
 0x18a   : > { %3479 = vmatpush1.bf16.msra.mxu0 %v8494_v4  ;;  %3532 = vmatpush1.bf16.msra.mxu1 %v8515_v30  ;;  %v550_v30 = vld [vmem:[%s10011_s26 + $0x40] sm:$0xff] }
 0x18b   : > { %3480 = vmatprep.subr.bf16.mxu0 %v8502_v51  ;;  %3533 = vmatprep.subr.bf16.mxu1 %v8523_v49  ;;  %v557_v49 = vld [vmem:[%s10011_s26 + $0x78] sm:$0xff] }
 0x18e   : > { %3481 = vmatpush1.bf16.msra.mxu0 %v8500_v8  ;;  %3534 = vmatpush1.bf16.msra.mxu1 %v8521_v42  ;;  %v553_v42 = vld [vmem:[%s10011_s26 + $0x58] sm:$0xff] }
 0x18f   : > { %3482 = vmatprep.subr.bf16.mxu0 %v8508_v17  ;;  %3535 = vmatprep.subr.bf16.mxu1 %v8529_v41  ;;  %v8533_v17 = vld [vmem:[%s11602_s8 + $0x3c8] ss:$16 sps:$4 sm:$0xff]   ;;  %v1709_v41 = vrot.slane %v10312_v18, %v10078_v6 }
 0x192   : > { %3483 = vmatpush2.bf16.msra.mxu0 %v8506_v11  ;;  %3536 = vmatpush2.bf16.msra.mxu1 %v8527_v62 }
 0x193   : > { %3484 = vmatprep.subr.bf16.mxu0 %v8514_v29  ;;  %3537 = vmatprep.subr.bf16.mxu1 %v8535_v22 }
 0x196   : > { %3485 = vmatpush2.bf16.msra.mxu0 %v8512_v16  ;;  %3538 = vmatpush2.bf16.msra.mxu1 %v8533_v17  ;;  %v555_v16 = vld [vmem:[%s10011_s26 + $0x68] sm:$0xff] }
 0x197   : > { %3486 = vmatprep.subr.bf16.mxu0 %v8520_v44  ;;  %v8551_v44 = vld [vmem:[%s11602_s8 + $0x368] ss:$16 sps:$4 sm:$0xff]  }
 0x198   : > { %v2392_v27 = vpop.f32.mrf.mxu0 }
 0x199   : > { %v2445_v28 = vpop.f32.mrf.mxu1  ;;  %v2393_v20 = vadd.f32 %v2392_v27, %v1701_v23  ;;  %v8539_v27 = vld [vmem:[%s11602_s8 + $0x3a8] ss:$16 sps:$4 sm:$0xff]  }
 0x19a   : > { %v2394_v31 = vpop.f32.mrf.mxu0  ;;  %3487 = vmatpush2.bf16.msra.mxu0 %v8518_v48  ;;  %v8556_v48 = vld [vmem:[%s11602_s8 + $0x34c] ss:$16 sps:$4 sm:$0xff]  }
 0x19b   : > { %v2447_v32 = vpop.f32.mrf.mxu1  ;;  %v2395_v21 = vadd.f32 %v2394_v31, %v10327_v26  ;;  %v2446_v34 = vadd.f32 %v2445_v28, %v2393_v20  ;;  %3488 = vmatprep.subr.bf16.mxu0 %v8526_v61  ;;  %v8541_v28 = vld [vmem:[%s11602_s8 + $0x3ac] ss:$16 sps:$4 sm:$0xff]   ;;  %v554_v31 = vld [vmem:[%s10011_s26 + $0x60] sm:$0xff] }
 0x19c   : > { %v2396_v35 = vpop.f32.mrf.mxu0  ;;  %v551_v20 = vld [vmem:[%s10011_s26 + $0x48] sm:$0xff]  ;;  %3539 = vmatprep.subr.bf16.mxu1 %v8541_v28 }
 0x19d   : > { %v2449_v38 = vpop.f32.mrf.mxu1  ;;  %v10342_v43 = vadd.f32 %v2447_v32, %v2395_v21  ;;  %v2397_v39 = vadd.f32 %v2396_v35, %v1701_v23  ;;  %3588 = vxpose.xlu0.b32.start [1/4] (short) %v2446_v34, 128  ;;  %v563_v29 = vpack.c.bf16 %v555_v16, %v551_v20  ;;  %3540 = vmatpush2.bf16.msra.mxu1 %v8539_v27  ;;  %v8542_v21 = vld [vmem:[%s11602_s8 + $0x128] ss:$16 sps:$4 sm:$0xff]   ;;  %v8547_v35 = vld [vmem:[%s11602_s8 + $0x38c] ss:$16 sps:$4 sm:$0xff]  }
 0x19e   : > { %v2398_v37 = vpop.f32.mrf.mxu0  ;;  %3489 = vmatpush2.bf16.msra.mxu0 %v8524_v40  ;;  %v562_v32 = vpack.c.bf16 %v554_v31, %v550_v30  ;;  %v8545_v34 = vld [vmem:[%s11602_s8 + $0x388] ss:$16 sps:$4 sm:$0xff]   ;;  %3541 = vmatprep.subr.bf16.mxu1 %v8547_v35  ;;  %v8562_v61 = vld [vmem:[%s11602_s8 + $0x30c] ss:$16 sps:$4 sm:$0xff]  }
 0x19f   : > { %v2451_v47 = vpop.f32.mrf.mxu1  ;;  %v2450_v52 = vadd.f32 %v2449_v38, %v2397_v39  ;;  %v2399_v45 = vadd.f32 %v2398_v37, %v10327_v26  ;;  %3490 = vmatprep.subr.bf16.mxu0 %v8532_v7  ;;  %3402 = vmatprep.mubr.bf16.mxu0 %v563_v29  ;;  %v8548_v38 = vld [vmem:[%s11602_s8 + $0x108] ss:$16 sps:$4 sm:$0xff]   ;;  %v8550_v39 = vld [vmem:[%s11602_s8 + $0x10c] ss:$16 sps:$4 sm:$0xff]  }
 0x1a0   : > { %v2402_v46 = vpop.f32.mrf.mxu0  ;;  %3403 = vmatmul.mubr.bf16.gmra.mxu0 %v562_v32  ;;  %v8553_v37 = vld [vmem:[%s11602_s8 + $0x36c] ss:$16 sps:$4 sm:$0xff]   ;;  %v8560_v40 = vld [vmem:[%s11602_s8 + $0x308] ss:$16 sps:$4 sm:$0xff]  }
 0x1a1   : > { %v2455_v58 = vpop.f32.mrf.mxu1  ;;  %v10357_v59 = vadd.f32 %v2451_v47, %v2399_v45  ;;  %v2403_v54 = vadd.f32 %v2402_v46, %v1701_v23  ;;  %3589 = vxpose.xlu0.b32.cont [2/4] (short) %v2450_v52, 128  ;;  %3542 = vmatpush2.bf16.msra.mxu1 %v8545_v34  ;;  %v8554_v47 = vld [vmem:[%s11602_s8 + $0x348] ss:$16 sps:$4 sm:$0xff]   ;;  %v565_v52 = vpack.c.bf16 %v557_v49, %v553_v42  ;;  %v552_v45 = vld [vmem:[%s10011_s26 + $0x50] sm:$0xff] }
 0x1a2   : > { %v2404_v63 = vpop.f32.mrf.mxu0  ;;  %3491 = vmatpush2.bf16.msra.mxu0 %v8530_v9  ;;  %3498 = vmatprep.mubr.bf16.mxu0 %v10027_v57  ;;  %v11610_v57 = vmov 0.0   ;;  %v556_v46 = vld [vmem:[%s10011_s26 + $0x70] sm:$0xff]  ;;  %s8887_s26 = sshll.u32 %s8949_s19, 4  ;;  %s8888_s26 = int_to_ptr.vmem [resolvable:$false] %s8887_s26 }
 0x1a3   : > { %v2457_v0 = vpop.f32.mrf.mxu1  ;;  %v2456_v2 = vadd.f32 %v2455_v58, %v2403_v54  ;;  %v2405_v3 = vadd.f32 %v2404_v63, %v10327_v26  ;;  %3492 = vmatprep.subr.bf16.mxu0 %v8538_v24  ;;  %3543 = vmatprep.subr.bf16.mxu1 %v8553_v37  ;;  %v8557_v58 = vld [vmem:[%s11602_s8 + $0x328] ss:$16 sps:$4 sm:$0xff]   ;;  %v564_v54 = vpack.c.bf16 %v556_v46, %v552_v45  ;;  %s8889_s28 = scalar_lea.vmem %s8888_s26, 4096 }
 0x1a4   : > { %v2406_v4 = vpop.f32.mrf.mxu0  ;;  %3455 = vmatprep.mubr.bf16.mxu1 %v565_v52 }
 0x1a5   : > { %v10372_v5 = vadd.f32 %v2457_v0, %v2405_v3  ;;  %v2407_v51 = vadd.f32 %v2406_v4, %v1701_v23  ;;  %3590 = vxpose.xlu0.b32.cont [3/4] (short) %v2456_v2, 128  ;;  %v2459_v8 = vpop.f32.mrf.mxu1  ;;  %v8536_v23 = vld [vmem:[%s11602_s8 + $0x148] ss:$16 sps:$4 sm:$0xff]   ;;  %3544 = vmatpush2.bf16.msra.mxu1 %v8551_v44 }
 0x1a6   : > { %3493 = vmatpush2.bf16.msra.mxu0 %v8536_v23  ;;  %3545 = vmatprep.subr.bf16.mxu1 %v8556_v48 }
 0x1a7   : > { %v2460_v11 = vadd.f32 %v2459_v8, %v2407_v51  ;;  %3494 = vmatprep.subr.bf16.mxu0 %v8544_v12  ;;  %3456 = vmatmul.mubr.bf16.gmra.mxu1 %v564_v54  ;;  %v10464_v51 = vpop.f32.mrf.mxu1 }
 0x1a8   : > { %3551 = vmatprep.mubr.bf16.mxu1 %v10058_v1  ;;  %v10458_v1 = vpop.f32.mrf.mxu0 }
 0x1a9   : > { %3591 = vxpose.xlu0.b32.end [4/4] (short) %v2460_v11, 128  ;;  %3546 = vmatpush2.bf16.msra.mxu1 %v8554_v47 }
 0x1aa   : > { %3495 = vmatpush2.bf16.msra.mxu0 %v8542_v21 }
 0x1ab   : > { %3496 = vmatprep.subr.bf16.mxu0 %v8550_v39 }
 0x1ae   : > { %3497 = vmatpush2.bf16.msra.mxu0 %v8548_v38 }
 0x1af   : > { %7654 = vmatprep.subr.bf16.mxu0 %v11610_v57 }
 0x1b1   : > { %3499 = vmatmul.mubr.bf16.vlgmr.msra.gmra.mxu0 %v10208_v13  ;;  %v8559_v13 = vld [vmem:[%s11602_s8 + $0x32c] ss:$16 sps:$4 sm:$0xff]  }
 0x1b2   : > { %3508 = vmatprep.mubr.bf16.mxu0 %v563_v29  ;;  %3547 = vmatprep.subr.bf16.mxu1 %v8559_v13 }
 0x1b3   : > { %3548 = vmatpush2.bf16.msra.mxu1 %v8557_v58 }
 0x1b4   : > { %3549 = vmatprep.subr.bf16.mxu1 %v8562_v61 }
 0x1b7   : > { %3550 = vmatpush2.bf16.msra.mxu1 %v8560_v40 }
 0x1b8   : > { %7666 = vmatprep.subr.bf16.mxu1 %v11610_v57 }
 0x1b9   : > { %3509 = vmatmul.mubr.bf16.gmra.mxu0 %v562_v32 }
 0x1ba   : > { %3552 = vmatmul.mubr.bf16.vlgmr.msra.gmra.mxu1 %v10252_v56  ;;  %7662 = vmatprep.mubr.msk.bf16.mxu0 %vm8947_vm0, %v11610_v57  ;;  %v1713_v56 = vrot.slane %v10312_v18, %v10090_v10 }
 0x1bb   : > { %3561 = vmatprep.mubr.bf16.mxu1 %v565_v52 }
 0x1c2   : > { %3562 = vmatmul.mubr.bf16.gmra.mxu1 %v564_v54 }
 0x1c3   : > { %7668 = vmatprep.mubr.msk.bf16.mxu1 %vm8947_vm0, %v11610_v57 }
 0x1dd   : > { %v2498_v62 = vpop.f32.mrf.mxu0 }
 0x1de   : > { %v2499_v4 = vadd.f32 %v2498_v62, %v1709_v41  ;;  %v10492_v62 = vld [vmem:[%s11603_s9] sm:$0xf] }
 0x1df   : > { %v2500_v63 = vpop.f32.mrf.mxu0 }
 0x1e0   : > { %v2501_v7 = vadd.f32 %v2500_v63, %v1713_v56 }
 0x1e1   : > { %v2502_v0 = vpop.f32.mrf.mxu0 }
 0x1e2   : > { %v2503_v22 = vadd.f32 %v2502_v0, %v1709_v41 }
 0x1e3   : > { %v2504_v2 = vpop.f32.mrf.mxu0 }
 0x1e4   : > { %v2505_v24 = vadd.f32 %v2504_v2, %v1713_v56  ;;  %v2703_v2 = vrot.slane %v10492_v62, %v9830_v14 }
 0x1e5   : > { %v2508_v3 = vpop.f32.mrf.mxu0 }
 0x1e6   : > { %v2509_v16 = vadd.f32 %v2508_v3, %v1709_v41 }
 0x1e7   : > { %v2510_v9 = vpop.f32.mrf.mxu0 }
 0x1e8   : > { %v2511_v30 = vadd.f32 %v2510_v9, %v1713_v56 }
 0x1e9   : > { %v2512_v28 = vpop.f32.mrf.mxu0 }
 0x1ea   : > { %v2513_v21 = vadd.f32 %v2512_v28, %v1709_v41 }
 0x1eb   : > { %v2551_v8 = vpop.f32.mrf.mxu1  ;;  %v2514_v32 = vpop.f32.mrf.mxu0 }
 0x1ec   : > { %v10466_v17 = vadd.f32 %v2551_v8, %v2499_v4  ;;  %v2515_v38 = vadd.f32 %v2514_v32, %v1713_v56 }
 0x1ed   : > { %v2553_v11 = vpop.f32.mrf.mxu1 }
 0x1ee   : > { %v10468_v23 = vadd.f32 %v2553_v11, %v2501_v7 }
 0x1ef   : > { %v2555_v27 = vpop.f32.mrf.mxu1 }
 0x1f0   : > { %v10470_v20 = vadd.f32 %v2555_v27, %v2503_v22 }
 0x1f1   : > { %v2557_v18 = vpop.f32.mrf.mxu1 }
 0x1f2   : > { %v10472_v29 = vadd.f32 %v2557_v18, %v2505_v24 }
 0x1f3   : > { %v2561_v31 = vpop.f32.mrf.mxu1 }
 0x1f4   : > { %v10474_v12 = vadd.f32 %v2561_v31, %v2509_v16 }
 0x1f5   : > { %v2563_v34 = vpop.f32.mrf.mxu1 }
 0x1f6   : > { %v10476_v35 = vadd.f32 %v2563_v34, %v2511_v30 }
 0x1f7   : > { %v2565_v39 = vpop.f32.mrf.mxu1 }
 0x1f8   : > { %v10478_v44 = vadd.f32 %v2565_v39, %v2513_v21 }
 0x1f9   : > { %v2567_v37 = vpop.f32.mrf.mxu1 }
 0x1fa   : > { %v10480_v47 = vadd.f32 %v2567_v37, %v2515_v38 }
 0x219   : > { %v3604_v48 = vpop.trf.xlu0 }
 0x21d   : > { %v3605_v42 = vpop.trf.xlu0 }
 0x21e   : > { %v10501_v4 = vpack.c.bf16 %v3605_v42, %v3604_v48 }
 0x221   : > { %v3606_v49 = vpop.trf.xlu0 }
 0x225   : > { %v3607_v52 = vpop.trf.xlu0 }
 0x226   : > { %v10495_v41 = vpack.c.bf16 %v3607_v52, %v3606_v49 }
 0x229   : > { %v3608_v45 = vpop.trf.xlu0 }
 0x22d   : > { %v3609_v46 = vpop.trf.xlu0 }
 0x22e   : > { %v10486_v61 = vpack.c.bf16 %v3609_v46, %v3608_v45 }
 0x231   : > { %v3610_v58 = vpop.trf.xlu0  ;;  %v3394_v63 = vpop.f32.mrf.mxu0 }
 0x232   : > { %v3395_v7 = vadd.f32 %v3394_v63, %v2703_v2  ;;  %v3447_v8 = vpop.f32.mrf.mxu1 }
 0x233   : > { %v3396_v56 = vpop.f32.mrf.mxu0 }
 0x234   : > { %v3449_v24 = vpop.f32.mrf.mxu1  ;;  %v3448_v27 = vadd.f32 %v3447_v8, %v3395_v7  ;;  %v2711_v8 = vrot.slane %v10492_v62, %v10078_v6 }
 0x235   : > { %v3611_v54 = vpop.trf.xlu0  ;;  %v3398_v9 = vpop.f32.mrf.mxu0 }
 0x236   : > { %v10482_v13 = vpack.c.bf16 %v3611_v54, %v3610_v58  ;;  %v3399_v11 = vadd.f32 %v3398_v9, %v2703_v2  ;;  %v3451_v28 = vpop.f32.mrf.mxu1  ;;  %v3867_v54 = vpop.permute.xlu1 %3866 }
 0x237   : > { %v3400_v38 = vpop.f32.mrf.mxu0 }
 0x238   : > { %7655 = vmatpush3.bf16.msra.mxu0 %v10482_v13  ;;  %v3452_v18 = vadd.f32 %v3451_v28, %v3399_v11  ;;  %v3453_v42 = vpop.f32.mrf.mxu1  ;;  %v2715_v11 = vrot.slane %v10492_v62, %v10090_v10 }
 0x239   : > { %v3612_v40 = vpop.trf.xlu0  ;;  %7656 = vmatprep.subr.bf16.mxu0 %v11610_v57 }
 0x23a   : > { %v10509_v30 = vpack.c.bf16 %v3452_v18, %v3448_v27 }
 0x23c   : > { %7657 = vmatpush3.bf16.msra.mxu0 %v10486_v61  ;;  %7667 = vmatpush3.bf16.msra.mxu1 %v10509_v30 }
 0x23d   : > { %v3613_v0 = vpop.trf.xlu0  ;;  %7658 = vmatprep.subr.bf16.mxu0 %v11610_v57  ;;  %7684 = vmatprep.subr.bf16.mxu1 %v11610_v57 }
 0x23e   : > { %v10527_v46 = vpack.c.bf16 %v3613_v0, %v3612_v40 }
 0x240   : > { %7659 = vmatpush3.bf16.msra.mxu0 %v10495_v41 }
 0x241   : > { %v3614_v3 = vpop.trf.xlu0  ;;  %7660 = vmatprep.subr.bf16.mxu0 %v11610_v57 }
 0x244   : > { %7661 = vmatpush3.bf16.msra.mxu0 %v10501_v4 }
 0x245   : > { %v3615_v22 = vpop.trf.xlu0  ;;  %7672 = vmatprep.subr.bf16.mxu0 %v11610_v57 }
 0x246   : > { %v10523_v49 = vpack.c.bf16 %v3615_v22, %v3614_v3 }
 0x247   : > { %7663 = vmatmul.mubr.msk.bf16.vlgmr.msra.gmra.mxu0 %vm3750_vm1, %v9888_v55  ;;  %v2707_v55 = vrot.slane %v10492_v62, %v9833_v15 }
 0x248   : > { %7680 = vmatprep.mubr.msk.bf16.mxu0 %vm8947_vm0, %v11610_v57 }
 0x249   : > { %v3616_v16 = vpop.trf.xlu0  ;;  %v3397_v37 = vadd.f32 %v3396_v56, %v2707_v55  ;;  %v3401_v48 = vadd.f32 %v3400_v38, %v2707_v55 }
 0x24b   : > { %v3450_v52 = vadd.f32 %v3449_v24, %v3397_v37  ;;  %v3454_v45 = vadd.f32 %v3453_v42, %v3401_v48 }
 0x24d   : > { %v3617_v31 = vpop.trf.xlu0  ;;  %v10530_v58 = vpack.c.bf16 %v3454_v45, %v3450_v52 }
 0x24e   : > { %v10519_v39 = vpack.c.bf16 %v3617_v31, %v3616_v16 }
 0x251   : > { %v3618_v32 = vpop.trf.xlu0 }
 0x255   : > { %v3619_v21 = vpop.trf.xlu0 }
 0x256   : > { %v10513_v34 = vpack.c.bf16 %v3619_v21, %v3618_v32 }
 0x258   : > { %7673 = vmatpush3.bf16.msra.mxu0 %v10513_v34 }
 0x259   : > { %7674 = vmatprep.subr.bf16.mxu0 %v11610_v57 }
 0x25c   : > { %7675 = vmatpush3.bf16.msra.mxu0 %v10519_v39 }
 0x25d   : > { %7676 = vmatprep.subr.bf16.mxu0 %v11610_v57 }
 0x260   : > { %7677 = vmatpush3.bf16.msra.mxu0 %v10523_v49  ;;  %v3404_v63 = vpop.f32.mrf.mxu0 }
 0x261   : > { %7678 = vmatprep.subr.bf16.mxu0 %v11610_v57  ;;  %v3405_v56 = vadd.f32 %v3404_v63, %v2703_v2 }
 0x262   : > { %v3406_v40 = vpop.f32.mrf.mxu0 }
 0x263   : > { %v3407_v0 = vadd.f32 %v3406_v40, %v2707_v55 }
 0x264   : > { %7679 = vmatpush3.bf16.msra.mxu0 %v10527_v46  ;;  %v3408_v3 = vpop.f32.mrf.mxu0 }
 0x265   : > { %7702 = vmatprep.subr.bf16.mxu0 %v11610_v57  ;;  %v3409_v7 = vadd.f32 %v3408_v3, %v2703_v2 }
 0x266   : > { %v3410_v9 = vpop.f32.mrf.mxu0 }
 0x267   : > { %7681 = vmatmul.mubr.msk.bf16.vlgmr.msra.gmra.mxu0 %vm3750_vm1, %v3867_v54  ;;  %v3411_v22 = vadd.f32 %v3410_v9, %v2707_v55  ;;  %v3457_v32 = vpop.f32.mrf.mxu1 }
 0x268   : > { %7703 = vmatpush3.bf16.msra.mxu0 %v10530_v58  ;;  %7704 = vmatprep.mubr.msk.bf16.mxu0 %vm8947_vm0, %v11610_v57  ;;  %v3458_v21 = vadd.f32 %v3457_v32, %v3405_v56 }
 0x269   : > { %7708 = vmatprep.subr.bf16.mxu0 %v11610_v57  ;;  %v3459_v48 = vpop.f32.mrf.mxu1 }
 0x26a   : > { %v3460_v2 = vadd.f32 %v3459_v48, %v3407_v0 }
 0x26b   : > { %v3461_v45 = vpop.f32.mrf.mxu1 }
 0x26c   : > { %v3462_v54 = vadd.f32 %v3461_v45, %v3409_v7 }
 0x26d   : > { %v3463_v40 = vpop.f32.mrf.mxu1 }
 0x26e   : > { %v10542_v62 = vpack.c.bf16 %v3462_v54, %v3458_v21  ;;  %v3464_v3 = vadd.f32 %v3463_v40, %v3411_v22 }
 0x271   : > { %v3500_v24 = vpop.f32.mrf.mxu0 }
 0x272   : > { %v3501_v27 = vadd.f32 %v3500_v24, %v2711_v8 }
 0x273   : > { %v3502_v28 = vpop.f32.mrf.mxu0 }
 0x274   : > { %v3503_v16 = vadd.f32 %v3502_v28, %v2715_v11 }
 0x275   : > { %v3504_v18 = vpop.f32.mrf.mxu0 }
 0x276   : > { %v3505_v31 = vadd.f32 %v3504_v18, %v2711_v8  ;;  %v10544_v18 = vpack.c.bf16 %v3464_v3, %v3460_v2 }
 0x277   : > { %v3506_v38 = vpop.f32.mrf.mxu0 }
 0x278   : > { %v3507_v37 = vadd.f32 %v3506_v38, %v2715_v11 }
 0x279   : > { %v3510_v42 = vpop.f32.mrf.mxu0 }
 0x27a   : > { %v3511_v52 = vadd.f32 %v3510_v42, %v2711_v8  ;;  %v3553_v28 = vpop.f32.mrf.mxu1 }
 0x27b   : > { %v3512_v55 = vpop.f32.mrf.mxu0  ;;  %v3554_v56 = vadd.f32 %v3553_v28, %v3501_v27 }
 0x27c   : > { %v3513_v63 = vadd.f32 %v3512_v55, %v2715_v11  ;;  %v3555_v32 = vpop.f32.mrf.mxu1 }
 0x27d   : > { %v3514_v9 = vpop.f32.mrf.mxu0  ;;  %v3556_v38 = vadd.f32 %v3555_v32, %v3503_v16 }
 0x27e   : > { %v3515_v24 = vadd.f32 %v3514_v9, %v2711_v8  ;;  %v3557_v57 = vpop.f32.mrf.mxu1 }
 0x27f   : > { %v3558_v0 = vadd.f32 %v3557_v57, %v3505_v31  ;;  %v3516_v22 = vpop.f32.mrf.mxu0  ;;  %v10561_v31 = vld [vmem:[%s10558_s18] sm:$0xff] }
 0x280   : > { %v3559_v48 = vpop.f32.mrf.mxu1  ;;  %v3517_v8 = vadd.f32 %v3516_v22, %v2715_v11 }
 0x281   : > { %v10546_v42 = vpack.c.bf16 %v3558_v0, %v3554_v56  ;;  %v3560_v7 = vadd.f32 %v3559_v48, %v3507_v37 }
 0x282   : > { %v3563_v45 = vpop.f32.mrf.mxu1 }
 0x283   : > { %v10548_v55 = vpack.c.bf16 %v3560_v7, %v3556_v38  ;;  %v3564_v21 = vadd.f32 %v3563_v45, %v3511_v52 }
 0x284   : > { %v3565_v54 = vpop.f32.mrf.mxu1 }
 0x285   : > { %v3566_v40 = vadd.f32 %v3565_v54, %v3513_v63  ;;  %v10565_v63 = vld [vmem:[%s10558_s18 + $0x8] sm:$0xff] }
 0x286   : > { %v3567_v2 = vpop.f32.mrf.mxu1 }
 0x287   : > { %v3568_v3 = vadd.f32 %v3567_v2, %v3515_v24 }
 0x288   : > { %v3569_v27 = vpop.f32.mrf.mxu1 }
 0x289   : > { %v10550_v9 = vpack.c.bf16 %v3568_v3, %v3564_v21  ;;  %v3570_v16 = vadd.f32 %v3569_v27, %v3517_v8 }
 0x28b   : > { %v10552_v57 = vpack.c.bf16 %v3570_v16, %v3566_v40 }
 0x307   : > { %v3788_v11 = vpop.f32.mrf.mxu0 }
 0x308   : > { %v3789_v37 = vadd.f32 %v3788_v11, %v10561_v31 }
 0x309   : > { %v7664_v52 = vpop.f32.mrf.mxu0 }
 0x30a   : > { %v3796_v24 = vsel %vm3795_vm2, %v3789_v37, -inf }
 0x30b   : > { %3797 = vmax.xlane.f32.xlu1 %v3796_v24  ;;  %v3791_v28 = vpop.f32.mrf.mxu0 }
 0x30c   : > { %v3792_v56 = vadd.f32 %v3791_v28, %v10565_v63 }
 0x30d   : > { %v7665_v32 = vpop.f32.mrf.mxu0 }
 0x30e   : > { %v3799_v38 = vsel %vm3795_vm2, %v3792_v56, -inf }
 0x30f   : > { %3800 = vmax.xlane.f32.xlu0 %v3799_v38 }
 0x327   : > { %v3905_v0 = vpop.f32.mrf.mxu0 }
 0x328   : > { %v3906_v48 = vadd.f32 %v3905_v0, %v10561_v31 }
 0x329   : > { %v7682_v7 = vpop.f32.mrf.mxu0 }
 0x32a   : > { %v3912_v45 = vsel %vm3795_vm2, %v3906_v48, -inf }
 0x32b   : > { %3913 = vmax.xlane.f32.xlu1 %v3912_v45  ;;  %v3908_v21 = vpop.f32.mrf.mxu0 }
 0x32c   : > { %v3909_v22 = vadd.f32 %v3908_v21, %v10565_v63 }
 0x32d   : > { %v7683_v54 = vpop.f32.mrf.mxu0 }
 0x32e   : > { %v3915_v8 = vsel %vm3795_vm2, %v3909_v22, -inf }
 0x32f   : > { %3916 = vmax.xlane.f32.xlu1 %v3915_v8 }
 0x340   : > { %3936 = vrot.lane.b32.xlu1 %v10509_v30, %s8945_s17 }
 0x394   : > { %v3798_v40 = vpop.xlane.xlu1 %3797 }
 0x395   : > { %v3802_v2 = vsub.f32 %v3789_v37, %v3798_v40 }
 0x397   : > { %v3804_v3 = vmul.f32 1.442695, %v3802_v2 }
 0x398   : > { %v3801_v27 = vpop.xlane.xlu0 %3800 }
 0x399   : > { %8755 = vpow2.f32 %v3804_v3  ;;  %v3803_v16 = vsub.f32 %v3792_v56, %v3801_v27 }
 0x39b   : > { %v3806_v11 = vmul.f32 1.442695, %v3803_v16 }
 0x39d   : > { %8757 = vpow2.f32 %v3806_v11 }
 0x3a6   : > { %v8756_v52 = vpop.eup %8755 }
 0x3a7   : > { %v3808_v24 = vsel %vm3795_vm2, %v8756_v52, 0.0 }
 0x3a8   : > { %3809 = vadd.xlane.f32.xlu1 %v3808_v24 }
 0x3aa   : > { %v8758_v28 = vpop.eup %8757 }
 0x3ab   : > { %v3811_v32 = vsel %vm3795_vm2, %v8758_v28, 0.0 }
 0x3ac   : > { %3812 = vadd.xlane.f32.xlu1 %v3811_v32 }
 0x3b4   : > { %v3914_v38 = vpop.xlane.xlu1 %3913 }
 0x3b5   : > { %v3918_v0 = vsub.f32 %v3906_v48, %v3914_v38  ;;  %v2409_v48 = vadd.f32 %v10458_v1, %v10327_v26 }
 0x3b7   : > { %v3920_v7 = vmul.f32 1.442695, %v3918_v0 }
 0x3b8   : > { %v3917_v30 = vpop.xlane.xlu1 %3916 }
 0x3b9   : > { %8759 = vpow2.f32 %v3920_v7  ;;  %v3919_v37 = vsub.f32 %v3909_v22, %v3917_v30  ;;  %v2462_v22 = vadd.f32 %v10464_v51, %v2409_v48 }
 0x3bb   : > { %v3922_v45 = vmul.f32 1.442695, %v3919_v37 }
 0x3bc   : > { %v3937_v40 = vpop.permute.xlu1 %3936 }
 0x3bd   : > { %8761 = vpow2.f32 %v3922_v45 }
 0x3c6   : > { %v8760_v21 = vpop.eup %8759 }
 0x3c7   : > { %v3924_v56 = vsel %vm3795_vm2, %v8760_v21, 0.0 }
 0x3c8   : > { %3925 = vadd.xlane.f32.xlu1 %v3924_v56 }
 0x3ca   : > { %v8762_v54 = vpop.eup %8761 }
 0x3cb   : > { %v3927_v8 = vsel %vm3795_vm2, %v8762_v54, 0.0 }
 0x3cc   : > { %3928 = vadd.xlane.f32.xlu1 %v3927_v8 }
 0x3ff   : > { %3620 = vxpose.xlu1.b32.start [1/4] (short) %v10342_v43, 128 }
 0x403   : > { %3621 = vxpose.xlu1.b32.cont [2/4] (short) %v10357_v59, 128  ;;  %v11627_v59 = vmov 0.0  }
 0x407   : > { %3622 = vxpose.xlu1.b32.cont [3/4] (short) %v10372_v5, 128 }
 0x40b   : > { %3623 = vxpose.xlu1.b32.end [4/4] (short) %v2462_v22, 128 }
 0x431   : > { %v3810_v2 = vpop.xlane.xlu1 %3809 }
 0x432   : > { %8763 = vrcp.f32 %v3810_v2 }
 0x435   : > { %v3813_v3 = vpop.xlane.xlu1 %3812 }
 0x436   : > { %8765 = vrcp.f32 %v3813_v3 }
 0x43f   : > { %v8764_v27 = vpop.eup %8763 }
 0x440   : > { %v3816_v11 = vmul.f32 %v8764_v27, %v8756_v52 }
 0x443   : > { %v8766_v16 = vpop.eup %8765 }
 0x444   : > { %v3817_v24 = vmul.f32 %v8766_v16, %v8758_v28 }
 0x446   : > { %v3818_v43 = vpack.c.bf16 %v3817_v24, %v3816_v11 }
 0x448   : > { %7669 = vmatmul.mubr.msk.bf16.vlgmr.msra.gmra.mxu1 %vm3795_vm2, %v3818_v43 }
 0x449   : > { %7685 = vmatpush3.bf16.msra.mxu1 %v3937_v40  ;;  %7686 = vmatprep.mubr.msk.bf16.mxu1 %vm8947_vm0, %v11627_v59 }
 0x44a   : > { %7690 = vmatprep.subr.bf16.mxu1 %v11627_v59 }
 0x451   : > { %v3926_v26 = vpop.xlane.xlu1 %3925 }
 0x452   : > { %8767 = vrcp.f32 %v3926_v26 }
 0x455   : > { %v3929_v5 = vpop.xlane.xlu1 %3928 }
 0x456   : > { %8769 = vrcp.f32 %v3929_v5 }
 0x45f   : > { %v8768_v1 = vpop.eup %8767 }
 0x460   : > { %v3932_v32 = vmul.f32 %v8768_v1, %v8760_v21 }
 0x463   : > { %v8770_v51 = vpop.eup %8769 }
 0x464   : > { %v3933_v38 = vmul.f32 %v8770_v51, %v8762_v54 }
 0x466   : > { %v3934_v0 = vpack.c.bf16 %v3933_v38, %v3932_v32 }
 0x468   : > { %7687 = vmatmul.mubr.msk.bf16.vlgmr.msra.gmra.mxu1 %vm3795_vm2, %v3934_v0 }
 0x469   : > { %7698 = vmatprep.mubr.msk.bf16.mxu1 %vm8947_vm0, %v11627_v59 }
 0x47b   : > { %v3636_v52 = vpop.trf.xlu1 }
 0x47f   : > { %v3637_v28 = vpop.trf.xlu1 }
 0x480   : > { %v10605_v22 = vpack.c.bf16 %v3637_v28, %v3636_v52 }
 0x483   : > { %v3638_v7 = vpop.trf.xlu1 }
 0x487   : > { %v3639_v30 = vpop.trf.xlu1 }
 0x488   : > { %v10601_v54 = vpack.c.bf16 %v3639_v30, %v3638_v7 }
 0x48b   : > { %v3640_v37 = vpop.trf.xlu1 }
 0x48f   : > { %v3641_v45 = vpop.trf.xlu1 }
 0x490   : > { %v10597_v21 = vpack.c.bf16 %v3641_v45, %v3640_v37 }
 0x493   : > { %v3642_v56 = vpop.trf.xlu1 }
 0x497   : > { %v3643_v8 = vpop.trf.xlu1 }
 0x498   : > { %v10593_v48 = vpack.c.bf16 %v3643_v8, %v3642_v56 }
 0x49a   : > { %7691 = vmatpush3.bf16.msra.mxu1 %v10593_v48 }
 0x49b   : > { %7692 = vmatprep.subr.bf16.mxu1 %v11627_v59 }
 0x49e   : > { %7693 = vmatpush3.bf16.msra.mxu1 %v10597_v21 }
 0x49f   : > { %7694 = vmatprep.subr.bf16.mxu1 %v11627_v59 }
 0x4a2   : > { %7695 = vmatpush3.bf16.msra.mxu1 %v10601_v54 }
 0x4a3   : > { %7696 = vmatprep.subr.bf16.mxu1 %v11627_v59 }
 0x4a6   : > { %7697 = vmatpush3.bf16.msra.mxu1 %v10605_v22 }
 0x4a7   : > { %7720 = vmatprep.subr.bf16.mxu1 %v11627_v59 }
 0x4a9   : > { %7699 = vmatmul.mubr.msk.bf16.vlgmr.msra.gmra.mxu1 %vm3750_vm1, %v9899_v53 }
 0x4aa   : > { %7722 = vmatprep.mubr.msk.bf16.mxu1 %vm8947_vm0, %v11627_v59 }
 0x508   : > { %v3856_v40 = vpop.f32.mrf.mxu1 }
 0x509   : > { %3863 = vst.msk [vmem:[#allocation2] sm:$0xff] %vm3750_vm1, %v3856_v40 }
 0x50a   : > { %v7670_v2 = vpop.f32.mrf.mxu1 }
 0x50c   : > { %v3859_v3 = vpop.f32.mrf.mxu1 }
 0x50d   : > { %3864 = vst.msk [vmem:[#allocation2 + $0x20] sm:$0xff] %vm3750_vm1, %v3859_v3 }
 0x50e   : > { %v7671_v27 = vpop.f32.mrf.mxu1 }
 0x50f   : > { %v3644_v27 = vpop.trf.xlu1 }
 0x528   : > { %v10615_v16 = vpop.f32.mrf.mxu1 }
 0x52a   : > { %v7688_v11 = vpop.f32.mrf.mxu1 }
 0x52b   : > { %v3645_v11 = vpop.trf.xlu1 }
 0x52c   : > { %v10617_v24 = vpop.f32.mrf.mxu1 }
 0x52e   : > { %v7689_v43 = vpop.f32.mrf.mxu1 }
 0x52f   : > { %v3646_v43 = vpop.trf.xlu1 }
 0x569   : > { %v4031_v26 = vpop.f32.mrf.mxu1 }
 0x56a   : > { %v4032_v5 = vadd.f32 %v4031_v26, %v10561_v31  ;;  %v3647_v26 = vpop.trf.xlu1 }
 0x56b   : > { %v7700_v1 = vpop.f32.mrf.mxu1 }
 0x56c   : > { %v4038_v51 = vsel %vm3795_vm2, %v4032_v5, -inf }
 0x56d   : > { %4039 = vmax.xlane.f32.xlu0 %v4038_v51  ;;  %v4034_v32 = vpop.f32.mrf.mxu1 }
 0x56e   : > { %v4035_v38 = vadd.f32 %v4034_v32, %v10565_v63  ;;  %v3648_v1 = vpop.trf.xlu1 }
 0x56f   : > { %v7701_v0 = vpop.f32.mrf.mxu1 }
 0x570   : > { %v4041_v52 = vsel %vm3795_vm2, %v4035_v38, -inf }
 0x571   : > { %4042 = vmax.xlane.f32.xlu0 %v4041_v52 }
 0x572   : > { %v3649_v32 = vpop.trf.xlu1 }
 0x5f6   : > { %v4040_v28 = vpop.xlane.xlu0 %4039 }
 0x5f7   : > { %v4044_v7 = vsub.f32 %v4032_v5, %v4040_v28 }
 0x5f9   : > { %v4046_v30 = vmul.f32 1.442695, %v4044_v7 }
 0x5fa   : > { %v4043_v37 = vpop.xlane.xlu0 %4042 }
 0x5fb   : > { %8771 = vpow2.f32 %v4046_v30  ;;  %v4045_v45 = vsub.f32 %v4035_v38, %v4043_v37  ;;  %v3650_v38 = vpop.trf.xlu1 }
 0x5fd   : > { %v4048_v56 = vmul.f32 1.442695, %v4045_v45 }
 0x5ff   : > { %8773 = vpow2.f32 %v4048_v56  ;;  %v3651_v28 = vpop.trf.xlu1  ;;  %v10638_v56 = vpack.c.bf16 %v3647_v26, %v3646_v43 }
 0x600   : > { %v10627_v45 = vpack.c.bf16 %v3651_v28, %v3650_v38 }
 0x608   : > { %v8772_v8 = vpop.eup %8771 }
 0x609   : > { %v4050_v40 = vsel %vm3795_vm2, %v8772_v8, 0.0 }
 0x60a   : > { %4051 = vadd.xlane.f32.xlu0 %v4050_v40 }
 0x60c   : > { %v8774_v2 = vpop.eup %8773 }
 0x60d   : > { %v4053_v3 = vsel %vm3795_vm2, %v8774_v2, 0.0 }
 0x60e   : > { %4054 = vadd.xlane.f32.xlu0 %v4053_v3 }
 0x624   : > { %4108 = vrot.lane.b32.xlu0 %v9899_v53, %s8945_s17  ;;  %v10634_v53 = vpack.c.bf16 %v3649_v32, %v3648_v1 }
 0x693   : > { %v4052_v5 = vpop.xlane.xlu0 %4051 }
 0x694   : > { %8775 = vrcp.f32 %v4052_v5 }
 0x697   : > { %v4055_v51 = vpop.xlane.xlu0 %4054 }
 0x698   : > { %8777 = vrcp.f32 %v4055_v51 }
 0x69b   : > { %v4109_v40 = vpop.permute.xlu0 %4108 }
 0x6a1   : > { %v8776_v0 = vpop.eup %8775 }
 0x6a2   : > { %v4058_v7 = vmul.f32 %v8776_v0, %v8772_v8  ;;  %v10642_v8 = vpack.c.bf16 %v3645_v11, %v3644_v27 }
 0x6a5   : > { %v8778_v52 = vpop.eup %8777 }
 0x6a6   : > { %v4059_v30 = vmul.f32 %v8778_v52, %v8774_v2 }
 0x6a8   : > { %v4060_v37 = vpack.c.bf16 %v4059_v30, %v4058_v7 }
 0x6aa   : > { %7705 = vmatmul.mubr.msk.bf16.vlgmr.msra.gmra.mxu0 %vm3795_vm2, %v4060_v37 }
 0x6ab   : > { %7709 = vmatpush3.bf16.msra.mxu0 %v10627_v45  ;;  %7716 = vmatprep.mubr.msk.bf16.mxu0 %vm8947_vm0, %v11627_v59 }
 0x6ac   : > { %7710 = vmatprep.subr.bf16.mxu0 %v11627_v59 }
 0x6af   : > { %7711 = vmatpush3.bf16.msra.mxu0 %v10634_v53 }
 0x6b0   : > { %7712 = vmatprep.subr.bf16.mxu0 %v11627_v59 }
 0x6b3   : > { %7713 = vmatpush3.bf16.msra.mxu0 %v10638_v56 }
 0x6b4   : > { %7714 = vmatprep.subr.bf16.mxu0 %v11627_v59 }
 0x6b7   : > { %7715 = vmatpush3.bf16.msra.mxu0 %v10642_v8 }
 0x6b8   : > { %7738 = vmatprep.subr.bf16.mxu0 %v11627_v59 }
 0x6ba   : > { %7717 = vmatmul.mubr.msk.bf16.vlgmr.msra.gmra.mxu0 %vm3750_vm1, %v4109_v40 }
 0x6bb   : > { %7739 = vmatpush3.bf16.msra.mxu0 %v10546_v42  ;;  %7740 = vmatprep.mubr.msk.bf16.mxu0 %vm8947_vm0, %v11627_v59 }
 0x6bc   : > { %7744 = vmatprep.subr.bf16.mxu0 %v11627_v59 }
 0x76a   : > { %v4098_v2 = vpop.f32.mrf.mxu0 }
 0x76b   : > { %4105 = vst.msk [vmem:[#allocation2 + $0x8] sm:$0xff] %vm3750_vm1, %v4098_v2 }
 0x76c   : > { %v7706_v3 = vpop.f32.mrf.mxu0 }
 0x76e   : > { %v4101_v27 = vpop.f32.mrf.mxu0 }
 0x76f   : > { %4106 = vst.msk [vmem:[#allocation2 + $0x28] sm:$0xff] %vm3750_vm1, %v4101_v27 }
 0x770   : > { %v7707_v11 = vpop.f32.mrf.mxu0 }
 0x77a   : > { %v4147_v43 = vpop.f32.mrf.mxu0 }
 0x77b   : > { %v4148_v26 = vadd.f32 %v4147_v43, %v10561_v31 }
 0x77c   : > { %v7718_v5 = vpop.f32.mrf.mxu0 }
 0x77d   : > { %v4154_v1 = vsel %vm3795_vm2, %v4148_v26, -inf }
 0x77e   : > { %4155 = vmax.xlane.f32.xlu1 %v4154_v1  ;;  %v4150_v51 = vpop.f32.mrf.mxu0 }
 0x77f   : > { %v4151_v32 = vadd.f32 %v4150_v51, %v10565_v63 }
 0x780   : > { %v7719_v38 = vpop.f32.mrf.mxu0 }
 0x781   : > { %v4157_v0 = vsel %vm3795_vm2, %v4151_v32, -inf }
 0x782   : > { %4158 = vmax.xlane.f32.xlu0 %v4157_v0 }
 0x798   : > { %4178 = vrot.lane.b32.xlu0 %v10530_v58, %s8945_s17 }
 0x807   : > { %v4156_v52 = vpop.xlane.xlu1 %4155 }
 0x808   : > { %v4160_v28 = vsub.f32 %v4148_v26, %v4156_v52 }
 0x80a   : > { %v4162_v7 = vmul.f32 1.442695, %v4160_v28 }
 0x80b   : > { %v4159_v30 = vpop.xlane.xlu0 %4158 }
 0x80c   : > { %8779 = vpow2.f32 %v4162_v7  ;;  %v4161_v37 = vsub.f32 %v4151_v32, %v4159_v30 }
 0x80e   : > { %v4164_v40 = vmul.f32 1.442695, %v4161_v37 }
 0x80f   : > { %v4179_v2 = vpop.permute.xlu0 %4178 }
 0x810   : > { %8781 = vpow2.f32 %v4164_v40  ;;  %7721 = vmatpush3.bf16.msra.mxu1 %v4179_v2 }
 0x811   : > { %7726 = vmatprep.subr.bf16.mxu1 %v11627_v59 }
 0x819   : > { %v8780_v3 = vpop.eup %8779 }
 0x81a   : > { %v4166_v27 = vsel %vm3795_vm2, %v8780_v3, 0.0 }
 0x81b   : > { %4167 = vadd.xlane.f32.xlu0 %v4166_v27 }
 0x81d   : > { %v8782_v11 = vpop.eup %8781 }
 0x81e   : > { %v4169_v43 = vsel %vm3795_vm2, %v8782_v11, 0.0 }
 0x81f   : > { %4170 = vadd.xlane.f32.xlu0 %v4169_v43 }
 0x84c   : > { %3652 = vxpose.xlu0.b32.start [1/4] (short) %v10466_v17, 128 }
 0x850   : > { %3653 = vxpose.xlu0.b32.cont [2/4] (short) %v10470_v20, 128 }
 0x854   : > { %3654 = vxpose.xlu0.b32.cont [3/4] (short) %v10474_v12, 128 }
 0x858   : > { %3655 = vxpose.xlu0.b32.end [4/4] (short) %v10478_v44, 128 }
 0x8a4   : > { %v4168_v58 = vpop.xlane.xlu0 %4167 }
 0x8a5   : > { %8783 = vrcp.f32 %v4168_v58 }
 0x8a8   : > { %v4171_v26 = vpop.xlane.xlu0 %4170 }
 0x8a9   : > { %8785 = vrcp.f32 %v4171_v26 }
 0x8b2   : > { %v8784_v5 = vpop.eup %8783 }
 0x8b3   : > { %v4174_v51 = vmul.f32 %v8784_v5, %v8780_v3 }
 0x8b6   : > { %v8786_v1 = vpop.eup %8785 }
 0x8b7   : > { %v4175_v32 = vmul.f32 %v8786_v1, %v8782_v11 }
 0x8b9   : > { %v4176_v38 = vpack.c.bf16 %v4175_v32, %v4174_v51 }
 0x8bb   : > { %7723 = vmatmul.mubr.msk.bf16.vlgmr.msra.gmra.mxu1 %vm3795_vm2, %v4176_v38 }
 0x8bc   : > { %7734 = vmatprep.mubr.msk.bf16.mxu1 %vm8947_vm0, %v11627_v59 }
 0x8c8   : > { %v3668_v17 = vpop.trf.xlu0 }
 0x8cc   : > { %v3669_v20 = vpop.trf.xlu0 }
 0x8cd   : > { %v10681_v2 = vpack.c.bf16 %v3669_v20, %v3668_v17 }
 0x8d0   : > { %v3670_v0 = vpop.trf.xlu0 }
 0x8d4   : > { %v3671_v12 = vpop.trf.xlu0 }
 0x8d5   : > { %v10677_v40 = vpack.c.bf16 %v3671_v12, %v3670_v0 }
 0x8d8   : > { %v3672_v52 = vpop.trf.xlu0 }
 0x8dc   : > { %v3673_v44 = vpop.trf.xlu0 }
 0x8dd   : > { %v10673_v37 = vpack.c.bf16 %v3673_v44, %v3672_v52 }
 0x8e0   : > { %v3674_v28 = vpop.trf.xlu0 }
 0x8e4   : > { %v3675_v7 = vpop.trf.xlu0 }
 0x8e5   : > { %v10669_v30 = vpack.c.bf16 %v3675_v7, %v3674_v28 }
 0x8e7   : > { %7727 = vmatpush3.bf16.msra.mxu1 %v10669_v30 }
 0x8e8   : > { %7728 = vmatprep.subr.bf16.mxu1 %v11627_v59 }
 0x8eb   : > { %7729 = vmatpush3.bf16.msra.mxu1 %v10673_v37 }
 0x8ec   : > { %7730 = vmatprep.subr.bf16.mxu1 %v11627_v59 }
 0x8ef   : > { %7731 = vmatpush3.bf16.msra.mxu1 %v10677_v40 }
 0x8f0   : > { %7732 = vmatprep.subr.bf16.mxu1 %v11627_v59 }
 0x8f3   : > { %7733 = vmatpush3.bf16.msra.mxu1 %v10681_v2 }
 0x8f4   : > { %7756 = vmatprep.subr.bf16.mxu1 %v11627_v59 }
 0x8f6   : > { %7735 = vmatmul.mubr.msk.bf16.vlgmr.msra.gmra.mxu1 %vm3750_vm1, %v10139_v50 }
 0x8f7   : > { %7758 = vmatprep.mubr.msk.bf16.mxu1 %vm8947_vm0, %v11627_v59 }
 0x97b   : > { %v10689_v3 = vpop.f32.mrf.mxu1 }
 0x97d   : > { %v7724_v27 = vpop.f32.mrf.mxu1 }
 0x97f   : > { %v10691_v11 = vpop.f32.mrf.mxu1 }
 0x981   : > { %v7725_v43 = vpop.f32.mrf.mxu1 }
 0x9b6   : > { %v4272_v58 = vpop.f32.mrf.mxu1 }
 0x9b7   : > { %v4273_v26 = vadd.f32 %v4272_v58, %v10561_v31 }
 0x9b8   : > { %v7736_v5 = vpop.f32.mrf.mxu1 }
 0x9b9   : > { %v4279_v1 = vsel %vm3795_vm2, %v4273_v26, -inf  ;;  %v3676_v5 = vpop.trf.xlu0 }
 0x9ba   : > { %4280 = vmax.xlane.f32.xlu1 %v4279_v1  ;;  %v4275_v51 = vpop.f32.mrf.mxu1 }
 0x9bb   : > { %v4276_v32 = vadd.f32 %v4275_v51, %v10565_v63 }
 0x9bc   : > { %v7737_v38 = vpop.f32.mrf.mxu1 }
 0x9bd   : > { %v4282_v17 = vsel %vm3795_vm2, %v4276_v32, -inf  ;;  %v3677_v1 = vpop.trf.xlu0 }
 0x9be   : > { %4283 = vmax.xlane.f32.xlu1 %v4282_v17 }
 0xa43   : > { %v4281_v20 = vpop.xlane.xlu1 %4280 }
 0xa44   : > { %v4285_v0 = vsub.f32 %v4273_v26, %v4281_v20  ;;  %v3678_v26 = vpop.trf.xlu0 }
 0xa46   : > { %v4287_v12 = vmul.f32 1.442695, %v4285_v0 }
 0xa47   : > { %v4284_v52 = vpop.xlane.xlu1 %4283 }
 0xa48   : > { %8787 = vpow2.f32 %v4287_v12  ;;  %v4286_v44 = vsub.f32 %v4276_v32, %v4284_v52  ;;  %v3679_v51 = vpop.trf.xlu0 }
 0xa4a   : > { %v4289_v28 = vmul.f32 1.442695, %v4286_v44 }
 0xa4c   : > { %8789 = vpow2.f32 %v4289_v28  ;;  %v3680_v17 = vpop.trf.xlu0 }
 0xa50   : > { %v3681_v20 = vpop.trf.xlu0 }
 0xa54   : > { %v3682_v0 = vpop.trf.xlu0 }
 0xa55   : > { %v8788_v7 = vpop.eup %8787 }
 0xa56   : > { %v4291_v27 = vsel %vm3795_vm2, %v8788_v7, 0.0 }
 0xa57   : > { %4292 = vadd.xlane.f32.xlu1 %v4291_v27 }
 0xa58   : > { %v3683_v44 = vpop.trf.xlu0 }
 0xa59   : > { %v8790_v43 = vpop.eup %8789  ;;  %v10701_v10 = vpack.c.bf16 %v3683_v44, %v3682_v0 }
 0xa5a   : > { %v4294_v58 = vsel %vm3795_vm2, %v8790_v43, 0.0 }
 0xa5b   : > { %4295 = vadd.xlane.f32.xlu1 %v4294_v58 }
 0xa6c   : > { %4349 = vrot.lane.b32.xlu1 %v10139_v50, %s8945_s17  ;;  %v10708_v50 = vpack.c.bf16 %v3681_v20, %v3680_v17 }
 0xae0   : > { %v4293_v38 = vpop.xlane.xlu1 %4292 }
 0xae1   : > { %8791 = vrcp.f32 %v4293_v38 }
 0xae4   : > { %v4296_v32 = vpop.xlane.xlu1 %4295 }
 0xae5   : > { %8793 = vrcp.f32 %v4296_v32 }
 0xae8   : > { %v4350_v38 = vpop.permute.xlu1 %4349 }
 0xaee   : > { %v8792_v12 = vpop.eup %8791 }
 0xaef   : > { %v4299_v28 = vmul.f32 %v8792_v12, %v8788_v7  ;;  %v10712_v7 = vpack.c.bf16 %v3679_v51, %v3678_v26 }
 0xaf2   : > { %v8794_v52 = vpop.eup %8793 }
 0xaf3   : > { %v4300_v27 = vmul.f32 %v8794_v52, %v8790_v43  ;;  %v10716_v43 = vpack.c.bf16 %v3677_v1, %v3676_v5 }
 0xaf5   : > { %v4301_v58 = vpack.c.bf16 %v4300_v27, %v4299_v28 }
 0xaf7   : > { %7741 = vmatmul.mubr.msk.bf16.vlgmr.msra.gmra.mxu0 %vm3795_vm2, %v4301_v58 }
 0xaf8   : > { %7745 = vmatpush3.bf16.msra.mxu0 %v10701_v10  ;;  %7752 = vmatprep.mubr.msk.bf16.mxu0 %vm8947_vm0, %v11627_v59 }
 0xaf9   : > { %7746 = vmatprep.subr.bf16.mxu0 %v11627_v59 }
 0xafc   : > { %7747 = vmatpush3.bf16.msra.mxu0 %v10708_v50 }
 0xafd   : > { %7748 = vmatprep.subr.bf16.mxu0 %v11627_v59 }
 0xb00   : > { %7749 = vmatpush3.bf16.msra.mxu0 %v10712_v7 }
 0xb01   : > { %7750 = vmatprep.subr.bf16.mxu0 %v11627_v59 }
 0xb04   : > { %7751 = vmatpush3.bf16.msra.mxu0 %v10716_v43 }
 0xb05   : > { %7774 = vmatprep.subr.bf16.mxu0 %v11627_v59 }
 0xb07   : > { %7753 = vmatmul.mubr.msk.bf16.vlgmr.msra.gmra.mxu0 %vm3750_vm1, %v4350_v38 }
 0xb08   : > { %7775 = vmatpush3.bf16.msra.mxu0 %v10548_v55  ;;  %7776 = vmatprep.mubr.msk.bf16.mxu0 %vm8947_vm0, %v11627_v59 }
 0xb09   : > { %7780 = vmatprep.subr.bf16.mxu0 %v11627_v59 }
 0xbb7   : > { %v4339_v26 = vpop.f32.mrf.mxu0 }
 0xbb8   : > { %4346 = vst.msk [vmem:[#allocation2 + $0x10] sm:$0xff] %vm3750_vm1, %v4339_v26 }
 0xbb9   : > { %v7742_v51 = vpop.f32.mrf.mxu0 }
 0xbbb   : > { %v4342_v5 = vpop.f32.mrf.mxu0 }
 0xbbc   : > { %4347 = vst.msk [vmem:[#allocation2 + $0x30] sm:$0xff] %vm3750_vm1, %v4342_v5 }
 0xbbd   : > { %v7743_v1 = vpop.f32.mrf.mxu0 }
 0xbc7   : > { %v4388_v17 = vpop.f32.mrf.mxu0 }
 0xbc8   : > { %v4389_v32 = vadd.f32 %v4388_v17, %v10561_v31 }
 0xbc9   : > { %v7754_v20 = vpop.f32.mrf.mxu0 }
 0xbca   : > { %v4395_v0 = vsel %vm3795_vm2, %v4389_v32, -inf }
 0xbcb   : > { %4396 = vmax.xlane.f32.xlu0 %v4395_v0  ;;  %v4391_v12 = vpop.f32.mrf.mxu0 }
 0xbcc   : > { %v4392_v52 = vadd.f32 %v4391_v12, %v10565_v63 }
 0xbcd   : > { %v7755_v44 = vpop.f32.mrf.mxu0 }
 0xbce   : > { %v4398_v28 = vsel %vm3795_vm2, %v4392_v52, -inf }
 0xbcf   : > { %4399 = vmax.xlane.f32.xlu1 %v4398_v28 }
 0xbe0   : > { %4419 = vrot.lane.b32.xlu1 %v10546_v42, %s8945_s17 }
 0xc54   : > { %v4397_v27 = vpop.xlane.xlu0 %4396 }
 0xc55   : > { %v4401_v58 = vsub.f32 %v4389_v32, %v4397_v27 }
 0xc57   : > { %v4403_v38 = vmul.f32 1.442695, %v4401_v58 }
 0xc58   : > { %v4400_v26 = vpop.xlane.xlu1 %4399 }
 0xc59   : > { %8795 = vpow2.f32 %v4403_v38  ;;  %v4402_v51 = vsub.f32 %v4392_v52, %v4400_v26 }
 0xc5b   : > { %v4405_v5 = vmul.f32 1.442695, %v4402_v51 }
 0xc5c   : > { %v4420_v1 = vpop.permute.xlu1 %4419 }
 0xc5d   : > { %8797 = vpow2.f32 %v4405_v5  ;;  %7757 = vmatpush3.bf16.msra.mxu1 %v4420_v1 }
 0xc5e   : > { %7762 = vmatprep.subr.bf16.mxu1 %v11627_v59 }
 0xc66   : > { %v8796_v17 = vpop.eup %8795 }
 0xc67   : > { %v4407_v20 = vsel %vm3795_vm2, %v8796_v17, 0.0 }
 0xc68   : > { %4408 = vadd.xlane.f32.xlu1 %v4407_v20 }
 0xc6a   : > { %v8798_v0 = vpop.eup %8797 }
 0xc6b   : > { %v4410_v12 = vsel %vm3795_vm2, %v8798_v0, 0.0 }
 0xc6c   : > { %4411 = vadd.xlane.f32.xlu1 %v4410_v12 }
 0xc9f   : > { %3684 = vxpose.xlu1.b32.start [1/4] (short) %v10468_v23, 128 }
 0xca3   : > { %3685 = vxpose.xlu1.b32.cont [2/4] (short) %v10472_v29, 128 }
 0xca7   : > { %3686 = vxpose.xlu1.b32.cont [3/4] (short) %v10476_v35, 128 }
 0xcab   : > { %3687 = vxpose.xlu1.b32.end [4/4] (short) %v10480_v47, 128 }
 0xcf1   : > { %v4409_v42 = vpop.xlane.xlu1 %4408 }
 0xcf2   : > { %8799 = vrcp.f32 %v4409_v42 }
 0xcf5   : > { %v4412_v32 = vpop.xlane.xlu1 %4411 }
 0xcf6   : > { %8801 = vrcp.f32 %v4412_v32 }
 0xcff   : > { %v8800_v52 = vpop.eup %8799 }
 0xd00   : > { %v4415_v28 = vmul.f32 %v8800_v52, %v8796_v17 }
 0xd03   : > { %v8802_v44 = vpop.eup %8801 }
 0xd04   : > { %v4416_v27 = vmul.f32 %v8802_v44, %v8798_v0 }
 0xd06   : > { %v4417_v58 = vpack.c.bf16 %v4416_v27, %v4415_v28 }
 0xd08   : > { %7759 = vmatmul.mubr.msk.bf16.vlgmr.msra.gmra.mxu1 %vm3795_vm2, %v4417_v58 }
 0xd09   : > { %7770 = vmatprep.mubr.msk.bf16.mxu1 %vm8947_vm0, %v11627_v59 }
 0xd1b   : > { %v3700_v23 = vpop.trf.xlu1 }
 0xd1f   : > { %v3701_v29 = vpop.trf.xlu1 }
 0xd20   : > { %v10755_v0 = vpack.c.bf16 %v3701_v29, %v3700_v23 }
 0xd23   : > { %v3702_v38 = vpop.trf.xlu1 }
 0xd27   : > { %v3703_v35 = vpop.trf.xlu1 }
 0xd28   : > { %v10751_v20 = vpack.c.bf16 %v3703_v35, %v3702_v38 }
 0xd2b   : > { %v3704_v26 = vpop.trf.xlu1 }
 0xd2f   : > { %v3705_v47 = vpop.trf.xlu1 }
 0xd30   : > { %v10747_v17 = vpack.c.bf16 %v3705_v47, %v3704_v26 }
 0xd33   : > { %v3706_v51 = vpop.trf.xlu1 }
 0xd37   : > { %v3707_v5 = vpop.trf.xlu1 }
 0xd38   : > { %v10743_v1 = vpack.c.bf16 %v3707_v5, %v3706_v51 }
 0xd3a   : > { %7763 = vmatpush3.bf16.msra.mxu1 %v10743_v1 }
 0xd3b   : > { %7764 = vmatprep.subr.bf16.mxu1 %v11627_v59 }
 0xd3e   : > { %7765 = vmatpush3.bf16.msra.mxu1 %v10747_v17 }
 0xd3f   : > { %7766 = vmatprep.subr.bf16.mxu1 %v11627_v59 }
 0xd42   : > { %7767 = vmatpush3.bf16.msra.mxu1 %v10751_v20 }
 0xd43   : > { %7768 = vmatprep.subr.bf16.mxu1 %v11627_v59 }
 0xd46   : > { %7769 = vmatpush3.bf16.msra.mxu1 %v10755_v0 }
 0xd47   : > { %7792 = vmatprep.subr.bf16.mxu1 %v11627_v59 }
 0xd49   : > { %7771 = vmatmul.mubr.msk.bf16.vlgmr.msra.gmra.mxu1 %vm3750_vm1, %v10150_v60 }
 0xd4a   : > { %7794 = vmatprep.mubr.msk.bf16.mxu1 %vm8947_vm0, %v11627_v59 }
 0xdc8   : > { %v10763_v12 = vpop.f32.mrf.mxu1 }
 0xdca   : > { %v7760_v42 = vpop.f32.mrf.mxu1 }
 0xdcc   : > { %v10765_v32 = vpop.f32.mrf.mxu1 }
 0xdcd   : > { %11628 = vst [vmem:[#allocation13_spill] sm:$0xff] %v10765_v32 }
 0xdce   : > { %v7761_v52 = vpop.f32.mrf.mxu1 }
 0xe09   : > { %v4513_v44 = vpop.f32.mrf.mxu1 }
 0xe0a   : > { %v4514_v28 = vadd.f32 %v4513_v44, %v10561_v31 }
 0xe0b   : > { %v7772_v27 = vpop.f32.mrf.mxu1 }
 0xe0c   : > { %v4520_v58 = vsel %vm3795_vm2, %v4514_v28, -inf }
 0xe0d   : > { %4521 = vmax.xlane.f32.xlu0 %v4520_v58  ;;  %v4516_v23 = vpop.f32.mrf.mxu1 }
 0xe0e   : > { %v4517_v29 = vadd.f32 %v4516_v23, %v10565_v63  ;;  %v3708_v23 = vpop.trf.xlu1 }
 0xe0f   : > { %v7773_v38 = vpop.f32.mrf.mxu1 }
 0xe10   : > { %v4523_v35 = vsel %vm3795_vm2, %v4517_v29, -inf }
 0xe11   : > { %4524 = vmax.xlane.f32.xlu0 %v4523_v35 }
 0xe12   : > { %v3709_v38 = vpop.trf.xlu1 }
 0xe96   : > { %v4522_v26 = vpop.xlane.xlu0 %4521 }
 0xe97   : > { %v4526_v47 = vsub.f32 %v4514_v28, %v4522_v26  ;;  %v3710_v28 = vpop.trf.xlu1 }
 0xe99   : > { %v4528_v51 = vmul.f32 1.442695, %v4526_v47 }
 0xe9a   : > { %v4525_v5 = vpop.xlane.xlu0 %4524 }
 0xe9b   : > { %8803 = vpow2.f32 %v4528_v51  ;;  %v4527_v42 = vsub.f32 %v4517_v29, %v4525_v5  ;;  %v3711_v35 = vpop.trf.xlu1 }
 0xe9d   : > { %v4530_v52 = vmul.f32 1.442695, %v4527_v42 }
 0xe9f   : > { %8805 = vpow2.f32 %v4530_v52  ;;  %v3712_v47 = vpop.trf.xlu1 }
 0xea3   : > { %v3713_v51 = vpop.trf.xlu1 }
 0xea7   : > { %v3714_v5 = vpop.trf.xlu1 }
 0xea8   : > { %v8804_v44 = vpop.eup %8803 }
 0xea9   : > { %v4532_v27 = vsel %vm3795_vm2, %v8804_v44, 0.0 }
 0xeaa   : > { %4533 = vadd.xlane.f32.xlu0 %v4532_v27 }
 0xeab   : > { %v3715_v27 = vpop.trf.xlu1 }
 0xeac   : > { %v8806_v58 = vpop.eup %8805  ;;  %v10775_v32 = vpack.c.bf16 %v3715_v27, %v3714_v5 }
 0xead   : > { %v4535_v6 = vsel %vm3795_vm2, %v8806_v58, 0.0 }
 0xeae   : > { %4536 = vadd.xlane.f32.xlu0 %v4535_v6 }
 0xec4   : > { %4590 = vrot.lane.b32.xlu0 %v10150_v60, %s8945_s17  ;;  %v10782_v60 = vpack.c.bf16 %v3713_v51, %v3712_v47 }
 0xf33   : > { %v4534_v26 = vpop.xlane.xlu0 %4533 }
 0xf34   : > { %8807 = vrcp.f32 %v4534_v26 }
 0xf37   : > { %v4537_v29 = vpop.xlane.xlu0 %4536 }
 0xf38   : > { %8809 = vrcp.f32 %v4537_v29 }
 0xf41   : > { %v8808_v42 = vpop.eup %8807 }
 0xf42   : > { %v4540_v15 = vmul.f32 %v8808_v42, %v8804_v44  ;;  %v10786_v44 = vpack.c.bf16 %v3711_v35, %v3710_v28 }
 0xf45   : > { %v8810_v52 = vpop.eup %8809 }
 0xf46   : > { %v4541_v14 = vmul.f32 %v8810_v52, %v8806_v58 }
 0xf48   : > { %v4542_v6 = vpack.c.bf16 %v4541_v14, %v4540_v15  ;;  %v10790_v14 = vpack.c.bf16 %v3709_v38, %v3708_v23  ;;  %v4591_v15 = vpop.permute.xlu0 %4590 }
 0xf4a   : > { %7777 = vmatmul.mubr.msk.bf16.vlgmr.msra.gmra.mxu0 %vm3795_vm2, %v4542_v6 }
 0xf4b   : > { %7781 = vmatpush3.bf16.msra.mxu0 %v10775_v32  ;;  %7788 = vmatprep.mubr.msk.bf16.mxu0 %vm8947_vm0, %v11627_v59 }
 0xf4c   : > { %7782 = vmatprep.subr.bf16.mxu0 %v11627_v59 }
 0xf4f   : > { %7783 = vmatpush3.bf16.msra.mxu0 %v10782_v60 }
 0xf50   : > { %7784 = vmatprep.subr.bf16.mxu0 %v11627_v59 }
 0xf53   : > { %7785 = vmatpush3.bf16.msra.mxu0 %v10786_v44 }
 0xf54   : > { %7786 = vmatprep.subr.bf16.mxu0 %v11627_v59 }
 0xf57   : > { %7787 = vmatpush3.bf16.msra.mxu0 %v10790_v14 }
 0xf58   : > { %7810 = vmatprep.subr.bf16.mxu0 %v11627_v59 }
 0xf5a   : > { %7789 = vmatmul.mubr.msk.bf16.vlgmr.msra.gmra.mxu0 %vm3750_vm1, %v4591_v15 }
 0xf5b   : > { %7811 = vmatpush3.bf16.msra.mxu0 %v10542_v62  ;;  %7812 = vmatprep.mubr.msk.bf16.mxu0 %vm8947_vm0, %v11627_v59 }
 0xf5c   : > { %7816 = vmatprep.subr.bf16.mxu0 %v11627_v59 }
0x100a   : > { %v4580_v58 = vpop.f32.mrf.mxu0 }
0x100b   : > { %4587 = vst.msk [vmem:[#allocation2 + $0x18] sm:$0xff] %vm3750_vm1, %v4580_v58 }
0x100c   : > { %v7778_v28 = vpop.f32.mrf.mxu0 }
0x100e   : > { %v4583_v23 = vpop.f32.mrf.mxu0 }
0x100f   : > { %4588 = vst.msk [vmem:[#allocation2 + $0x38] sm:$0xff] %vm3750_vm1, %v4583_v23 }
0x1010   : > { %v7779_v38 = vpop.f32.mrf.mxu0 }
0x101a   : > { %v4629_v35 = vpop.f32.mrf.mxu0 }
0x101b   : > { %v4630_v26 = vadd.f32 %v4629_v35, %v10561_v31 }
0x101c   : > { %v7790_v47 = vpop.f32.mrf.mxu0 }
0x101d   : > { %v4636_v29 = vsel %vm3795_vm2, %v4630_v26, -inf }
0x101e   : > { %4637 = vmax.xlane.f32.xlu1 %v4636_v29  ;;  %v4632_v51 = vpop.f32.mrf.mxu0 }
0x101f   : > { %v4633_v5 = vadd.f32 %v4632_v51, %v10565_v63 }
0x1020   : > { %v7791_v42 = vpop.f32.mrf.mxu0 }
0x1021   : > { %v4639_v52 = vsel %vm3795_vm2, %v4633_v5, -inf }
0x1022   : > { %4640 = vmax.xlane.f32.xlu0 %v4639_v52 }
0x1038   : > { %4660 = vrot.lane.b32.xlu0 %v10548_v55, %s8945_s17 }
0x10a7   : > { %v4638_v27 = vpop.xlane.xlu1 %4637 }
0x10a8   : > { %v4642_v6 = vsub.f32 %v4630_v26, %v4638_v27 }
0x10aa   : > { %v4644_v15 = vmul.f32 1.442695, %v4642_v6 }
0x10ab   : > { %v4641_v58 = vpop.xlane.xlu0 %4640 }
0x10ac   : > { %8811 = vpow2.f32 %v4644_v15  ;;  %v4643_v31 = vsub.f32 %v4633_v5, %v4641_v58 }
0x10ae   : > { %v4646_v28 = vmul.f32 1.442695, %v4643_v31  ;;  %v10834_v31 = vld [vmem:[%s10558_s18 + $0x10] sm:$0xff] }
0x10af   : > { %v4661_v23 = vpop.permute.xlu0 %4660 }
0x10b0   : > { %8813 = vpow2.f32 %v4646_v28  ;;  %7793 = vmatpush3.bf16.msra.mxu1 %v4661_v23 }
0x10b1   : > { %7798 = vmatprep.subr.bf16.mxu1 %v11627_v59 }
0x10b9   : > { %v8812_v63 = vpop.eup %8811 }
0x10ba   : > { %v4648_v38 = vsel %vm3795_vm2, %v8812_v63, 0.0 }
0x10bb   : > { %4649 = vadd.xlane.f32.xlu0 %v4648_v38  ;;  %v10838_v38 = vld [vmem:[%s10558_s18 + $0x18] sm:$0xff] }
0x10bd   : > { %v8814_v35 = vpop.eup %8813 }
0x10be   : > { %v4651_v47 = vsel %vm3795_vm2, %v8814_v35, 0.0 }
0x10bf   : > { %4652 = vadd.xlane.f32.xlu0 %v4651_v47 }
0x10d5   : > { %4730 = vrot.lane.b32.xlu0 %v10482_v13, %s8948_s15 }
0x10d9   : > { %4728 = vrot.lane.b32.xlu0 %v10486_v61, %s8948_s15 }
0x10dd   : > { %4726 = vrot.lane.b32.xlu0 %v10495_v41, %s8948_s15 }
0x10e1   : > { %4724 = vrot.lane.b32.xlu0 %v10501_v4, %s8948_s15 }
0x1144   : > { %v4650_v55 = vpop.xlane.xlu0 %4649 }
0x1145   : > { %8815 = vrcp.f32 %v4650_v55 }
0x1148   : > { %v4653_v26 = vpop.xlane.xlu0 %4652 }
0x1149   : > { %8817 = vrcp.f32 %v4653_v26 }
0x114c   : > { %v4731_v51 = vpop.permute.xlu0 %4730 }
0x1150   : > { %v4729_v13 = vpop.permute.xlu0 %4728 }
0x1152   : > { %v8816_v29 = vpop.eup %8815 }
0x1153   : > { %v4656_v42 = vmul.f32 %v8816_v29, %v8812_v63 }
0x1154   : > { %v4727_v61 = vpop.permute.xlu0 %4726 }
0x1156   : > { %v8818_v5 = vpop.eup %8817 }
0x1157   : > { %v4657_v52 = vmul.f32 %v8818_v5, %v8814_v35 }
0x1158   : > { %v4725_v41 = vpop.permute.xlu0 %4724 }
0x1159   : > { %v4658_v27 = vpack.c.bf16 %v4657_v52, %v4656_v42 }
0x115b   : > { %7795 = vmatmul.mubr.msk.bf16.vlgmr.msra.gmra.mxu1 %vm3795_vm2, %v4658_v27 }
0x115c   : > { %7799 = vmatpush3.bf16.msra.mxu1 %v4731_v51  ;;  %7806 = vmatprep.mubr.msk.bf16.mxu1 %vm8947_vm0, %v11627_v59 }
0x115d   : > { %7800 = vmatprep.subr.bf16.mxu1 %v11627_v59 }
0x1160   : > { %7801 = vmatpush3.bf16.msra.mxu1 %v4729_v13 }
0x1161   : > { %7802 = vmatprep.subr.bf16.mxu1 %v11627_v59 }
0x1164   : > { %7803 = vmatpush3.bf16.msra.mxu1 %v4727_v61 }
0x1165   : > { %7804 = vmatprep.subr.bf16.mxu1 %v11627_v59 }
0x1168   : > { %7805 = vmatpush3.bf16.msra.mxu1 %v4725_v41 }
0x1169   : > { %7828 = vmatprep.subr.bf16.mxu1 %v11627_v59 }
0x116b   : > { %7807 = vmatmul.mubr.msk.bf16.vlgmr.msra.gmra.mxu1 %vm3750_vm1, %v9973_v33 }
0x116c   : > { %7830 = vmatprep.mubr.msk.bf16.mxu1 %vm8947_vm0, %v11627_v59 }
0x121b   : > { %v10829_v4 = vpop.f32.mrf.mxu1 }
0x121d   : > { %v7796_v6 = vpop.f32.mrf.mxu1 }
0x121f   : > { %v10831_v15 = vpop.f32.mrf.mxu1 }
0x1221   : > { %v7797_v58 = vpop.f32.mrf.mxu1 }
0x122b   : > { %v4773_v28 = vpop.f32.mrf.mxu1 }
0x122c   : > { %v4774_v23 = vadd.f32 %v10834_v31, %v4773_v28 }
0x122d   : > { %v7808_v63 = vpop.f32.mrf.mxu1 }
0x122e   : > { %v4780_v35 = vsel %vm3795_vm2, %v4774_v23, -inf }
0x122f   : > { %4781 = vmax.xlane.f32.xlu1 %v4780_v35  ;;  %v4776_v47 = vpop.f32.mrf.mxu1 }
0x1230   : > { %v4777_v55 = vadd.f32 %v10838_v38, %v4776_v47 }
0x1231   : > { %v7809_v26 = vpop.f32.mrf.mxu1 }
0x1232   : > { %v4783_v29 = vsel %vm3795_vm2, %v4777_v55, -inf }
0x1233   : > { %4784 = vmax.xlane.f32.xlu0 %v4783_v29 }
0x1240   : > { %4862 = vrot.lane.b32.xlu1 %v10513_v34, %s8948_s15 }
0x1249   : > { %4856 = vrot.lane.b32.xlu0 %v10527_v46, %s8948_s15 }
0x12b8   : > { %v4782_v51 = vpop.xlane.xlu1 %4781 }
0x12b9   : > { %v4786_v5 = vsub.f32 %v4774_v23, %v4782_v51 }
0x12bb   : > { %v4788_v42 = vmul.f32 1.442695, %v4786_v5 }
0x12bc   : > { %v4785_v52 = vpop.xlane.xlu0 %4784  ;;  %v4863_v34 = vpop.permute.xlu1 %4862 }
0x12bd   : > { %8819 = vpow2.f32 %v4788_v42  ;;  %v4787_v27 = vsub.f32 %v4777_v55, %v4785_v52 }
0x12bf   : > { %v4790_v13 = vmul.f32 1.442695, %v4787_v27 }
0x12c1   : > { %8821 = vpow2.f32 %v4790_v13 }
0x12ca   : > { %v8820_v61 = vpop.eup %8819 }
0x12cb   : > { %v4792_v41 = vsel %vm3795_vm2, %v8820_v61, 0.0 }
0x12cc   : > { %4793 = vadd.xlane.f32.xlu1 %v4792_v41 }
0x12ce   : > { %v8822_v6 = vpop.eup %8821 }
0x12cf   : > { %v4795_v58 = vsel %vm3795_vm2, %v8822_v6, 0.0 }
0x12d0   : > { %4796 = vadd.xlane.f32.xlu1 %v4795_v58 }
0x12e1   : > { %4860 = vrot.lane.b32.xlu1 %v10519_v39, %s8948_s15 }
0x12e5   : > { %4858 = vrot.lane.b32.xlu1 %v10523_v49, %s8948_s15  ;;  %v4857_v49 = vpop.permute.xlu0 %4856 }
0x12e9   : > { %4850 = vrot.lane.b32.xlu1 %v9973_v33, %s8945_s17 }
0x1355   : > { %v4794_v46 = vpop.xlane.xlu1 %4793 }
0x1356   : > { %8823 = vrcp.f32 %v4794_v46 }
0x1359   : > { %v4797_v28 = vpop.xlane.xlu1 %4796 }
0x135a   : > { %8825 = vrcp.f32 %v4797_v28 }
0x135d   : > { %v4861_v39 = vpop.permute.xlu1 %4860 }
0x1361   : > { %v4859_v33 = vpop.permute.xlu1 %4858 }
0x1363   : > { %v8824_v23 = vpop.eup %8823 }
0x1364   : > { %v4800_v35 = vmul.f32 %v8824_v23, %v8820_v61 }
0x1365   : > { %v4851_v26 = vpop.permute.xlu1 %4850 }
0x1367   : > { %v8826_v63 = vpop.eup %8825 }
0x1368   : > { %v4801_v47 = vmul.f32 %v8826_v63, %v8822_v6 }
0x136a   : > { %v4802_v55 = vpack.c.bf16 %v4801_v47, %v4800_v35 }
0x136c   : > { %7813 = vmatmul.mubr.msk.bf16.vlgmr.msra.gmra.mxu0 %vm3795_vm2, %v4802_v55 }
0x136d   : > { %7817 = vmatpush3.bf16.msra.mxu0 %v4863_v34  ;;  %7824 = vmatprep.mubr.msk.bf16.mxu0 %vm8947_vm0, %v11627_v59 }
0x136e   : > { %7818 = vmatprep.subr.bf16.mxu0 %v11627_v59 }
0x1371   : > { %7819 = vmatpush3.bf16.msra.mxu0 %v4861_v39 }
0x1372   : > { %7820 = vmatprep.subr.bf16.mxu0 %v11627_v59 }
0x1375   : > { %7821 = vmatpush3.bf16.msra.mxu0 %v4859_v33 }
0x1376   : > { %7822 = vmatprep.subr.bf16.mxu0 %v11627_v59 }
0x1379   : > { %7823 = vmatpush3.bf16.msra.mxu0 %v4857_v49 }
0x137a   : > { %7846 = vmatprep.subr.bf16.mxu0 %v11627_v59 }
0x137c   : > { %7825 = vmatmul.mubr.msk.bf16.vlgmr.msra.gmra.mxu0 %vm3750_vm1, %v4851_v26 }
0x137d   : > { %7847 = vmatpush3.bf16.msra.mxu0 %v10544_v18  ;;  %7848 = vmatprep.mubr.msk.bf16.mxu0 %vm8947_vm0, %v11627_v59 }
0x137e   : > { %7852 = vmatprep.subr.bf16.mxu0 %v11627_v59 }
0x142c   : > { %v4840_v29 = vpop.f32.mrf.mxu0 }
0x142d   : > { %4847 = vst.msk [vmem:[#allocation2 + $0x40] sm:$0xff] %vm3750_vm1, %v4840_v29 }
0x142e   : > { %v7814_v51 = vpop.f32.mrf.mxu0 }
0x1430   : > { %v4843_v5 = vpop.f32.mrf.mxu0 }
0x1431   : > { %4848 = vst.msk [vmem:[#allocation2 + $0x60] sm:$0xff] %vm3750_vm1, %v4843_v5 }
0x1432   : > { %v7815_v42 = vpop.f32.mrf.mxu0 }
0x143c   : > { %v4905_v52 = vpop.f32.mrf.mxu0 }
0x143d   : > { %v4906_v27 = vadd.f32 %v10834_v31, %v4905_v52 }
0x143e   : > { %v7826_v13 = vpop.f32.mrf.mxu0 }
0x143f   : > { %v4912_v61 = vsel %vm3795_vm2, %v4906_v27, -inf }
0x1440   : > { %4913 = vmax.xlane.f32.xlu1 %v4912_v61  ;;  %v4908_v41 = vpop.f32.mrf.mxu0 }
0x1441   : > { %v4909_v6 = vadd.f32 %v10838_v38, %v4908_v41 }
0x1442   : > { %v7827_v58 = vpop.f32.mrf.mxu0 }
0x1443   : > { %v4915_v34 = vsel %vm3795_vm2, %v4909_v6, -inf }
0x1444   : > { %4916 = vmax.xlane.f32.xlu0 %v4915_v34 }
0x1451   : > { %4936 = vrot.lane.b32.xlu1 %v10542_v62, %s8945_s17 }
0x145a   : > { %5003 = vrot.lane.b32.xlu0 %v10593_v48, %s8948_s15 }
0x145e   : > { %4997 = vrot.lane.b32.xlu0 %v10605_v22, %s8948_s15 }
0x14c9   : > { %v4914_v46 = vpop.xlane.xlu1 %4913 }
0x14ca   : > { %v4918_v28 = vsub.f32 %v4906_v27, %v4914_v46 }
0x14cc   : > { %v4920_v23 = vmul.f32 1.442695, %v4918_v28 }
0x14cd   : > { %v4937_v63 = vpop.permute.xlu1 %4936  ;;  %v4917_v35 = vpop.xlane.xlu0 %4916 }
0x14ce   : > { %8827 = vpow2.f32 %v4920_v23  ;;  %v4919_v47 = vsub.f32 %v4909_v6, %v4917_v35  ;;  %7829 = vmatpush3.bf16.msra.mxu1 %v4937_v63 }
0x14cf   : > { %7834 = vmatprep.subr.bf16.mxu1 %v11627_v59 }
0x14d0   : > { %v4922_v55 = vmul.f32 1.442695, %v4919_v47 }
0x14d1   : > { %v5004_v52 = vpop.permute.xlu0 %5003 }
0x14d2   : > { %8829 = vpow2.f32 %v4922_v55 }
0x14d5   : > { %v4998_v27 = vpop.permute.xlu0 %4997 }
0x14db   : > { %v8828_v39 = vpop.eup %8827 }
0x14dc   : > { %v4924_v62 = vsel %vm3795_vm2, %v8828_v39, 0.0 }
0x14dd   : > { %4925 = vadd.xlane.f32.xlu1 %v4924_v62 }
0x14df   : > { %v8830_v48 = vpop.eup %8829 }
0x14e0   : > { %v4927_v33 = vsel %vm3795_vm2, %v8830_v48, 0.0 }
0x14e1   : > { %4928 = vadd.xlane.f32.xlu1 %v4927_v33 }
0x14f2   : > { %5001 = vrot.lane.b32.xlu1 %v10597_v21, %s8948_s15 }
0x14f6   : > { %4999 = vrot.lane.b32.xlu1 %v10601_v54, %s8948_s15 }
0x1566   : > { %v4926_v22 = vpop.xlane.xlu1 %4925 }
0x1567   : > { %8831 = vrcp.f32 %v4926_v22 }
0x156a   : > { %v4929_v49 = vpop.xlane.xlu1 %4928 }
0x156b   : > { %8833 = vrcp.f32 %v4929_v49 }
0x156e   : > { %v5002_v21 = vpop.permute.xlu1 %5001 }
0x1572   : > { %v5000_v54 = vpop.permute.xlu1 %4999 }
0x1574   : > { %v8832_v26 = vpop.eup %8831 }
0x1575   : > { %v4932_v51 = vmul.f32 %v8832_v26, %v8828_v39 }
0x1578   : > { %v8834_v29 = vpop.eup %8833 }
0x1579   : > { %v4933_v5 = vmul.f32 %v8834_v29, %v8830_v48 }
0x157b   : > { %v4934_v42 = vpack.c.bf16 %v4933_v5, %v4932_v51 }
0x157d   : > { %7831 = vmatmul.mubr.msk.bf16.vlgmr.msra.gmra.mxu1 %vm3795_vm2, %v4934_v42 }
0x157e   : > { %7835 = vmatpush3.bf16.msra.mxu1 %v5004_v52  ;;  %7842 = vmatprep.mubr.msk.bf16.mxu1 %vm8947_vm0, %v11627_v59 }
0x157f   : > { %7836 = vmatprep.subr.bf16.mxu1 %v11627_v59 }
0x1582   : > { %7837 = vmatpush3.bf16.msra.mxu1 %v5002_v21 }
0x1583   : > { %7838 = vmatprep.subr.bf16.mxu1 %v11627_v59 }
0x1586   : > { %7839 = vmatpush3.bf16.msra.mxu1 %v5000_v54 }
0x1587   : > { %7840 = vmatprep.subr.bf16.mxu1 %v11627_v59 }
0x158a   : > { %7841 = vmatpush3.bf16.msra.mxu1 %v4998_v27 }
0x158b   : > { %7864 = vmatprep.subr.bf16.mxu1 %v11627_v59 }
0x158d   : > { %7843 = vmatmul.mubr.msk.bf16.vlgmr.msra.gmra.mxu1 %vm3750_vm1, %v9979_v36 }
0x158e   : > { %7866 = vmatprep.mubr.msk.bf16.mxu1 %vm8947_vm0, %v11627_v59 }
0x163d   : > { %v10897_v13 = vpop.f32.mrf.mxu1 }
0x163f   : > { %v7832_v61 = vpop.f32.mrf.mxu1 }
0x1641   : > { %v10899_v41 = vpop.f32.mrf.mxu1 }
0x1643   : > { %v7833_v6 = vpop.f32.mrf.mxu1 }
0x164d   : > { %v5046_v58 = vpop.f32.mrf.mxu1 }
0x164e   : > { %v5047_v34 = vadd.f32 %v10834_v31, %v5046_v58 }
0x164f   : > { %v7844_v46 = vpop.f32.mrf.mxu1 }
0x1650   : > { %v5053_v28 = vsel %vm3795_vm2, %v5047_v34, -inf }
0x1651   : > { %5054 = vmax.xlane.f32.xlu1 %v5053_v28  ;;  %v5049_v23 = vpop.f32.mrf.mxu1 }
0x1652   : > { %v5050_v63 = vadd.f32 %v10838_v38, %v5049_v23 }
0x1653   : > { %v7845_v35 = vpop.f32.mrf.mxu1 }
0x1654   : > { %v5056_v47 = vsel %vm3795_vm2, %v5050_v63, -inf }
0x1655   : > { %5057 = vmax.xlane.f32.xlu0 %v5056_v47 }
0x16da   : > { %v5055_v55 = vpop.xlane.xlu1 %5054 }
0x16db   : > { %v5059_v39 = vsub.f32 %v5047_v34, %v5055_v55 }
0x16dd   : > { %v5061_v62 = vmul.f32 1.442695, %v5059_v39 }
0x16de   : > { %v5058_v48 = vpop.xlane.xlu0 %5057 }
0x16df   : > { %8835 = vpow2.f32 %v5061_v62  ;;  %v5060_v33 = vsub.f32 %v5050_v63, %v5058_v48 }
0x16e1   : > { %v5063_v22 = vmul.f32 1.442695, %v5060_v33 }
0x16e3   : > { %8837 = vpow2.f32 %v5063_v22 }
0x16ec   : > { %v8836_v49 = vpop.eup %8835 }
0x16ed   : > { %v5065_v26 = vsel %vm3795_vm2, %v8836_v49, 0.0 }
0x16ee   : > { %5066 = vadd.xlane.f32.xlu0 %v5065_v26 }
0x16f0   : > { %v8838_v29 = vpop.eup %8837 }
0x16f1   : > { %v5068_v51 = vsel %vm3795_vm2, %v8838_v29, 0.0 }
0x16f2   : > { %5069 = vadd.xlane.f32.xlu1 %v5068_v51 }
0x1703   : > { %5133 = vrot.lane.b32.xlu1 %v10634_v53, %s8948_s15 }
0x1704   : > { %5135 = vrot.lane.b32.xlu0 %v10627_v45, %s8948_s15 }
0x1707   : > { %5131 = vrot.lane.b32.xlu1 %v10638_v56, %s8948_s15 }
0x1708   : > { %5129 = vrot.lane.b32.xlu0 %v10642_v8, %s8948_s15 }
0x170b   : > { %5123 = vrot.lane.b32.xlu1 %v9979_v36, %s8945_s17 }
0x1777   : > { %v5067_v5 = vpop.xlane.xlu0 %5066 }
0x1778   : > { %8839 = vrcp.f32 %v5067_v5 }
0x177b   : > { %v5070_v42 = vpop.xlane.xlu1 %5069  ;;  %v5136_v61 = vpop.permute.xlu0 %5135 }
0x177c   : > { %8841 = vrcp.f32 %v5070_v42 }
0x177f   : > { %v5134_v45 = vpop.permute.xlu1 %5133  ;;  %v5130_v56 = vpop.permute.xlu0 %5129 }
0x1783   : > { %v5132_v36 = vpop.permute.xlu1 %5131 }
0x1785   : > { %v8840_v52 = vpop.eup %8839 }
0x1786   : > { %v5073_v54 = vmul.f32 %v8840_v52, %v8836_v49 }
0x1787   : > { %v5124_v8 = vpop.permute.xlu1 %5123 }
0x1789   : > { %v8842_v21 = vpop.eup %8841 }
0x178a   : > { %v5074_v53 = vmul.f32 %v8842_v21, %v8838_v29 }
0x178c   : > { %v5075_v27 = vpack.c.bf16 %v5074_v53, %v5073_v54 }
0x178e   : > { %7849 = vmatmul.mubr.msk.bf16.vlgmr.msra.gmra.mxu0 %vm3795_vm2, %v5075_v27 }
0x178f   : > { %7853 = vmatpush3.bf16.msra.mxu0 %v5136_v61  ;;  %7860 = vmatprep.mubr.msk.bf16.mxu0 %vm8947_vm0, %v11627_v59 }
0x1790   : > { %7854 = vmatprep.subr.bf16.mxu0 %v11627_v59 }
0x1793   : > { %7855 = vmatpush3.bf16.msra.mxu0 %v5134_v45 }
0x1794   : > { %7856 = vmatprep.subr.bf16.mxu0 %v11627_v59 }
0x1797   : > { %7857 = vmatpush3.bf16.msra.mxu0 %v5132_v36 }
0x1798   : > { %7858 = vmatprep.subr.bf16.mxu0 %v11627_v59 }
0x179b   : > { %7859 = vmatpush3.bf16.msra.mxu0 %v5130_v56 }
0x179c   : > { %7882 = vmatprep.subr.bf16.mxu0 %v11627_v59 }
0x179e   : > { %7861 = vmatmul.mubr.msk.bf16.vlgmr.msra.gmra.mxu0 %vm3750_vm1, %v5124_v8 }
0x179f   : > { %7883 = vmatpush3.bf16.msra.mxu0 %v10550_v9  ;;  %7884 = vmatprep.mubr.msk.bf16.mxu0 %vm8947_vm0, %v11627_v59 }
0x17a0   : > { %7888 = vmatprep.subr.bf16.mxu0 %v11627_v59 }
0x184e   : > { %v5113_v6 = vpop.f32.mrf.mxu0 }
0x184f   : > { %5120 = vst.msk [vmem:[#allocation2 + $0x48] sm:$0xff] %vm3750_vm1, %v5113_v6 }
0x1850   : > { %v7850_v58 = vpop.f32.mrf.mxu0 }
0x1852   : > { %v5116_v34 = vpop.f32.mrf.mxu0 }
0x1853   : > { %5121 = vst.msk [vmem:[#allocation2 + $0x68] sm:$0xff] %vm3750_vm1, %v5116_v34 }
0x1854   : > { %v7851_v46 = vpop.f32.mrf.mxu0 }
0x185e   : > { %v5178_v28 = vpop.f32.mrf.mxu0 }
0x185f   : > { %v5179_v23 = vadd.f32 %v10834_v31, %v5178_v28 }
0x1860   : > { %v7862_v63 = vpop.f32.mrf.mxu0 }
0x1861   : > { %v5185_v35 = vsel %vm3795_vm2, %v5179_v23, -inf }
0x1862   : > { %5186 = vmax.xlane.f32.xlu0 %v5185_v35  ;;  %v5181_v47 = vpop.f32.mrf.mxu0 }
0x1863   : > { %v5182_v55 = vadd.f32 %v10838_v38, %v5181_v47 }
0x1864   : > { %v7863_v39 = vpop.f32.mrf.mxu0 }
0x1865   : > { %v5188_v62 = vsel %vm3795_vm2, %v5182_v55, -inf }
0x1866   : > { %5189 = vmax.xlane.f32.xlu1 %v5188_v62 }
0x1877   : > { %5209 = vrot.lane.b32.xlu1 %v10544_v18, %s8945_s17 }
0x187b   : > { %5274 = vrot.lane.b32.xlu1 %v10673_v37, %s8948_s15 }
0x187f   : > { %5272 = vrot.lane.b32.xlu1 %v10677_v40, %s8948_s15 }
0x18eb   : > { %v5187_v48 = vpop.xlane.xlu0 %5186 }
0x18ec   : > { %v5191_v33 = vsub.f32 %v5179_v23, %v5187_v48 }
0x18ee   : > { %v5193_v22 = vmul.f32 1.442695, %v5191_v33 }
0x18ef   : > { %v5190_v49 = vpop.xlane.xlu1 %5189 }
0x18f0   : > { %8843 = vpow2.f32 %v5193_v22  ;;  %v5192_v26 = vsub.f32 %v5182_v55, %v5190_v49 }
0x18f2   : > { %v5195_v29 = vmul.f32 1.442695, %v5192_v26 }
0x18f3   : > { %v5210_v51 = vpop.permute.xlu1 %5209 }
0x18f4   : > { %8845 = vpow2.f32 %v5195_v29  ;;  %7865 = vmatpush3.bf16.msra.mxu1 %v5210_v51 }
0x18f5   : > { %7870 = vmatprep.subr.bf16.mxu1 %v11627_v59 }
0x18fd   : > { %v8844_v5 = vpop.eup %8843 }
0x18fe   : > { %v5197_v18 = vsel %vm3795_vm2, %v8844_v5, 0.0 }
0x18ff   : > { %5198 = vadd.xlane.f32.xlu0 %v5197_v18 }
0x1901   : > { %v8846_v37 = vpop.eup %8845 }
0x1902   : > { %v5200_v42 = vsel %vm3795_vm2, %v8846_v37, 0.0 }
0x1903   : > { %5201 = vadd.xlane.f32.xlu0 %v5200_v42 }
0x1919   : > { %5276 = vrot.lane.b32.xlu0 %v10669_v30, %s8948_s15  ;;  %v5275_v30 = vpop.permute.xlu1 %5274 }
0x191d   : > { %5270 = vrot.lane.b32.xlu0 %v10681_v2, %s8948_s15  ;;  %v5273_v2 = vpop.permute.xlu1 %5272 }
0x1988   : > { %v5199_v40 = vpop.xlane.xlu0 %5198 }
0x1989   : > { %8847 = vrcp.f32 %v5199_v40 }
0x198c   : > { %v5202_v52 = vpop.xlane.xlu0 %5201 }
0x198d   : > { %8849 = vrcp.f32 %v5202_v52 }
0x1990   : > { %v5277_v45 = vpop.permute.xlu0 %5276 }
0x1994   : > { %v5271_v36 = vpop.permute.xlu0 %5270 }
0x1996   : > { %v8848_v21 = vpop.eup %8847 }
0x1997   : > { %v5205_v53 = vmul.f32 %v8848_v21, %v8844_v5 }
0x199a   : > { %v8850_v54 = vpop.eup %8849 }
0x199b   : > { %v5206_v27 = vmul.f32 %v8850_v54, %v8846_v37 }
0x199d   : > { %v5207_v61 = vpack.c.bf16 %v5206_v27, %v5205_v53 }
0x199f   : > { %7867 = vmatmul.mubr.msk.bf16.vlgmr.msra.gmra.mxu1 %vm3795_vm2, %v5207_v61 }
0x19a0   : > { %7871 = vmatpush3.bf16.msra.mxu1 %v5277_v45  ;;  %7878 = vmatprep.mubr.msk.bf16.mxu1 %vm8947_vm0, %v11627_v59 }
0x19a1   : > { %7872 = vmatprep.subr.bf16.mxu1 %v11627_v59 }
0x19a4   : > { %7873 = vmatpush3.bf16.msra.mxu1 %v5275_v30 }
0x19a5   : > { %7874 = vmatprep.subr.bf16.mxu1 %v11627_v59 }
0x19a8   : > { %7875 = vmatpush3.bf16.msra.mxu1 %v5273_v2 }
0x19a9   : > { %7876 = vmatprep.subr.bf16.mxu1 %v11627_v59 }
0x19ac   : > { %7877 = vmatpush3.bf16.msra.mxu1 %v5271_v36 }
0x19ad   : > { %7900 = vmatprep.subr.bf16.mxu1 %v11627_v59 }
0x19af   : > { %7879 = vmatmul.mubr.msk.bf16.vlgmr.msra.gmra.mxu1 %vm3750_vm1, %v10169_v19 }
0x19b0   : > { %7902 = vmatprep.mubr.msk.bf16.mxu1 %vm8947_vm0, %v11627_v59 }
0x1a5f   : > { %v10959_v56 = vpop.f32.mrf.mxu1 }
0x1a61   : > { %v7868_v8 = vpop.f32.mrf.mxu1 }
0x1a63   : > { %v10961_v6 = vpop.f32.mrf.mxu1 }
0x1a65   : > { %v7869_v58 = vpop.f32.mrf.mxu1 }
0x1a6f   : > { %v5319_v34 = vpop.f32.mrf.mxu1 }
0x1a70   : > { %v5320_v46 = vadd.f32 %v10834_v31, %v5319_v34 }
0x1a71   : > { %v7880_v28 = vpop.f32.mrf.mxu1 }
0x1a72   : > { %v5326_v23 = vsel %vm3795_vm2, %v5320_v46, -inf }
0x1a73   : > { %5327 = vmax.xlane.f32.xlu1 %v5326_v23  ;;  %v5322_v63 = vpop.f32.mrf.mxu1 }
0x1a74   : > { %v5323_v35 = vadd.f32 %v10838_v38, %v5322_v63 }
0x1a75   : > { %v7881_v47 = vpop.f32.mrf.mxu1 }
0x1a76   : > { %v5329_v55 = vsel %vm3795_vm2, %v5323_v35, -inf }
0x1a77   : > { %5330 = vmax.xlane.f32.xlu0 %v5329_v55 }
0x1afc   : > { %v5328_v39 = vpop.xlane.xlu1 %5327 }
0x1afd   : > { %v5332_v62 = vsub.f32 %v5320_v46, %v5328_v39 }
0x1aff   : > { %v5334_v48 = vmul.f32 1.442695, %v5332_v62 }
0x1b00   : > { %v5331_v33 = vpop.xlane.xlu0 %5330 }
0x1b01   : > { %8851 = vpow2.f32 %v5334_v48  ;;  %v5333_v22 = vsub.f32 %v5323_v35, %v5331_v33 }
0x1b03   : > { %v5336_v49 = vmul.f32 1.442695, %v5333_v22 }
0x1b05   : > { %8853 = vpow2.f32 %v5336_v49 }
0x1b0e   : > { %v8852_v26 = vpop.eup %8851 }
0x1b0f   : > { %v5338_v29 = vsel %vm3795_vm2, %v8852_v26, 0.0 }
0x1b10   : > { %5339 = vadd.xlane.f32.xlu0 %v5338_v29 }
0x1b12   : > { %v8854_v51 = vpop.eup %8853 }
0x1b13   : > { %v5341_v5 = vsel %vm3795_vm2, %v8854_v51, 0.0 }
0x1b14   : > { %5342 = vadd.xlane.f32.xlu1 %v5341_v5 }
0x1b25   : > { %5406 = vrot.lane.b32.xlu1 %v10708_v50, %s8948_s15 }
0x1b26   : > { %5408 = vrot.lane.b32.xlu0 %v10701_v10, %s8948_s15 }
0x1b29   : > { %5404 = vrot.lane.b32.xlu1 %v10712_v7, %s8948_s15 }
0x1b2a   : > { %5402 = vrot.lane.b32.xlu0 %v10716_v43, %s8948_s15 }
0x1b2d   : > { %5396 = vrot.lane.b32.xlu1 %v10169_v19, %s8945_s17 }
0x1b99   : > { %v5340_v18 = vpop.xlane.xlu0 %5339 }
0x1b9a   : > { %8855 = vrcp.f32 %v5340_v18 }
0x1b9d   : > { %v5343_v37 = vpop.xlane.xlu1 %5342  ;;  %v5409_v54 = vpop.permute.xlu0 %5408 }
0x1b9e   : > { %8857 = vrcp.f32 %v5343_v37 }
0x1ba1   : > { %v5407_v10 = vpop.permute.xlu1 %5406  ;;  %v5403_v7 = vpop.permute.xlu0 %5402 }
0x1ba5   : > { %v5405_v19 = vpop.permute.xlu1 %5404 }
0x1ba7   : > { %v8856_v42 = vpop.eup %8855 }
0x1ba8   : > { %v5346_v52 = vmul.f32 %v8856_v42, %v8852_v26 }
0x1ba9   : > { %v5397_v43 = vpop.permute.xlu1 %5396 }
0x1bab   : > { %v8858_v40 = vpop.eup %8857 }
0x1bac   : > { %v5347_v50 = vmul.f32 %v8858_v40, %v8854_v51 }
0x1bae   : > { %v5348_v21 = vpack.c.bf16 %v5347_v50, %v5346_v52 }
0x1bb0   : > { %7885 = vmatmul.mubr.msk.bf16.vlgmr.msra.gmra.mxu0 %vm3795_vm2, %v5348_v21 }
0x1bb1   : > { %7889 = vmatpush3.bf16.msra.mxu0 %v5409_v54  ;;  %7896 = vmatprep.mubr.msk.bf16.mxu0 %vm8947_vm0, %v11627_v59 }
0x1bb2   : > { %7890 = vmatprep.subr.bf16.mxu0 %v11627_v59 }
0x1bb5   : > { %7891 = vmatpush3.bf16.msra.mxu0 %v5407_v10 }
0x1bb6   : > { %7892 = vmatprep.subr.bf16.mxu0 %v11627_v59 }
0x1bb9   : > { %7893 = vmatpush3.bf16.msra.mxu0 %v5405_v19 }
0x1bba   : > { %7894 = vmatprep.subr.bf16.mxu0 %v11627_v59 }
0x1bbd   : > { %7895 = vmatpush3.bf16.msra.mxu0 %v5403_v7 }
0x1bbe   : > { %7918 = vmatprep.subr.bf16.mxu0 %v11627_v59 }
0x1bc0   : > { %7897 = vmatmul.mubr.msk.bf16.vlgmr.msra.gmra.mxu0 %vm3750_vm1, %v5397_v43 }
0x1bc1   : > { %7919 = vmatpush3.bf16.msra.mxu0 %v10552_v57  ;;  %7920 = vmatprep.mubr.msk.bf16.mxu0 %vm8947_vm0, %v11627_v59 }
0x1bc2   : > { %7924 = vmatprep.subr.bf16.mxu0 %v11627_v59 }
0x1c70   : > { %v5386_v53 = vpop.f32.mrf.mxu0 }
0x1c71   : > { %5393 = vst.msk [vmem:[#allocation2 + $0x50] sm:$0xff] %vm3750_vm1, %v5386_v53 }
0x1c72   : > { %v7886_v27 = vpop.f32.mrf.mxu0 }
0x1c74   : > { %v5389_v61 = vpop.f32.mrf.mxu0 }
0x1c75   : > { %5394 = vst.msk [vmem:[#allocation2 + $0x70] sm:$0xff] %vm3750_vm1, %v5389_v61 }
0x1c76   : > { %v7887_v45 = vpop.f32.mrf.mxu0 }
0x1c80   : > { %v5451_v30 = vpop.f32.mrf.mxu0 }
0x1c81   : > { %v5452_v2 = vadd.f32 %v10834_v31, %v5451_v30 }
0x1c82   : > { %v7898_v36 = vpop.f32.mrf.mxu0 }
0x1c83   : > { %v5458_v8 = vsel %vm3795_vm2, %v5452_v2, -inf }
0x1c84   : > { %5459 = vmax.xlane.f32.xlu0 %v5458_v8  ;;  %v5454_v58 = vpop.f32.mrf.mxu0 }
0x1c85   : > { %v5455_v34 = vadd.f32 %v10838_v38, %v5454_v58 }
0x1c86   : > { %v7899_v46 = vpop.f32.mrf.mxu0 }
0x1c87   : > { %v5461_v28 = vsel %vm3795_vm2, %v5455_v34, -inf }
0x1c88   : > { %5462 = vmax.xlane.f32.xlu1 %v5461_v28 }
0x1c99   : > { %5482 = vrot.lane.b32.xlu1 %v10550_v9, %s8945_s17 }
0x1c9d   : > { %5547 = vrot.lane.b32.xlu1 %v10747_v17, %s8948_s15 }
0x1ca1   : > { %5545 = vrot.lane.b32.xlu1 %v10751_v20, %s8948_s15 }
0x1d0d   : > { %v5460_v23 = vpop.xlane.xlu0 %5459 }
0x1d0e   : > { %v5464_v63 = vsub.f32 %v5452_v2, %v5460_v23 }
0x1d10   : > { %v5466_v35 = vmul.f32 1.442695, %v5464_v63 }
0x1d11   : > { %v5463_v47 = vpop.xlane.xlu1 %5462 }
0x1d12   : > { %8859 = vpow2.f32 %v5466_v35  ;;  %v5465_v55 = vsub.f32 %v5455_v34, %v5463_v47 }
0x1d14   : > { %v5468_v39 = vmul.f32 1.442695, %v5465_v55 }
0x1d15   : > { %v5483_v62 = vpop.permute.xlu1 %5482 }
0x1d16   : > { %8861 = vpow2.f32 %v5468_v39  ;;  %7901 = vmatpush3.bf16.msra.mxu1 %v5483_v62 }
0x1d17   : > { %7906 = vmatprep.subr.bf16.mxu1 %v11627_v59 }
0x1d1f   : > { %v8860_v48 = vpop.eup %8859 }
0x1d20   : > { %v5470_v9 = vsel %vm3795_vm2, %v8860_v48, 0.0 }
0x1d21   : > { %5471 = vadd.xlane.f32.xlu0 %v5470_v9 }
0x1d23   : > { %v8862_v17 = vpop.eup %8861 }
0x1d24   : > { %v5473_v33 = vsel %vm3795_vm2, %v8862_v17, 0.0 }
0x1d25   : > { %5474 = vadd.xlane.f32.xlu0 %v5473_v33 }
0x1d3b   : > { %5549 = vrot.lane.b32.xlu0 %v10743_v1, %s8948_s15  ;;  %v5548_v1 = vpop.permute.xlu1 %5547 }
0x1d3f   : > { %5543 = vrot.lane.b32.xlu0 %v10755_v0, %s8948_s15  ;;  %v5546_v0 = vpop.permute.xlu1 %5545 }
0x1daa   : > { %v5472_v20 = vpop.xlane.xlu0 %5471 }
0x1dab   : > { %8863 = vrcp.f32 %v5472_v20 }
0x1dae   : > { %v5475_v22 = vpop.xlane.xlu0 %5474 }
0x1daf   : > { %8865 = vrcp.f32 %v5475_v22 }
0x1db2   : > { %v5550_v18 = vpop.permute.xlu0 %5549 }
0x1db6   : > { %v5544_v37 = vpop.permute.xlu0 %5543 }
0x1db8   : > { %v8864_v49 = vpop.eup %8863 }
0x1db9   : > { %v5478_v29 = vmul.f32 %v8864_v49, %v8860_v48 }
0x1dbc   : > { %v8866_v26 = vpop.eup %8865 }
0x1dbd   : > { %v5479_v51 = vmul.f32 %v8866_v26, %v8862_v17 }
0x1dbf   : > { %v5480_v5 = vpack.c.bf16 %v5479_v51, %v5478_v29 }
0x1dc1   : > { %7903 = vmatmul.mubr.msk.bf16.vlgmr.msra.gmra.mxu1 %vm3795_vm2, %v5480_v5 }
0x1dc2   : > { %7907 = vmatpush3.bf16.msra.mxu1 %v5550_v18  ;;  %7914 = vmatprep.mubr.msk.bf16.mxu1 %vm8947_vm0, %v11627_v59  ;;  %v8575_v18 = vld [vmem:[%s11604_s10 + $0x260] ss:$16 sps:$4 sm:$0xff]  }
0x1dc3   : > { %7908 = vmatprep.subr.bf16.mxu1 %v11627_v59 }
0x1dc6   : > { %7909 = vmatpush3.bf16.msra.mxu1 %v5548_v1  ;;  %v8580_v1 = vld [vmem:[%s11604_s10 + $0x244] ss:$16 sps:$4 sm:$0xff]  }
0x1dc7   : > { %7910 = vmatprep.subr.bf16.mxu1 %v11627_v59 }
0x1dca   : > { %7911 = vmatpush3.bf16.msra.mxu1 %v5546_v0  ;;  %v8578_v0 = vld [vmem:[%s11604_s10 + $0x240] ss:$16 sps:$4 sm:$0xff]  }
0x1dcb   : > { %7912 = vmatprep.subr.bf16.mxu1 %v11627_v59 }
0x1dce   : > { %7913 = vmatpush3.bf16.msra.mxu1 %v5544_v37  ;;  %v8583_v37 = vld [vmem:[%s11604_s10 + $0x224] ss:$16 sps:$4 sm:$0xff]  }
0x1dcf   : > { %7936 = vmatprep.subr.bf16.mxu1 %v11627_v59 }
0x1dd1   : > { %7915 = vmatmul.mubr.msk.bf16.vlgmr.msra.gmra.mxu1 %vm3750_vm1, %v10180_v25 }
0x1dd2   : > { %7938 = vmatprep.mubr.msk.bf16.mxu1 %vm8947_vm0, %v11627_v59 }
0x1e81   : > { %v11021_v42 = vpop.f32.mrf.mxu1 }
0x1e83   : > { %v7904_v40 = vpop.f32.mrf.mxu1 }
0x1e84   : > { %v8581_v40 = vld [vmem:[%s11604_s10 + $0x220] ss:$16 sps:$4 sm:$0xff]  }
0x1e85   : > { %v11023_v52 = vpop.f32.mrf.mxu1 }
0x1e87   : > { %v7905_v50 = vpop.f32.mrf.mxu1 }
0x1e88   : > { %v8586_v50 = vld [vmem:[%s11604_s10 + $0x204] ss:$16 sps:$4 sm:$0xff]  }
0x1e91   : > { %v5592_v21 = vpop.f32.mrf.mxu1 }
0x1e92   : > { %v5593_v54 = vadd.f32 %v10834_v31, %v5592_v21  ;;  %v8584_v21 = vld [vmem:[%s11604_s10 + $0x200] ss:$16 sps:$4 sm:$0xff]  }
0x1e93   : > { %v7916_v10 = vpop.f32.mrf.mxu1 }
0x1e94   : > { %v5599_v19 = vsel %vm3795_vm2, %v5593_v54, -inf  ;;  %v8587_v10 = vld [vmem:[%s11604_s10 + $0x3e0] ss:$16 sps:$4 sm:$0xff]  }
0x1e95   : > { %5600 = vmax.xlane.f32.xlu1 %v5599_v19  ;;  %v5595_v7 = vpop.f32.mrf.mxu1 }
0x1e96   : > { %v5596_v43 = vadd.f32 %v10838_v38, %v5595_v7 }
0x1e97   : > { %v7917_v53 = vpop.f32.mrf.mxu1 }
0x1e98   : > { %v5602_v27 = vsel %vm3795_vm2, %v5596_v43, -inf }
0x1e99   : > { %5603 = vmax.xlane.f32.xlu0 %v5602_v27 }
0x1f1e   : > { %v5601_v61 = vpop.xlane.xlu1 %5600 }
0x1f1f   : > { %v5605_v45 = vsub.f32 %v5593_v54, %v5601_v61  ;;  %v8589_v54 = vld [vmem:[%s11604_s10 + $0x3e4] ss:$16 sps:$4 sm:$0xff]  }
0x1f21   : > { %v5607_v30 = vmul.f32 1.442695, %v5605_v45 }
0x1f22   : > { %v5604_v2 = vpop.xlane.xlu0 %5603 }
0x1f23   : > { %8867 = vpow2.f32 %v5607_v30  ;;  %v5606_v36 = vsub.f32 %v5596_v43, %v5604_v2 }
0x1f25   : > { %v5609_v8 = vmul.f32 1.442695, %v5606_v36 }
0x1f27   : > { %8869 = vpow2.f32 %v5609_v8 }
0x1f30   : > { %v8868_v58 = vpop.eup %8867 }
0x1f31   : > { %v5611_v34 = vsel %vm3795_vm2, %v8868_v58, 0.0 }
0x1f32   : > { %5612 = vadd.xlane.f32.xlu0 %v5611_v34 }
0x1f34   : > { %v8870_v46 = vpop.eup %8869 }
0x1f35   : > { %v5614_v28 = vsel %vm3795_vm2, %v8870_v46, 0.0 }
0x1f36   : > { %5615 = vadd.xlane.f32.xlu1 %v5614_v28 }
0x1f47   : > { %5679 = vrot.lane.b32.xlu1 %v10782_v60, %s8948_s15 }
0x1f48   : > { %5681 = vrot.lane.b32.xlu0 %v10775_v32, %s8948_s15 }
0x1f4b   : > { %5677 = vrot.lane.b32.xlu1 %v10786_v44, %s8948_s15 }
0x1f4c   : > { %5675 = vrot.lane.b32.xlu0 %v10790_v14, %s8948_s15 }
0x1f4f   : > { %5669 = vrot.lane.b32.xlu1 %v10180_v25, %s8945_s17 }
0x1fbb   : > { %v5613_v23 = vpop.xlane.xlu0 %5612 }
0x1fbc   : > { %8871 = vrcp.f32 %v5613_v23 }
0x1fbf   : > { %v5616_v63 = vpop.xlane.xlu1 %5615  ;;  %v5682_v62 = vpop.permute.xlu0 %5681 }
0x1fc0   : > { %8873 = vrcp.f32 %v5616_v63  ;;  %v8590_v63 = vld [vmem:[%s11604_s10 + $0x3c0] ss:$16 sps:$4 sm:$0xff]  }
0x1fc3   : > { %v5680_v32 = vpop.permute.xlu1 %5679  ;;  %v5676_v44 = vpop.permute.xlu0 %5675 }
0x1fc7   : > { %v5678_v25 = vpop.permute.xlu1 %5677 }
0x1fc9   : > { %v8872_v35 = vpop.eup %8871 }
0x1fca   : > { %v5619_v55 = vmul.f32 %v8872_v35, %v8868_v58  ;;  %v8592_v35 = vld [vmem:[%s11604_s10 + $0x3c4] ss:$16 sps:$4 sm:$0xff]  }
0x1fcb   : > { %v5670_v14 = vpop.permute.xlu1 %5669 }
0x1fcd   : > { %v8874_v47 = vpop.eup %8873 }
0x1fce   : > { %v5620_v60 = vmul.f32 %v8874_v47, %v8870_v46 }
0x1fd0   : > { %v5621_v39 = vpack.c.bf16 %v5620_v60, %v5619_v55  ;;  %v8593_v55 = vld [vmem:[%s11604_s10 + $0x3a0] ss:$16 sps:$4 sm:$0xff]   ;;  %v8595_v60 = vld [vmem:[%s11604_s10 + $0x3a4] ss:$16 sps:$4 sm:$0xff]  }
0x1fd2   : > { %7921 = vmatmul.mubr.msk.bf16.vlgmr.msra.gmra.mxu0 %vm3795_vm2, %v5621_v39  ;;  %v8596_v39 = vld [vmem:[%s11604_s10 + $0x380] ss:$16 sps:$4 sm:$0xff]  }
0x1fd3   : > { %7925 = vmatpush3.bf16.msra.mxu0 %v5682_v62  ;;  %7932 = vmatprep.mubr.msk.bf16.mxu0 %vm8947_vm0, %v11627_v59  ;;  %v8598_v62 = vld [vmem:[%s11604_s10 + $0x384] ss:$16 sps:$4 sm:$0xff]  }
0x1fd4   : > { %7926 = vmatprep.subr.bf16.mxu0 %v11627_v59 }
0x1fd7   : > { %7927 = vmatpush3.bf16.msra.mxu0 %v5680_v32  ;;  %v8599_v32 = vld [vmem:[%s11604_s10 + $0x360] ss:$16 sps:$4 sm:$0xff]  }
0x1fd8   : > { %7928 = vmatprep.subr.bf16.mxu0 %v11627_v59 }
0x1fdb   : > { %7929 = vmatpush3.bf16.msra.mxu0 %v5678_v25  ;;  %v8601_v25 = vld [vmem:[%s11604_s10 + $0x364] ss:$16 sps:$4 sm:$0xff]  }
0x1fdc   : > { %7930 = vmatprep.subr.bf16.mxu0 %v11627_v59 }
0x1fdf   : > { %7931 = vmatpush3.bf16.msra.mxu0 %v5676_v44  ;;  %v8602_v44 = vld [vmem:[%s11604_s10 + $0x340] ss:$16 sps:$4 sm:$0xff]  }
0x1fe2   : > { %7933 = vmatmul.mubr.msk.bf16.vlgmr.msra.gmra.mxu0 %vm3750_vm1, %v5670_v14  ;;  %v8604_v14 = vld [vmem:[%s11604_s10 + $0x344] ss:$16 sps:$4 sm:$0xff]  }
0x2092   : > { %v5659_v48 = vpop.f32.mrf.mxu0 }
0x2093   : > { %5666 = vst.msk [vmem:[#allocation2 + $0x58] sm:$0xff] %vm3750_vm1, %v5659_v48  ;;  %v8607_v48 = vld [vmem:[%s11604_s10 + $0xe4] ss:$16 sps:$4 sm:$0xff]  }
0x2094   : > { %v7922_v9 = vpop.f32.mrf.mxu0 }
0x2095   : > { %v8608_v9 = vld [vmem:[%s11604_s10 + $0x320] ss:$16 sps:$4 sm:$0xff]  }
0x2096   : > { %v5662_v17 = vpop.f32.mrf.mxu0 }
0x2097   : > { %5667 = vst.msk [vmem:[#allocation2 + $0x78] sm:$0xff] %vm3750_vm1, %v5662_v17  ;;  %v8616_v17 = vld [vmem:[%s11604_s10 + $0x304] ss:$16 sps:$4 sm:$0xff]  }
0x2098   : > { %v7923_v33 = vpop.f32.mrf.mxu0 }
0x2099   : > { %v11629_v33 = vld [vmem:[#allocation13_spill] sm:$0xff] }
0x20a2   : > { %v5724_v20 = vpop.f32.mrf.mxu0 }
0x20a3   : > { %v5725_v22 = vadd.f32 %v10834_v31, %v5724_v20  ;;  %v8569_v31 = vld [vmem:[%s11604_s10 + $0x2a0] ss:$16 sps:$4 sm:$0xff]  }
0x20a4   : > { %v7934_v49 = vpop.f32.mrf.mxu0 }
0x20a5   : > { %v5731_v26 = vsel %vm3795_vm2, %v5725_v22, -inf }
0x20a6   : > { %5732 = vmax.xlane.f32.xlu0 %v5731_v26  ;;  %v5727_v59 = vpop.f32.mrf.mxu0 }
0x20a7   : > { %v5728_v29 = vadd.f32 %v10838_v38, %v5727_v59  ;;  %v8574_v38 = vld [vmem:[%s11604_s10 + $0x284] ss:$16 sps:$4 sm:$0xff]  }
0x20a8   : > { %v7935_v51 = vpop.f32.mrf.mxu0 }
0x20a9   : > { %v5734_v5 = vsel %vm3795_vm2, %v5728_v29, -inf }
0x20aa   : > { %5735 = vmax.xlane.f32.xlu1 %v5734_v5 }
0x20bb   : > { %5755 = vrot.lane.b32.xlu1 %v10552_v57, %s8945_s17  ;;  %v8563_v57 = vld [vmem:[%s11604_s10 + $0x2e0] ss:$16 sps:$4 sm:$0xff]  }
0x20bf   : > { %4229 = vrot.lane.b32.xlu1 %v10691_v11, %s8945_s17  ;;  %v8568_v11 = vld [vmem:[%s11604_s10 + $0x2c4] ss:$16 sps:$4 sm:$0xff]  }
0x20c3   : > { %3985 = vrot.lane.b32.xlu1 %v10615_v16, %s8945_s17  ;;  %v8565_v16 = vld [vmem:[%s11604_s10 + $0x2e4] ss:$16 sps:$4 sm:$0xff]  }
0x20c4   : > { %6679 = vmatprep.subr.bf16.mxu0 %v8565_v16 }
0x20c5   : > { %6680 = vmatpush1.bf16.msra.mxu0 %v8563_v57 }
0x20c6   : > { %6681 = vmatprep.subr.bf16.mxu0 %v8568_v11 }
0x20c7   : > { %4709 = vrot.lane.b32.xlu1 %v10829_v4, %s8945_s17  ;;  %v8571_v4 = vld [vmem:[%s11604_s10 + $0x2a4] ss:$16 sps:$4 sm:$0xff]  }
0x20cb   : > { %4468 = vrot.lane.b32.xlu1 %v10763_v12, %s8945_s17  ;;  %v8566_v12 = vld [vmem:[%s11604_s10 + $0x2c0] ss:$16 sps:$4 sm:$0xff]  }
0x20cc   : > { %6682 = vmatpush1.bf16.msra.mxu0 %v8566_v12  ;;  %v8613_v12 = vld [vmem:[%s11604_s10 + $0xc4] ss:$16 sps:$4 sm:$0xff]  }
0x20cd   : > { %6683 = vmatprep.subr.bf16.mxu0 %v8571_v4 }
0x20cf   : > { %5258 = vrot.lane.b32.xlu1 %v10959_v56, %s8945_s17  ;;  %v8577_v56 = vld [vmem:[%s11604_s10 + $0x264] ss:$16 sps:$4 sm:$0xff]  }
0x20d0   : > { %6684 = vmatpush1.bf16.msra.mxu0 %v8569_v31 }
0x20d1   : > { %6685 = vmatprep.subr.bf16.mxu0 %v8574_v38  ;;  %v8611_v38 = vld [vmem:[%s11604_s10 + $0xc0] ss:$16 sps:$4 sm:$0xff]  }
0x20d3   : > { %4985 = vrot.lane.b32.xlu1 %v10897_v13, %s8945_s17  ;;  %v8572_v13 = vld [vmem:[%s11604_s10 + $0x280] ss:$16 sps:$4 sm:$0xff]  }
0x20d4   : > { %6686 = vmatpush1.bf16.msra.mxu0 %v8572_v13 }
0x20d5   : > { %6687 = vmatprep.subr.bf16.mxu0 %v8577_v56 }
0x20d8   : > { %6688 = vmatpush1.bf16.msra.mxu0 %v8575_v18 }
0x20d9   : > { %6689 = vmatprep.subr.bf16.mxu0 %v8580_v1  ;;  %v8619_v1 = vld [vmem:[%s11604_s10 + $0xa4] ss:$16 sps:$4 sm:$0xff]  }
0x20dc   : > { %6690 = vmatpush1.bf16.msra.mxu0 %v8578_v0 }
0x20dd   : > { %6691 = vmatprep.subr.bf16.mxu0 %v8583_v37  ;;  %v8617_v37 = vld [vmem:[%s11604_s10 + $0xa0] ss:$16 sps:$4 sm:$0xff]  }
0x20e0   : > { %6692 = vmatpush1.bf16.msra.mxu0 %v8581_v40 }
0x20e1   : > { %6693 = vmatprep.subr.bf16.mxu0 %v8586_v50 }
0x20e4   : > { %6694 = vmatpush1.bf16.msra.mxu0 %v8584_v21 }
0x20e5   : > { %6695 = vmatprep.subr.bf16.mxu0 %v8589_v54  ;;  %v8622_v54 = vld [vmem:[%s11604_s10 + $0x84] ss:$16 sps:$4 sm:$0xff]  }
0x20e8   : > { %6696 = vmatpush2.bf16.msra.mxu0 %v8587_v10  ;;  %v8620_v10 = vld [vmem:[%s11604_s10 + $0x80] ss:$16 sps:$4 sm:$0xff]  }
0x20e9   : > { %6697 = vmatprep.subr.bf16.mxu0 %v8592_v35  ;;  %v8647_v35 = vld [vmem:[%s11604_s10 + $0x160] ss:$16 sps:$4 sm:$0xff]  }
0x20ec   : > { %6698 = vmatpush2.bf16.msra.mxu0 %v8590_v63  ;;  %v8649_v63 = vld [vmem:[%s11604_s10 + $0x164] ss:$16 sps:$4 sm:$0xff]  }
0x20ed   : > { %6699 = vmatprep.subr.bf16.mxu0 %v8595_v60  ;;  %v8655_v60 = vld [vmem:[%s11604_s10 + $0x124] ss:$16 sps:$4 sm:$0xff]  }
0x20f0   : > { %6700 = vmatpush2.bf16.msra.mxu0 %v8593_v55  ;;  %v8650_v55 = vld [vmem:[%s11604_s10 + $0x140] ss:$16 sps:$4 sm:$0xff]  }
0x20f1   : > { %6701 = vmatprep.subr.bf16.mxu0 %v8598_v62  ;;  %v8658_v62 = vld [vmem:[%s11604_s10 + $0x104] ss:$16 sps:$4 sm:$0xff]  }
0x20f4   : > { %6702 = vmatpush2.bf16.msra.mxu0 %v8596_v39  ;;  %v8653_v39 = vld [vmem:[%s11604_s10 + $0x120] ss:$16 sps:$4 sm:$0xff]  }
0x20f5   : > { %6703 = vmatprep.subr.bf16.mxu0 %v8601_v25  ;;  %v8661_v25 = vld [vmem:[%s11604_s10 + $0xec] ss:$16 sps:$4 sm:$0xff]  }
0x20f8   : > { %6704 = vmatpush2.bf16.msra.mxu0 %v8599_v32  ;;  %v8656_v32 = vld [vmem:[%s11604_s10 + $0x100] ss:$16 sps:$4 sm:$0xff]  }
0x20f9   : > { %6705 = vmatprep.subr.bf16.mxu0 %v8604_v14 }
0x20fc   : > { %6706 = vmatpush2.bf16.msra.mxu0 %v8602_v44 }
0x212f   : > { %v5733_v19 = vpop.xlane.xlu0 %5732 }
0x2130   : > { %v5737_v7 = vsub.f32 %v5725_v22, %v5733_v19  ;;  %v8625_v19 = vld [vmem:[%s11604_s10 + $0x64] ss:$16 sps:$4 sm:$0xff]  }
0x2132   : > { %v5739_v43 = vmul.f32 1.442695, %v5737_v7  ;;  %v8623_v7 = vld [vmem:[%s11604_s10 + $0x60] ss:$16 sps:$4 sm:$0xff]  }
0x2133   : > { %v5736_v53 = vpop.xlane.xlu1 %5735 }
0x2134   : > { %8875 = vpow2.f32 %v5739_v43  ;;  %v5738_v27 = vsub.f32 %v5728_v29, %v5736_v53  ;;  %v8628_v43 = vld [vmem:[%s11604_s10 + $0x44] ss:$16 sps:$4 sm:$0xff]   ;;  %v8626_v53 = vld [vmem:[%s11604_s10 + $0x40] ss:$16 sps:$4 sm:$0xff]  }
0x2136   : > { %v5741_v61 = vmul.f32 1.442695, %v5738_v27  ;;  %v8631_v27 = vld [vmem:[%s11604_s10 + $0x24] ss:$16 sps:$4 sm:$0xff]  }
0x2137   : > { %v5756_v45 = vpop.permute.xlu1 %5755 }
0x2138   : > { %8877 = vpow2.f32 %v5741_v61  ;;  %7937 = vmatpush3.bf16.msra.mxu1 %v5756_v45  ;;  %v8629_v61 = vld [vmem:[%s11604_s10 + $0x20] ss:$16 sps:$4 sm:$0xff]   ;;  %v8634_v45 = vld [vmem:[%s11604_s10 + $0x4] ss:$16 sps:$4 sm:$0xff]  }
0x2139   : > { %6626 = vmatprep.subr.bf16.mxu1 %v8607_v48 }
0x213b   : > { %v4230_v30 = vpop.permute.xlu1 %4229 }
0x213c   : > { %4234 = vst.msk [vmem:[#allocation2 + $0x28] sm:$0xff] %vm3991_vm3, %v4230_v30  ;;  %v8632_v30 = vld [vmem:[%s11604_s10] ss:$16 sps:$4 sm:$0xff]  }
0x213f   : > { %v3986_v2 = vpop.permute.xlu1 %3985 }
0x2140   : > { %3992 = vst.msk [vmem:[#allocation2] sm:$0xff] %vm3991_vm3, %v3986_v2  ;;  %v8637_v2 = vld [vmem:[%s11604_s10 + $0x1e4] ss:$16 sps:$4 sm:$0xff]  }
0x2141   : > { %v8876_v36 = vpop.eup %8875 }
0x2142   : > { %v5743_v8 = vsel %vm3795_vm2, %v8876_v36, 0.0 }
0x2143   : > { %5744 = vadd.xlane.f32.xlu0 %v5743_v8  ;;  %v4710_v58 = vpop.permute.xlu1 %4709  ;;  %v5817_v11 = vld [vmem:[#allocation2 + $0x28] sm:$0xff]  ;;  %v8640_v8 = vld [vmem:[%s11604_s10 + $0x1c4] ss:$16 sps:$4 sm:$0xff]  }
0x2144   : > { %4715 = vst.msk [vmem:[#allocation2 + $0x18] sm:$0xff] %vm3991_vm3, %v4710_v58  ;;  %v8638_v58 = vld [vmem:[%s11604_s10 + $0x1c0] ss:$16 sps:$4 sm:$0xff]  }
0x2145   : > { %v8878_v34 = vpop.eup %8877 }
0x2146   : > { %v5746_v46 = vsel %vm3795_vm2, %v8878_v34, 0.0 }
0x2147   : > { %5747 = vadd.xlane.f32.xlu0 %v5746_v46  ;;  %v4469_v28 = vpop.permute.xlu1 %4468  ;;  %v8641_v46 = vld [vmem:[%s11604_s10 + $0x1a0] ss:$16 sps:$4 sm:$0xff]  }
0x2148   : > { %4474 = vst.msk [vmem:[#allocation2 + $0x10] sm:$0xff] %vm3991_vm3, %v4469_v28  ;;  %v8646_v28 = vld [vmem:[%s11604_s10 + $0x184] ss:$16 sps:$4 sm:$0xff]  }
0x2149   : > { %v5812_v48 = vld [vmem:[#allocation2] sm:$0xff] }
0x214b   : > { %v5259_v23 = vpop.permute.xlu1 %5258  ;;  %v5815_v13 = vld [vmem:[#allocation2 + $0x18] sm:$0xff] }
0x214c   : > { %5264 = vst.msk [vmem:[#allocation2 + $0x48] sm:$0xff] %vm3991_vm3, %v5259_v23  ;;  %v8644_v23 = vld [vmem:[%s11604_s10 + $0x180] ss:$16 sps:$4 sm:$0xff]  }
0x214f   : > { %v4986_v47 = vpop.permute.xlu1 %4985  ;;  %v5814_v40 = vld [vmem:[#allocation2 + $0x10] sm:$0xff] }
0x2150   : > { %4991 = vst.msk [vmem:[#allocation2 + $0x40] sm:$0xff] %vm3991_vm3, %v4986_v47  ;;  %v8652_v47 = vld [vmem:[%s11604_s10 + $0x144] ss:$16 sps:$4 sm:$0xff]  }
0x215d   : > { %4227 = vrot.lane.b32.xlu0 %v10689_v3, %s8945_s17  ;;  %v8610_v3 = vld [vmem:[%s11604_s10 + $0x324] ss:$16 sps:$4 sm:$0xff]  }
0x215e   : > { %6707 = vmatprep.subr.bf16.mxu0 %v8610_v3  ;;  %v8659_v3 = vld [vmem:[%s11604_s10 + $0xe8] ss:$16 sps:$4 sm:$0xff]  }
0x215f   : > { %6708 = vmatpush2.bf16.msra.mxu0 %v8608_v9 }
0x2160   : > { %6709 = vmatprep.subr.bf16.mxu0 %v8616_v17  ;;  %v5821_v17 = vld [vmem:[#allocation2 + $0x48] sm:$0xff] }
0x2161   : > { %3987 = vrot.lane.b32.xlu0 %v10617_v24, %s8945_s17  ;;  %v8614_v24 = vld [vmem:[%s11604_s10 + $0x300] ss:$16 sps:$4 sm:$0xff]  }
0x2163   : > { %6710 = vmatpush2.bf16.msra.mxu0 %v8614_v24  ;;  %v8664_v24 = vld [vmem:[%s11604_s10 + $0xcc] ss:$16 sps:$4 sm:$0xff]  }
0x2165   : > { %4711 = vrot.lane.b32.xlu0 %v10831_v15, %s8945_s17 }
0x2169   : > { %4470 = vrot.lane.b32.xlu0 %v11629_v33, %s8945_s17 }
0x216d   : > { %5260 = vrot.lane.b32.xlu0 %v10961_v6, %s8945_s17 }
0x2171   : > { %4987 = vrot.lane.b32.xlu0 %v10899_v41, %s8945_s17  ;;  %v8605_v41 = vld [vmem:[%s11604_s10 + $0xe0] ss:$16 sps:$4 sm:$0xff]  }
0x21cc   : > { %v5745_v15 = vpop.xlane.xlu0 %5744 }
0x21cd   : > { %8879 = vrcp.f32 %v5745_v15  ;;  %v8662_v15 = vld [vmem:[%s11604_s10 + $0xc8] ss:$16 sps:$4 sm:$0xff]  }
0x21d0   : > { %v5748_v20 = vpop.xlane.xlu0 %5747 }
0x21d1   : > { %8881 = vrcp.f32 %v5748_v20  ;;  %v8667_v20 = vld [vmem:[%s11604_s10 + $0xac] ss:$16 sps:$4 sm:$0xff]  }
0x21d4   : > { %v4228_v22 = vpop.permute.xlu0 %4227 }
0x21d5   : > { %4233 = vst.msk [vmem:[#allocation2 + $0x8] sm:$0xff] %vm3991_vm3, %v4228_v22 }
0x21d8   : > { %v3988_v49 = vpop.permute.xlu0 %3987 }
0x21d9   : > { %3993 = vst.msk [vmem:[#allocation2 + $0x20] sm:$0xff] %vm3991_vm3, %v3988_v49  ;;  %v5820_v49 = vld [vmem:[#allocation2 + $0x40] sm:$0xff] }
0x21da   : > { %v8880_v26 = vpop.eup %8879 }
0x21db   : > { %v5751_v51 = vmul.f32 %v8880_v26, %v8876_v36  ;;  %v8635_v36 = vld [vmem:[%s11604_s10 + $0x1e0] ss:$16 sps:$4 sm:$0xff]   ;;  %v8665_v26 = vld [vmem:[%s11604_s10 + $0xa8] ss:$16 sps:$4 sm:$0xff]  }
0x21dc   : > { %v4712_v59 = vpop.permute.xlu0 %4711  ;;  %v5813_v5 = vld [vmem:[#allocation2 + $0x8] sm:$0xff] }
0x21dd   : > { %4716 = vst.msk [vmem:[#allocation2 + $0x38] sm:$0xff] %vm3991_vm3, %v4712_v59  ;;  %v11197_v4 = vpack.c.bf16 %v5817_v11, %v5813_v5  ;;  %v8671_v5 = vld [vmem:[%s11604_s10 + $0x68] ss:$16 sps:$4 sm:$0xff]  }
0x21de   : > { %v8882_v29 = vpop.eup %8881  ;;  %v8677_v11 = vld [vmem:[%s11604_s10 + $0x28] ss:$16 sps:$4 sm:$0xff]  }
0x21df   : > { %v5752_v6 = vmul.f32 %v8882_v29, %v8878_v34  ;;  %v8643_v34 = vld [vmem:[%s11604_s10 + $0x1a4] ss:$16 sps:$4 sm:$0xff]   ;;  %v8670_v29 = vld [vmem:[%s11604_s10 + $0x8c] ss:$16 sps:$4 sm:$0xff]  }
0x21e0   : > { %v4471_v57 = vpop.permute.xlu0 %4470  ;;  %v5816_v44 = vld [vmem:[#allocation2 + $0x20] sm:$0xff] }
0x21e1   : > { %4475 = vst.msk [vmem:[#allocation2 + $0x30] sm:$0xff] %vm3991_vm3, %v4471_v57  ;;  %v5753_v16 = vpack.c.bf16 %v5752_v6, %v5751_v51  ;;  %v11302_v9 = vpack.c.bf16 %v5816_v44, %v5812_v48  ;;  %v8668_v51 = vld [vmem:[%s11604_s10 + $0x88] ss:$16 sps:$4 sm:$0xff]   ;;  %v8673_v6 = vld [vmem:[%s11604_s10 + $0x6c] ss:$16 sps:$4 sm:$0xff]  }
0x21e2   : > { %v8676_v57 = vld [vmem:[%s11604_s10 + $0x4c] ss:$16 sps:$4 sm:$0xff]   ;;  %v8737_v44 = vld [vmem:[%s11604_s10 + $0x3a8] ss:$16 sps:$4 sm:$0xff]  }
0x21e3   : > { %7939 = vmatmul.mubr.msk.bf16.vlgmr.msra.gmra.mxu1 %vm3795_vm2, %v5753_v16  ;;  %v8679_v16 = vld [vmem:[%s11604_s10 + $0x2c] ss:$16 sps:$4 sm:$0xff]   ;;  %v8740_v48 = vld [vmem:[%s11604_s10 + $0x388] ss:$16 sps:$4 sm:$0xff]  }
0x21e4   : > { %6627 = vmatpush1.bf16.msra.mxu1 %v8605_v41  ;;  %v5261_v31 = vpop.permute.xlu0 %5260  ;;  %6658 = vmatprep.mubr.bf16.mxu1 %v11197_v4  ;;  %v5819_v56 = vld [vmem:[#allocation2 + $0x38] sm:$0xff] }
0x21e5   : > { %5265 = vst.msk [vmem:[#allocation2 + $0x68] sm:$0xff] %vm3991_vm3, %v5261_v31  ;;  %6628 = vmatprep.subr.bf16.mxu1 %v8613_v12  ;;  %v11205_v18 = vpack.c.bf16 %v5819_v56, %v5815_v13  ;;  %v8674_v41 = vld [vmem:[%s11604_s10 + $0x48] ss:$16 sps:$4 sm:$0xff]   ;;  %v8682_v12 = vld [vmem:[%s11604_s10 + $0xc] ss:$16 sps:$4 sm:$0xff]  }
0x21e6   : > { %v8685_v31 = vld [vmem:[%s11604_s10 + $0x1ec] ss:$16 sps:$4 sm:$0xff]   ;;  %v8686_v56 = vld [vmem:[%s11604_s10 + $0x1c8] ss:$16 sps:$4 sm:$0xff]  }
0x21e7   : > { %6711 = vmatprep.mubr.bf16.mxu0 %v11205_v18  ;;  %v8688_v13 = vld [vmem:[%s11604_s10 + $0x1cc] ss:$16 sps:$4 sm:$0xff]  }
0x21e8   : > { %6629 = vmatpush1.bf16.msra.mxu1 %v8611_v38  ;;  %v4988_v0 = vpop.permute.xlu0 %4987  ;;  %v5818_v50 = vld [vmem:[#allocation2 + $0x30] sm:$0xff]  ;;  %v8683_v38 = vld [vmem:[%s11604_s10 + $0x1e8] ss:$16 sps:$4 sm:$0xff]  }
0x21e9   : > { %4992 = vst.msk [vmem:[#allocation2 + $0x60] sm:$0xff] %vm3991_vm3, %v4988_v0  ;;  %6630 = vmatprep.subr.bf16.mxu1 %v8619_v1  ;;  %v11215_v21 = vpack.c.bf16 %v5818_v50, %v5814_v40  ;;  %v8691_v1 = vld [vmem:[%s11604_s10 + $0x1ac] ss:$16 sps:$4 sm:$0xff]   ;;  %v8689_v0 = vld [vmem:[%s11604_s10 + $0x1a8] ss:$16 sps:$4 sm:$0xff]  }
0x21ea   : > { %v8692_v40 = vld [vmem:[%s11604_s10 + $0x188] ss:$16 sps:$4 sm:$0xff]   ;;  %v8697_v50 = vld [vmem:[%s11604_s10 + $0x16c] ss:$16 sps:$4 sm:$0xff]  }
0x21eb   : > { %6712 = vmatmul.mubr.bf16.vlgmr.msra.gmra.mxu0 %v11215_v21 }
0x21ec   : > { %6631 = vmatpush1.bf16.msra.mxu1 %v8617_v37  ;;  %v5825_v14 = vld [vmem:[#allocation2 + $0x68] sm:$0xff] }
0x21ed   : > { %6632 = vmatprep.subr.bf16.mxu1 %v8622_v54  ;;  %v11307_v33 = vpack.c.bf16 %v5825_v14, %v5821_v17  ;;  %v8694_v37 = vld [vmem:[%s11604_s10 + $0x18c] ss:$16 sps:$4 sm:$0xff]   ;;  %v8695_v54 = vld [vmem:[%s11604_s10 + $0x168] ss:$16 sps:$4 sm:$0xff]  }
0x21ee   : > { %v8739_v14 = vld [vmem:[%s11604_s10 + $0x3ac] ss:$16 sps:$4 sm:$0xff]  }
0x21ef   : > { %v8745_v17 = vld [vmem:[%s11604_s10 + $0x36c] ss:$16 sps:$4 sm:$0xff]  }
0x21f0   : > { %6633 = vmatpush1.bf16.msra.mxu1 %v8620_v10  ;;  %v5824_v22 = vld [vmem:[#allocation2 + $0x60] sm:$0xff]  ;;  %v8700_v10 = vld [vmem:[%s11604_s10 + $0x14c] ss:$16 sps:$4 sm:$0xff]  }
0x21f1   : > { %6634 = vmatprep.subr.bf16.mxu1 %v8625_v19  ;;  %v5832_v59 = vpack.c.bf16 %v5824_v22, %v5820_v49  ;;  %v8698_v19 = vld [vmem:[%s11604_s10 + $0x148] ss:$16 sps:$4 sm:$0xff]   ;;  %v8751_v49 = vld [vmem:[%s11604_s10 + $0x32c] ss:$16 sps:$4 sm:$0xff]  }
0x21f4   : > { %6635 = vmatpush1.bf16.msra.mxu1 %v8623_v7  ;;  %v8703_v7 = vld [vmem:[%s11604_s10 + $0x12c] ss:$16 sps:$4 sm:$0xff]  }
0x21f5   : > { %6636 = vmatprep.subr.bf16.mxu1 %v8628_v43  ;;  %v8701_v43 = vld [vmem:[%s11604_s10 + $0x128] ss:$16 sps:$4 sm:$0xff]  }
0x21f8   : > { %6637 = vmatpush1.bf16.msra.mxu1 %v8626_v53  ;;  %v8706_v53 = vld [vmem:[%s11604_s10 + $0x10c] ss:$16 sps:$4 sm:$0xff]  }
0x21f9   : > { %6638 = vmatprep.subr.bf16.mxu1 %v8631_v27  ;;  %v8704_v27 = vld [vmem:[%s11604_s10 + $0x108] ss:$16 sps:$4 sm:$0xff]  }
0x21fc   : > { %6639 = vmatpush1.bf16.msra.mxu1 %v8629_v61  ;;  %v8709_v61 = vld [vmem:[%s11604_s10 + $0x2ec] ss:$16 sps:$4 sm:$0xff]  }
0x21fd   : > { %6640 = vmatprep.subr.bf16.mxu1 %v8634_v45  ;;  %v8707_v45 = vld [vmem:[%s11604_s10 + $0x2e8] ss:$16 sps:$4 sm:$0xff]   ;;  %6785 = vmatprep.subr.bf16.mxu0 %v8709_v61 }
0x21fe   : > { %6786 = vmatpush1.bf16.msra.mxu0 %v8707_v45 }
0x2200   : > { %6641 = vmatpush1.bf16.msra.mxu1 %v8632_v30  ;;  %v8712_v30 = vld [vmem:[%s11604_s10 + $0x2cc] ss:$16 sps:$4 sm:$0xff]  }
0x2201   : > { %6642 = vmatprep.subr.bf16.mxu1 %v8637_v2  ;;  %v8710_v2 = vld [vmem:[%s11604_s10 + $0x2c8] ss:$16 sps:$4 sm:$0xff]   ;;  %6787 = vmatprep.subr.bf16.mxu0 %v8712_v30 }
0x2202   : > { %6788 = vmatpush1.bf16.msra.mxu0 %v8710_v2 }
0x2204   : > { %6643 = vmatpush2.bf16.msra.mxu1 %v8635_v36  ;;  %v8715_v36 = vld [vmem:[%s11604_s10 + $0x2ac] ss:$16 sps:$4 sm:$0xff]  }
0x2205   : > { %6644 = vmatprep.subr.bf16.mxu1 %v8640_v8  ;;  %v8713_v8 = vld [vmem:[%s11604_s10 + $0x2a8] ss:$16 sps:$4 sm:$0xff]   ;;  %6789 = vmatprep.subr.bf16.mxu0 %v8715_v36 }
0x2206   : > { %6790 = vmatpush1.bf16.msra.mxu0 %v8713_v8 }
0x2208   : > { %6645 = vmatpush2.bf16.msra.mxu1 %v8638_v58  ;;  %v8718_v58 = vld [vmem:[%s11604_s10 + $0x28c] ss:$16 sps:$4 sm:$0xff]  }
0x2209   : > { %6646 = vmatprep.subr.bf16.mxu1 %v8643_v34  ;;  %v8716_v34 = vld [vmem:[%s11604_s10 + $0x288] ss:$16 sps:$4 sm:$0xff]   ;;  %6791 = vmatprep.subr.bf16.mxu0 %v8718_v58 }
0x220a   : > { %6792 = vmatpush1.bf16.msra.mxu0 %v8716_v34 }
0x220c   : > { %6647 = vmatpush2.bf16.msra.mxu1 %v8641_v46  ;;  %v8721_v46 = vld [vmem:[%s11604_s10 + $0x26c] ss:$16 sps:$4 sm:$0xff]  }
0x220d   : > { %6648 = vmatprep.subr.bf16.mxu1 %v8646_v28  ;;  %v8719_v28 = vld [vmem:[%s11604_s10 + $0x268] ss:$16 sps:$4 sm:$0xff]   ;;  %6793 = vmatprep.subr.bf16.mxu0 %v8721_v46 }
0x220e   : > { %6794 = vmatpush1.bf16.msra.mxu0 %v8719_v28 }
0x2210   : > { %6649 = vmatpush2.bf16.msra.mxu1 %v8644_v23  ;;  %v8724_v23 = vld [vmem:[%s11604_s10 + $0x24c] ss:$16 sps:$4 sm:$0xff]  }
0x2211   : > { %6650 = vmatprep.subr.bf16.mxu1 %v8649_v63  ;;  %v8722_v63 = vld [vmem:[%s11604_s10 + $0x248] ss:$16 sps:$4 sm:$0xff]   ;;  %6795 = vmatprep.subr.bf16.mxu0 %v8724_v23 }
0x2212   : > { %6796 = vmatpush1.bf16.msra.mxu0 %v8722_v63 }
0x2214   : > { %6651 = vmatpush2.bf16.msra.mxu1 %v8647_v35  ;;  %v8727_v35 = vld [vmem:[%s11604_s10 + $0x22c] ss:$16 sps:$4 sm:$0xff]  }
0x2215   : > { %6652 = vmatprep.subr.bf16.mxu1 %v8652_v47  ;;  %v8725_v47 = vld [vmem:[%s11604_s10 + $0x228] ss:$16 sps:$4 sm:$0xff]   ;;  %6797 = vmatprep.subr.bf16.mxu0 %v8727_v35 }
0x2216   : > { %6798 = vmatpush1.bf16.msra.mxu0 %v8725_v47 }
0x2218   : > { %6653 = vmatpush2.bf16.msra.mxu1 %v8650_v55  ;;  %v8730_v55 = vld [vmem:[%s11604_s10 + $0x20c] ss:$16 sps:$4 sm:$0xff]  }
0x2219   : > { %6654 = vmatprep.subr.bf16.mxu1 %v8655_v60  ;;  %v8728_v60 = vld [vmem:[%s11604_s10 + $0x208] ss:$16 sps:$4 sm:$0xff]   ;;  %6799 = vmatprep.subr.bf16.mxu0 %v8730_v55 }
0x221a   : > { %6800 = vmatpush1.bf16.msra.mxu0 %v8728_v60 }
0x221c   : > { %6655 = vmatpush2.bf16.msra.mxu1 %v8653_v39  ;;  %v8733_v39 = vld [vmem:[%s11604_s10 + $0x3ec] ss:$16 sps:$4 sm:$0xff]  }
0x221d   : > { %6656 = vmatprep.subr.bf16.mxu1 %v8658_v62  ;;  %v8731_v62 = vld [vmem:[%s11604_s10 + $0x3e8] ss:$16 sps:$4 sm:$0xff]   ;;  %6801 = vmatprep.subr.bf16.mxu0 %v8733_v39 }
0x221e   : > { %6802 = vmatpush2.bf16.msra.mxu0 %v8731_v62 }
0x2220   : > { %6657 = vmatpush2.bf16.msra.mxu1 %v8656_v32  ;;  %v8736_v32 = vld [vmem:[%s11604_s10 + $0x3cc] ss:$16 sps:$4 sm:$0xff]  }
0x2221   : > { %6732 = vmatprep.subr.bf16.mxu1 %v8661_v25  ;;  %v8734_v25 = vld [vmem:[%s11604_s10 + $0x3c8] ss:$16 sps:$4 sm:$0xff]   ;;  %6803 = vmatprep.subr.bf16.mxu0 %v8736_v32 }
0x2222   : > { %6804 = vmatpush2.bf16.msra.mxu0 %v8734_v25 }
0x2223   : > { %6659 = vmatmul.mubr.bf16.vlgmr.msra.gmra.mxu1 %v11302_v9  ;;  %6805 = vmatprep.subr.bf16.mxu0 %v8739_v14 }
0x2224   : > { %6668 = vmatprep.mubr.bf16.mxu1 %v11307_v33  ;;  %6733 = vmatpush1.bf16.msra.mxu1 %v8659_v3  ;;  %v8742_v3 = vld [vmem:[%s11604_s10 + $0x38c] ss:$16 sps:$4 sm:$0xff]  }
0x2225   : > { %6734 = vmatprep.subr.bf16.mxu1 %v8664_v24 }
0x2226   : > { %6806 = vmatpush2.bf16.msra.mxu0 %v8737_v44 }
0x2227   : > { %6807 = vmatprep.subr.bf16.mxu0 %v8742_v3 }
0x2228   : > { %6735 = vmatpush1.bf16.msra.mxu1 %v8662_v15 }
0x2229   : > { %6736 = vmatprep.subr.bf16.mxu1 %v8667_v20  ;;  %v8746_v20 = vld [vmem:[%s11604_s10 + $0x348] ss:$16 sps:$4 sm:$0xff]  }
0x222a   : > { %6808 = vmatpush2.bf16.msra.mxu0 %v8740_v48  ;;  %v11633_v48 = vld [vmem:[#allocation12_spill] sm:$0xff] }
0x222b   : > { %6669 = vmatmul.mubr.bf16.gmra.mxu1 %v5832_v59  ;;  %6809 = vmatprep.subr.bf16.mxu0 %v8745_v17 }
0x222c   : > { %6737 = vmatpush1.bf16.msra.mxu1 %v8665_v26  ;;  %6764 = vmatprep.mubr.bf16.mxu1 %v11197_v4  ;;  %v8680_v4 = vld [vmem:[%s11604_s10 + $0x8] ss:$16 sps:$4 sm:$0xff]  }
0x222d   : > { %6738 = vmatprep.subr.bf16.mxu1 %v8670_v29  ;;  %v8752_v29 = vld [vmem:[%s11604_s10 + $0x308] ss:$16 sps:$4 sm:$0xff]  }
0x2230   : > { %6739 = vmatpush1.bf16.msra.mxu1 %v8668_v51  ;;  %v11506_v51 = vld [vmem:[%s11605_s11] sm:$0xf] }
0x2231   : > { %6740 = vmatprep.subr.bf16.mxu1 %v8673_v6  ;;  %v5981_v3 = vrot.slane %v11506_v51, %v11633_v48 }
0x2234   : > { %6741 = vmatpush1.bf16.msra.mxu1 %v8671_v5  ;;  %v11630_v5 = vld [vmem:[#allocation9_spill] sm:$0xff] }
0x2235   : > { %6742 = vmatprep.subr.bf16.mxu1 %v8676_v57  ;;  %v11631_v57 = vld [vmem:[#allocation10_spill] sm:$0xff] }
0x2238   : > { %6743 = vmatpush1.bf16.msra.mxu1 %v8674_v41  ;;  %v5973_v41 = vrot.slane %v11506_v51, %v11631_v57 }
0x2239   : > { %6744 = vmatprep.subr.bf16.mxu1 %v8679_v16 }
0x223c   : > { %6745 = vmatpush1.bf16.msra.mxu1 %v8677_v11 }
0x223d   : > { %6746 = vmatprep.subr.bf16.mxu1 %v8682_v12 }
0x2240   : > { %6747 = vmatpush1.bf16.msra.mxu1 %v8680_v4 }
0x2241   : > { %6748 = vmatprep.subr.bf16.mxu1 %v8685_v31 }
0x2244   : > { %6749 = vmatpush2.bf16.msra.mxu1 %v8683_v38 }
0x2245   : > { %6750 = vmatprep.subr.bf16.mxu1 %v8688_v13 }
0x2248   : > { %6751 = vmatpush2.bf16.msra.mxu1 %v8686_v56 }
0x2249   : > { %6752 = vmatprep.subr.bf16.mxu1 %v8691_v1 }
0x224c   : > { %6753 = vmatpush2.bf16.msra.mxu1 %v8689_v0 }
0x224d   : > { %6754 = vmatprep.subr.bf16.mxu1 %v8694_v37 }
0x2250   : > { %6755 = vmatpush2.bf16.msra.mxu1 %v8692_v40 }
0x2251   : > { %6756 = vmatprep.subr.bf16.mxu1 %v8697_v50 }
0x2254   : > { %6757 = vmatpush2.bf16.msra.mxu1 %v8695_v54 }
0x2255   : > { %6758 = vmatprep.subr.bf16.mxu1 %v8700_v10 }
0x2258   : > { %6759 = vmatpush2.bf16.msra.mxu1 %v8698_v19 }
0x2259   : > { %6760 = vmatprep.subr.bf16.mxu1 %v8703_v7 }
0x225c   : > { %6761 = vmatpush2.bf16.msra.mxu1 %v8701_v43 }
0x225d   : > { %6762 = vmatprep.subr.bf16.mxu1 %v8706_v53 }
0x2260   : > { %6763 = vmatpush2.bf16.msra.mxu1 %v8704_v27 }
0x2263   : > { %6765 = vmatmul.mubr.bf16.vlgmr.msra.gmra.mxu1 %v11302_v9  ;;  %v8743_v9 = vld [vmem:[%s11604_s10 + $0x368] ss:$16 sps:$4 sm:$0xff]  }
0x2264   : > { %6774 = vmatprep.mubr.bf16.mxu1 %v11307_v33  ;;  %6810 = vmatpush2.bf16.msra.mxu0 %v8743_v9  ;;  %v8748_v33 = vld [vmem:[%s11604_s10 + $0x34c] ss:$16 sps:$4 sm:$0xff]  }
0x2265   : > { %6811 = vmatprep.subr.bf16.mxu0 %v8748_v33 }
0x2268   : > { %6812 = vmatpush2.bf16.msra.mxu0 %v8746_v20 }
0x2269   : > { %6813 = vmatprep.subr.bf16.mxu0 %v8751_v49 }
0x226b   : > { %6775 = vmatmul.mubr.bf16.gmra.mxu1 %v5832_v59  ;;  %v8749_v59 = vld [vmem:[%s11604_s10 + $0x328] ss:$16 sps:$4 sm:$0xff]  }
0x226c   : > { %6814 = vmatpush2.bf16.msra.mxu0 %v8749_v59 }
0x22a3   : > { %v5795_v24 = vpop.f32.mrf.mxu1 }
0x22a4   : > { %5804 = vrot.lane.b32.xlu1 %v5795_v24, %s8945_s17 }
0x22a5   : > { %v7940_v15 = vpop.f32.mrf.mxu1 }
0x22a7   : > { %v5798_v22 = vpop.f32.mrf.mxu1 }
0x22a8   : > { %5531 = vrot.lane.b32.xlu1 %v11021_v42, %s8945_s17  ;;  %5806 = vrot.lane.b32.xlu0 %v5798_v22, %s8945_s17  ;;  %v8754_v42 = vld [vmem:[%s11604_s10 + $0x30c] ss:$16 sps:$4 sm:$0xff]  }
0x22a9   : > { %v7941_v26 = vpop.f32.mrf.mxu1  ;;  %6815 = vmatprep.subr.bf16.mxu0 %v8754_v42 }
0x22aa   : > { %6816 = vmatpush2.bf16.msra.mxu0 %v8752_v29 }
0x22ab   : > { %v6713_v6 = vpop.f32.mrf.mxu0 }
0x22ac   : > { %5533 = vrot.lane.b32.xlu0 %v11023_v52, %s8945_s17  ;;  %v5969_v52 = vrot.slane %v11506_v51, %v11630_v5  ;;  %s6971_s17 = sshll.u32 %s461_s23, 7 }
0x22ad   : > { %v6715_v16 = vpop.f32.mrf.mxu0  ;;  %s11515_s29 = scalar_lea.vmem [#allocation3], %s6971_s17 }
0x22ae   : > { %s6869_s20 = sshll.u32 %s11515_s29, 4  ;;  %s11548_s20 = int_to_ptr.vmem [resolvable:$true] %s6869_s20 }
0x22af   : > { %v6717_v13 = vpop.f32.mrf.mxu0  ;;  %s8883_s27 = scalar_lea.vmem %s11548_s20, 2048  ;;  %p8890_p0 = scmp.lt.s32.totalorder %s11548_s20, %s8888_s26 }
0x22b0   : > { %p8884_p11 = scmp.ne.s32.totalorder %s11548_s20, %s8883_s27  ;;  %p8891_p1 = scmp.lt.s32.totalorder %s8889_s28, %s8883_s27 }
0x22b1   : > { %v6719_v54 = vpop.f32.mrf.mxu0 }
0x22b2   : > { %p8885_p12 = pnand %p8884_p11, %p9055_p5  ;;  %p8892_p2 = por %p8891_p1, %p8890_p0 }
0x22b4   : > { %p8886_p13 = pneg %p8885_p12 }
0x22b6   : > { %p8893_p3 = pnand %p8892_p2, %p8886_p13 }
0x22e3   : > { %v6660_v11 = vpop.f32.mrf.mxu1 }
0x22e4   : > { %v6661_v12 = vadd.f32 %v6660_v11, %v5969_v52 }
0x22e5   : > { %v6662_v4 = vpop.f32.mrf.mxu1 }
0x22e6   : > { %v6714_v31 = vadd.f32 %v6713_v6, %v6661_v12  ;;  %v6663_v38 = vadd.f32 %v6662_v4, %v5973_v41 }
0x22e7   : > { %v6664_v56 = vpop.f32.mrf.mxu1 }
0x22e8   : > { %6838 = vst [vmem:[%s11515_s29] sm:$0xff] %v6714_v31  ;;  %v6716_v1 = vadd.f32 %v6715_v16, %v6663_v38  ;;  %v6665_v0 = vadd.f32 %v6664_v56, %v5969_v52 }
0x22e9   : > { %v6666_v37 = vpop.f32.mrf.mxu1 }
0x22ea   : > { %6839 = vst [vmem:[%s11515_s29 + $0x8] sm:$0xff] %v6716_v1  ;;  %v6718_v40 = vadd.f32 %v6717_v13, %v6665_v0  ;;  %v6667_v50 = vadd.f32 %v6666_v37, %v5973_v41 }
0x22eb   : > { %v6670_v8 = vpop.f32.mrf.mxu1 }
0x22ec   : > { %6842 = vst [vmem:[%s11515_s29 + $0x20] sm:$0xff] %v6718_v40  ;;  %v6720_v10 = vadd.f32 %v6719_v54, %v6667_v50  ;;  %v6671_v35 = vadd.f32 %v6670_v8, %v5969_v52 }
0x22ed   : > { %v6672_v58 = vpop.f32.mrf.mxu1 }
0x22ee   : > { %6843 = vst [vmem:[%s11515_s29 + $0x28] sm:$0xff] %v6720_v10  ;;  %v6673_v55 = vadd.f32 %v6672_v58, %v5973_v41 }
0x22ef   : > { %v6674_v34 = vpop.f32.mrf.mxu1 }
0x22f0   : > { %v6675_v62 = vadd.f32 %v6674_v34, %v5969_v52 }
0x22f1   : > { %v6676_v46 = vpop.f32.mrf.mxu1 }
0x22f2   : > { %v6677_v14 = vadd.f32 %v6676_v46, %v5973_v41 }
0x2316   : > { %v5805_v19 = vpop.permute.xlu1 %5804 }
0x2317   : > { %5810 = vst.msk [vmem:[#allocation2 + $0x58] sm:$0xff] %vm3991_vm3, %v5805_v19 }
0x231a   : > { %v5807_v7 = vpop.permute.xlu0 %5806  ;;  %v5532_v43 = vpop.permute.xlu1 %5531 }
0x231b   : > { %5811 = vst.msk [vmem:[#allocation2 + $0x78] sm:$0xff] %vm3991_vm3, %v5807_v7  ;;  %5537 = vst.msk [vmem:[#allocation2 + $0x50] sm:$0xff] %vm3991_vm3, %v5532_v43 }
0x231e   : > { %v5534_v53 = vpop.permute.xlu0 %5533  ;;  %v5823_v27 = vld [vmem:[#allocation2 + $0x58] sm:$0xff] }
0x231f   : > { %5538 = vst.msk [vmem:[#allocation2 + $0x70] sm:$0xff] %vm3991_vm3, %v5534_v53 }
0x2322   : > { %v5827_v61 = vld [vmem:[#allocation2 + $0x78] sm:$0xff]  ;;  %v5822_v30 = vld [vmem:[#allocation2 + $0x50] sm:$0xff] }
0x2323   : > { %v5835_v45 = vpack.c.bf16 %v5827_v61, %v5823_v27  ;;  %v6766_v28 = vpop.f32.mrf.mxu1 }
0x2325   : > { %6721 = vmatprep.mubr.bf16.mxu0 %v5835_v45  ;;  %v6768_v23 = vpop.f32.mrf.mxu1 }
0x2326   : > { %v5826_v2 = vld [vmem:[#allocation2 + $0x70] sm:$0xff]  ;;  %v6769_v22 = vadd.f32 %v6768_v23, %v5981_v3 }
0x2327   : > { %v5834_v36 = vpack.c.bf16 %v5826_v2, %v5822_v30  ;;  %v6770_v63 = vpop.f32.mrf.mxu1 }
0x2329   : > { %6722 = vmatmul.mubr.bf16.gmra.mxu0 %v5834_v36  ;;  %v6772_v39 = vpop.f32.mrf.mxu1 }
0x232a   : > { %6817 = vmatprep.mubr.bf16.mxu0 %v11205_v18  ;;  %v6773_v6 = vadd.f32 %v6772_v39, %v5981_v3 }
0x232b   : > { %v6776_v17 = vpop.f32.mrf.mxu1 }
0x232d   : > { %v6778_v26 = vpop.f32.mrf.mxu1 }
0x232e   : > { %v6779_v12 = vadd.f32 %v6778_v26, %v5981_v3 }
0x232f   : > { %v6780_v52 = vpop.f32.mrf.mxu1 }
0x2331   : > { %6818 = vmatmul.mubr.bf16.vlgmr.msra.gmra.mxu0 %v11215_v21  ;;  %v11632_v21 = vld [vmem:[#allocation11_spill] sm:$0xff]  ;;  %v6782_v31 = vpop.f32.mrf.mxu1 }
0x2332   : > { %6827 = vmatprep.mubr.bf16.mxu0 %v5835_v45  ;;  %v5977_v32 = vrot.slane %v11506_v51, %v11632_v21  ;;  %v6783_v0 = vadd.f32 %v6782_v31, %v5981_v3 }
0x2334   : > { %v6767_v33 = vadd.f32 %v6766_v28, %v5977_v32  ;;  %v6771_v42 = vadd.f32 %v6770_v63, %v5977_v32  ;;  %v6777_v41 = vadd.f32 %v6776_v17, %v5977_v32  ;;  %v6781_v13 = vadd.f32 %v6780_v52, %v5977_v32 }
0x2339   : > { %6828 = vmatmul.mubr.bf16.gmra.mxu0 %v5834_v36 }
0x23e9   : > { %v6723_v47 = vpop.f32.mrf.mxu0 }
0x23ea   : > { %v6724_v60 = vadd.f32 %v6723_v47, %v6671_v35 }
0x23eb   : > { %v6725_v18 = vpop.f32.mrf.mxu0 }
0x23ec   : > { %6846 = vst [vmem:[%s11515_s29 + $0x40] sm:$0xff] %v6724_v60  ;;  %v6726_v25 = vadd.f32 %v6725_v18, %v6673_v55 }
0x23ed   : > { %v6727_v44 = vpop.f32.mrf.mxu0 }
0x23ee   : > { %6847 = vst [vmem:[%s11515_s29 + $0x48] sm:$0xff] %v6726_v25  ;;  %v6728_v9 = vadd.f32 %v6727_v44, %v6675_v62 }
0x23ef   : > { %v6729_v24 = vpop.f32.mrf.mxu0 }
0x23f0   : > { %6850 = vst [vmem:[%s11515_s29 + $0x60] sm:$0xff] %v6728_v9  ;;  %v6730_v15 = vadd.f32 %v6729_v24, %v6677_v14 }
0x23f1   : > { %v6819_v20 = vpop.f32.mrf.mxu0 }
0x23f2   : > { %6851 = vst [vmem:[%s11515_s29 + $0x68] sm:$0xff] %v6730_v15  ;;  %v6820_v49 = vadd.f32 %v6819_v20, %v6767_v33 }
0x23f3   : > { %v6821_v59 = vpop.f32.mrf.mxu0 }
0x23f4   : > { %6840 = vst [vmem:[%s11515_s29 + $0x10] sm:$0xff] %v6820_v49  ;;  %v6822_v29 = vadd.f32 %v6821_v59, %v6769_v22 }
0x23f5   : > { %v6823_v51 = vpop.f32.mrf.mxu0 }
0x23f6   : > { %6841 = vst [vmem:[%s11515_s29 + $0x18] sm:$0xff] %v6822_v29  ;;  %v6824_v5 = vadd.f32 %v6823_v51, %v6771_v42 }
0x23f7   : > { %v6825_v57 = vpop.f32.mrf.mxu0 }
0x23f8   : > { %6844 = vst [vmem:[%s11515_s29 + $0x30] sm:$0xff] %v6824_v5  ;;  %v6826_v16 = vadd.f32 %v6825_v57, %v6773_v6 }
0x23f9   : > { %v6829_v11 = vpop.f32.mrf.mxu0 }
0x23fa   : > { %6845 = vst [vmem:[%s11515_s29 + $0x38] sm:$0xff] %v6826_v16  ;;  %v6830_v4 = vadd.f32 %v6829_v11, %v6777_v41 }
0x23fb   : > { %v6831_v38 = vpop.f32.mrf.mxu0 }
0x23fc   : > { %6848 = vst [vmem:[%s11515_s29 + $0x50] sm:$0xff] %v6830_v4  ;;  %v6832_v56 = vadd.f32 %v6831_v38, %v6779_v12 }
0x23fd   : > { %v6833_v1 = vpop.f32.mrf.mxu0 }
0x23fe   : > { %6849 = vst [vmem:[%s11515_s29 + $0x58] sm:$0xff] %v6832_v56  ;;  %v6834_v37 = vadd.f32 %v6833_v1, %v6781_v13 }
0x23ff   : > { %v6835_v40 = vpop.f32.mrf.mxu0 }
0x2400   : > { %6852 = vst [vmem:[%s11515_s29 + $0x70] sm:$0xff] %v6834_v37  ;;  %v6836_v50 = vadd.f32 %v6835_v40, %v6783_v0 }
0x2402   : > { %6853 = vst [vmem:[%s11515_s29 + $0x78] sm:$0xff] %v6836_v50 }
0x2403   : > { %8896 = shalt.err (!%p8893_p3)
}
0x2404   : > { %s8897_s30 = scalar_lea.hbm %s11546_s0, 2048  ;;  %s8901_s29 = scalar_lea.hbm %s11606_s12, 4096 }
0x2405   : > { %p8898_p4 = scmp.ne.s32.totalorder %s11546_s0, %s8897_s30  ;;  %p8902_p9 = scmp.lt.s32.totalorder %s11546_s0, %s11606_s12 }
0x2406   : > { %p8903_p10 = scmp.lt.s32.totalorder %s8901_s29, %s8897_s30 }
0x2407   : > { %p8899_p7 = pnand %p8898_p4, %p9055_p5 }
0x2408   : > { %p8904_p11 = por %p8903_p10, %p8902_p9 }
0x2409   : > { %p8900_p8 = pneg %p8899_p7 }
0x240b   : > { %p8905_p12 = pnand %p8904_p11, %p8900_p8 }
0x240d   : > { %8908 = shalt.err (!%p8905_p12)
}
0x240e   : > { %s8950_s15 = smov 512   ;;  %s8951_s27 = smov 32  }
0x240f   : > { %7942 = dma.vmem_to_hbm [thread:$0]  (%p9055_p5), %s11548_s20, 2048, %s11546_s0, %s11554_s25, %s8950_s15, %s8950_s15, %s8951_s27  }
0x2410 PF: > { %p7948_p13 = scmp.ge.s32.totalorder %s8943_s24, 2  ;;  %s6884_s19 = sand.u32 1, %s8931_s21  }
0x2411   : > { %s6885_s26 = scalar_lea.sflag [#allocation4], %s6884_s19 }
0x2412   : > { %p7945_p0 = pnand %p7948_p13, %p9059_p6 }
0x2414   : > { %p7946_p1 = pneg %p7945_p0 }
0x2416   : > { %8926 = dma.done.wait (%p7946_p1), %s6885_s26, 2048  }
0x2417   : > { %8928 = vsyncadd (%p7946_p1), %s6885_s26, 4294965248  ;;  %s11634_s24 = sld [smem:[#allocation7_spill]]  ;;  %s11637_s21 = smov %s8935_s22 }
0x2418   : > { %s11635_s28 = sld [smem:[#allocation6_spill]] }
0x2419   : > { %s11636_s23 = sld [smem:[#allocation8_spill]] }
0x241d   : > { %p22_p2 = scmp.ge.s32.totalorder %s11634_s24, 4  }
0x241e   : > { %s11638_s22 = smov %s11635_s28 }
0x241f   :  { %24 = sbr.rel (!%p22_p2) target bundleno = 5 (0x5), region = 113 }
0x2424   :  { %6890 = vsyncpa [#allocation4], 1 }
0x2425   :  { %6892 = vsyncpa [#allocation4 + $0x1], 1 }

</bundles_post_ra>
